<compile_context>
chip_gen: v5e
topology: v5e:2x2
jax: 0.10.0
libtpu: 0.0.40
codegen_flags: <defaults>
</compile_context>

<pallas_src>
import functools

import jax
import jax.numpy as jnp
from jax.experimental import pallas as pl
from jax.experimental.pallas import tpu as pltpu

IN_FEATURES = 4096
OUT_FEATURES = 512
DROP_P = 0.1


def _fc_relu_kernel(x_ref, w_ref, b_ref, o_ref):
    # [B, K] @ [K, tn] on the MXU, fp32 accumulation; bias + ReLU epilogue.
    y = jnp.dot(x_ref[...], w_ref[...], preferred_element_type=jnp.float32)
    y = jnp.maximum(y + b_ref[...], 0.0)
    o_ref[...] = y.astype(o_ref.dtype)


def _fc_relu_dropout_kernel(x_ref, w_ref, b_ref, m_ref, o_ref):
    y = jnp.dot(x_ref[...], w_ref[...], preferred_element_type=jnp.float32)
    y = jnp.maximum(y + b_ref[...], 0.0)
    # m_ref holds the pre-scaled inverted-dropout mask: keep / (1 - p).
    y = y * m_ref[...]
    o_ref[...] = y.astype(o_ref.dtype)


def layer9_forward(x, w_t, b, *, dropout_key=None, training=True,
                   tn=256, compute_dtype=None):
    """x: [B, 4096], w_t: [4096, 512] (= weight.T), b: [512].

    dropout_key: jax PRNG key used for the dropout mask when training=True
    (vary it per step — this fixes the deterministic-seed concern).
    compute_dtype: e.g. jnp.bfloat16 to halve weight HBM traffic.
    """
    B, K = x.shape
    assert K == IN_FEATURES
    N = OUT_FEATURES
    assert N % tn == 0

    out_dtype = x.dtype
    if compute_dtype is not None:
        x = x.astype(compute_dtype)
        w_t = w_t.astype(compute_dtype)
    b2d = b.reshape(1, N).astype(jnp.float32)

    grid = (N // tn,)
    x_spec = pl.BlockSpec((B, K), lambda j: (0, 0))     # resident across N tiles
    w_spec = pl.BlockSpec((K, tn), lambda j: (0, j))    # streamed weight slab
    b_spec = pl.BlockSpec((1, tn), lambda j: (0, j))
    o_spec = pl.BlockSpec((B, tn), lambda j: (0, j))
    cparams = pltpu.CompilerParams(dimension_semantics=("parallel",))

    apply_dropout = training and (dropout_key is not None) and DROP_P > 0.0
    if apply_dropout:
        keep = jax.random.bernoulli(dropout_key, 1.0 - DROP_P, (B, N))
        mask = keep.astype(jnp.float32) * (1.0 / (1.0 - DROP_P))
        m_spec = pl.BlockSpec((B, tn), lambda j: (0, j))
        return pl.pallas_call(
            _fc_relu_dropout_kernel,
            out_shape=jax.ShapeDtypeStruct((B, N), out_dtype),
            grid=grid,
            in_specs=[x_spec, w_spec, b_spec, m_spec],
            out_specs=o_spec,
            compiler_params=cparams,
        )(x, w_t, b2d, mask)

    return pl.pallas_call(
        _fc_relu_kernel,
        out_shape=jax.ShapeDtypeStruct((B, N), out_dtype),
        grid=grid,
        in_specs=[x_spec, w_spec, b_spec],
        out_specs=o_spec,
        compiler_params=cparams,
    )(x, w_t, b2d)


if __name__ == "__main__":
    key = jax.random.PRNGKey(0)
    kx, kw, kb, kdrop = jax.random.split(key, 4)

    B = 8
    x = jax.random.normal(kx, (B, IN_FEATURES), dtype=jnp.float32)

    # Deterministic parameter init (mimics nn.Linear uniform bound 1/sqrt(fan_in)).
    bound = 1.0 / jnp.sqrt(float(IN_FEATURES))
    w = jax.random.uniform(kw, (OUT_FEATURES, IN_FEATURES),
                           minval=-bound, maxval=bound, dtype=jnp.float32)
    b = jax.random.uniform(kb, (OUT_FEATURES,),
                           minval=-bound, maxval=bound, dtype=jnp.float32)
    w_t = w.T  # [4096, 512]

    # Training mode (dropout active), fp32 path.
    out_train = layer9_forward(x, w_t, b, dropout_key=kdrop, training=True)
    jax.block_until_ready(out_train)
    assert out_train.shape == (B, OUT_FEATURES)

    # Pure-JAX reference with the identical mask (same key -> same bernoulli draw).
    pre = jnp.maximum(x @ w_t + b, 0.0)
    keep_ref = jax.random.bernoulli(kdrop, 1.0 - DROP_P, (B, OUT_FEATURES))
    ref_train = pre * keep_ref.astype(jnp.float32) / (1.0 - DROP_P)
    assert jnp.allclose(out_train, ref_train, atol=1e-4, rtol=1e-4)

    # Eval mode (no dropout) matches the plain fused FC+ReLU.
    out_eval = layer9_forward(x, w_t, b, training=False)
    assert jnp.allclose(out_eval, pre, atol=1e-4, rtol=1e-4)

    # bf16 weight/activation path (halves weight HBM traffic), fp32 accumulation.
    out_bf16 = layer9_forward(x, w_t, b, training=False,
                              compute_dtype=jnp.bfloat16)
    jax.block_until_ready(out_bf16)
    assert jnp.allclose(out_bf16, pre, atol=5e-2, rtol=5e-2)

    print("KERNEL_OK")
</pallas_src>

<mosaic_0001>
module attributes {stable_mosaic.version = 11 : i64} {
  func.func @_fc_relu_dropout_kernel(%arg0: i32, %arg1: memref<8x4096xf32, #tpu.memory_space<vmem>>, %arg2: memref<4096x256xf32, #tpu.memory_space<vmem>>, %arg3: memref<1x256xf32, #tpu.memory_space<vmem>>, %arg4: memref<8x256xf32, #tpu.memory_space<vmem>>, %arg5: memref<8x256xf32, #tpu.memory_space<vmem>>) attributes {dimension_semantics = [#tpu.dimension_semantics<parallel>], iteration_bounds = array<i64: 2>, scalar_prefetch = 0 : i64, scratch_operands = 0 : i64, tpu.core_type = #tpu.core_type<tc>, window_params = [{pipeline_mode = #tpu.pipeline_mode<synchronous>, transform_indices = @transform_0, window_bounds = array<i64: 8, 4096>}, {transform_indices = @transform_1, window_bounds = array<i64: 4096, 256>}, {transform_indices = @transform_2, window_bounds = array<i64: 1, 256>}, {transform_indices = @transform_3, window_bounds = array<i64: 8, 256>}, {transform_indices = @transform_4, window_bounds = array<i64: 8, 256>}]} {
    %c0 = arith.constant 0 : index
    %c0_0 = arith.constant 0 : index
    %0 = vector.load %arg1[%c0, %c0_0] : memref<8x4096xf32, #tpu.memory_space<vmem>>, vector<8x4096xf32>
    %c0_1 = arith.constant 0 : index
    %c0_2 = arith.constant 0 : index
    %1 = vector.load %arg2[%c0_1, %c0_2] : memref<4096x256xf32, #tpu.memory_space<vmem>>, vector<4096x256xf32>
    %cst = arith.constant dense<0.000000e+00> : vector<8x256xf32>
    %2 = tpu.matmul %0, %1, %cst {dimension_numbers = #tpu.dot_dimension_numbers<[1], [0], [0], [1], [0, 0, 1, 1], [], []>} : vector<8x4096xf32>, vector<4096x256xf32>, vector<8x256xf32> -> vector<8x256xf32>
    %c0_3 = arith.constant 0 : index
    %c0_4 = arith.constant 0 : index
    %3 = vector.load %arg3[%c0_3, %c0_4] : memref<1x256xf32, #tpu.memory_space<vmem>>, vector<1x256xf32>
    %4 = vector.broadcast %3 : vector<1x256xf32> to vector<8x256xf32>
    %5 = arith.addf %2, %4 : vector<8x256xf32>
    %cst_5 = arith.constant 0.000000e+00 : f32
    %6 = vector.broadcast %cst_5 : f32 to vector<8x256xf32>
    %7 = arith.maximumf %5, %6 : vector<8x256xf32>
    %c0_6 = arith.constant 0 : index
    %c0_7 = arith.constant 0 : index
    %8 = vector.load %arg4[%c0_6, %c0_7] : memref<8x256xf32, #tpu.memory_space<vmem>>, vector<8x256xf32>
    %9 = arith.mulf %7, %8 : vector<8x256xf32>
    %c0_8 = arith.constant 0 : index
    %c0_9 = arith.constant 0 : index
    %10 = vector.load %arg5[%c0_8, %c0_9] : memref<8x256xf32, #tpu.memory_space<vmem>>, vector<8x256xf32>
    tpu.vector_store %arg5[%c0_8, %c0_9], %9 {strides = array<i32>} : memref<8x256xf32, #tpu.memory_space<vmem>>, vector<8x256xf32>,
    return
  }
  func.func @transform_0(%arg0: i32) -> (i32, i32) {
    %c0_i32 = arith.constant 0 : i32
    %c0_i32_0 = arith.constant 0 : i32
    %c0_i32_1 = arith.constant 0 : i32
    return %c0_i32, %c0_i32_0 : i32, i32
  }
  func.func @transform_1(%arg0: i32) -> (i32, i32) {
    %c0_i32 = arith.constant 0 : i32
    %c0_i32_0 = arith.constant 0 : i32
    return %c0_i32, %arg0 : i32, i32
  }
  func.func @transform_2(%arg0: i32) -> (i32, i32) {
    %c0_i32 = arith.constant 0 : i32
    %c0_i32_0 = arith.constant 0 : i32
    return %c0_i32, %arg0 : i32, i32
  }
  func.func @transform_3(%arg0: i32) -> (i32, i32) {
    %c0_i32 = arith.constant 0 : i32
    %c0_i32_0 = arith.constant 0 : i32
    return %c0_i32, %arg0 : i32, i32
  }
  func.func @transform_4(%arg0: i32) -> (i32, i32) {
    %c0_i32 = arith.constant 0 : i32
    %c0_i32_0 = arith.constant 0 : i32
    return %c0_i32, %arg0 : i32, i32
  }
}

</mosaic_0001>

<bundles_post_ra>
// kernel: tpu_custom_call.1
= control target key start
LH: loop header
LB: loop body
LE: loop exit
PB: predicated region body
PF: predicated region fallthrough
CT: control target
= control target key end

     0   :  { %s4400_s0 = inlined_call_operand.hbm [shape: f32[8,4096], index: 0, kind: input, shape index: {}]   ;;  %s4401_s1 = inlined_call_operand.hbm [shape: f32[4096,512], index: 1, kind: input, shape index: {}]   ;;  %s4402_s2 = inlined_call_operand.hbm [shape: f32[1,512], index: 2, kind: input, shape index: {}]   ;;  %s4403_s3 = inlined_call_operand.hbm [shape: f32[8,512], index: 3, kind: input, shape index: {}]   ;;  %s4404_s4 = inlined_call_operand.hbm [shape: f32[8,512], index: 4, kind: output, shape index: {}]  }
   0x1   :  { %4406 = sst [smem:[#allocation16_spill]] %s4400_s0 }
   0x2   :  { %4407 = sst [smem:[#allocation17_spill]] %s4401_s1 }
   0x3   :  { %9 = vsyncpa [#allocation3], 0 }
   0x4   :  { %10 = vsyncpa [#allocation6], 0 }
   0x5   :  { %12 = vsyncpa [#allocation6 + $0x1], 0 }
   0x6   :  { %13 = vsyncpa [#allocation9], 0 }
   0x7   :  { %15 = vsyncpa [#allocation9 + $0x1], 0 }
   0x8   :  { %16 = vsyncpa [#allocation4], 0 }
   0x9   :  { %18 = vsyncpa [#allocation4 + $0x1], 0  ;;  %s3159_s15 = smov 0   ;;  %s3161_s16 = smov 0  }
   0xa   :  { %s3163_s17 = smov 0   ;;  %s3165_s18 = smov 0  }
   0xb LB: > { %s3180_s19 = sadd.s32 1, %s3128_s18   ;;  %s52_s20 = sadd.s32 1, %s3124_s17  ;;  %s3128_s18 = sphi %s3165_s18, %s4422_s18   ;;  %s3124_s17 = sphi %s3163_s17, %s4421_s17   ;;  %s3120_s16 = sphi %s3161_s16, %s4420_s16   ;;  %s3116_s15 = sphi %s3159_s15, %s4419_s15  }
   0xc   : > { %s49_s21 = ssub.s32 %s3128_s18, %s3180_s19  ;;  %p59_p0 = scmp.ne.s32.totalorder %s3124_s17, %s3120_s16 }
   0xd   : > { %p50_p1 = scmp.eq.s32.totalorder %s49_s21, 0  ;;  %p60_p2 = scmp.eq.s32.totalorder %s3128_s18, 0 }
   0xe   : > { %p2862_p4 = scmp.lt.s32.totalorder %s3128_s18, 2  ;;  %s179_s23 = sand.u32 1, %s3128_s18  }
   0xf   : > { %s3191_s22 = scalar_select %p50_p1, %s3124_s17, %s52_s20  }
  0x10   : > { %p61_p5 = por %p60_p2, %p59_p0  ;;  %s3198_s24 = sand.u32 1, %s3124_s17  }
  0x11   : > { %4408 = sst [smem:[#allocation15_spill]] %s3191_s22  ;;  %s2809_s25 = sshll.u32 %s3198_s24, 13 }
  0x12   : > { %s4405_s26 = sshll.u32 %s3128_s18, 4  ;;  %s4409_s1 = sld [smem:[#allocation17_spill]] }
  0x13   : > { %s183_s5 = scalar_lea.vmem [#allocation5], %s2809_s25  ;;  %p3209_p6 = pnand %p2862_p4, %p61_p5 }
  0x14   : > { %s191_s6 = sshll.u32 %s183_s5, 4  ;;  %s3213_s8 = scalar_lea.sflag [#allocation6], %s179_s23  ;;  %s192_s6 = int_to_ptr.vmem [resolvable:$true] %s191_s6 }
  0x15   : > { %p2938_p8 = pneg %p3209_p6 }
  0x18   : > { %s188_s29 = scalar_lea.hbm %s4409_s1, %s4405_s26  ;;  %s2941_s13 = scalar_lea.hbm %s4409_s1, 16384 }
  0x19   : > { %s189_s30 = sshll.u32 %s188_s29, 4  ;;  %s190_s30 = int_to_ptr.hbm [resolvable:$true] %s189_s30 }
  0x1a   : > { %s2934_s9 = sshra.s32 %s190_s30, 4  ;;  %s2935_s9 = int_to_ptr.hbm [resolvable:$true] %s2934_s9 }
  0x1b   : > { %s2936_s10 = scalar_lea.hbm %s2935_s9, 8192  ;;  %p2942_p11 = scmp.lt.s32.totalorder %s2935_s9, %s4409_s1 }
  0x1c   : > { %p2937_p7 = scmp.ne.s32.totalorder %s2935_s9, %s2936_s10  ;;  %p2943_p12 = scmp.lt.s32.totalorder %s2941_s13, %s2936_s10 }
  0x1e   : > { %p2939_p9 = pnand %p2938_p8, %p2937_p7  ;;  %p2944_p13 = por %p2943_p12, %p2942_p11 }
  0x20   : > { %p2940_p10 = pneg %p2939_p9 }
  0x22   : > { %p2945_p1 = pnand %p2944_p13, %p2940_p10 }
  0x24   : > { %2948 = shalt.err (!%p2945_p1)
}
  0x25   : > { %s3130_s21 = smov 512   ;;  %s3131_s23 = smov 256  }
  0x26   : > { %s3132_s25 = smov 16   ;;  %s3230_s27 = sadd.s32 4294967295, %s3128_s18  }
  0x27   : > { %2850 = dma.hbm_to_vmem [thread:$0]  (!%p3209_p6), %s190_s30, 131072, %s192_s6, %s3213_s8, %s3130_s21, %s3131_s23, %s3132_s25  }
  0x28   : > { %s2805_s28 = sadd.s32 4294967294, %s3128_s18   ;;  %p65_p2 = scmp.ne.s32.totalorder %s3120_s16, %s3116_s15 }
  0x29   : > { %p66_p4 = scmp.eq.s32.totalorder %s3230_s27, 0  ;;  %p141_p5 = scmp.eq.s32.totalorder %s3230_s27, 1 }
  0x2a   : > { %p147_p7 = scmp.eq.s32.totalorder %s2805_s28, 1  ;;  %p2806_p9 = scmp.ge.s32.totalorder %s3128_s18, 1 }
  0x2b   : > { %p3240_p10 = por %p66_p4, %p65_p2  ;;  %p3247_p11 = por %p141_p5, %p59_p0 }
  0x2c   : > { %p3251_p12 = por %p147_p7, %p65_p2  ;;  %p154_p13 = scmp.lt.s32.totalorder %s3128_s18, 3 }
  0x2d   : > { %s4414_s0 = sld [smem:[#allocation16_spill]]  ;;  %s2812_s12 = sshll.u32 %s3198_s24, 1 }
  0x2e   : > { %p3259_p1 = pnand %p2806_p9, %p154_p13  ;;  %s3133_s13 = smov [#allocation2]  }
  0x2f   : > { %s168_s14 = sshll.u32 %s3133_s13, 4  ;;  %s2813_s20 = sshll.u32 %s3128_s18, 1  ;;  %s169_s14 = int_to_ptr.vmem [resolvable:$true] %s168_s14 }
  0x30   : > { %p2843_p0 = pneg %p3259_p1  ;;  %s209_s25 = scalar_lea.hbm %s4402_s2, %s2813_s20 }
  0x31   : > { %s205_s28 = scalar_lea.vmem [#allocation7], %s2812_s12  ;;  %s211_s9 = sshll.u32 %s209_s25, 4  ;;  %s212_s9 = int_to_ptr.hbm [resolvable:$true] %s211_s9 }
  0x32   : > { %p2844_p2 = pnand %p2843_p0, %p66_p4  ;;  %s213_s6 = sshll.u32 %s205_s28, 4  ;;  %s214_s6 = int_to_ptr.vmem [resolvable:$true] %s213_s6 }
  0x33   : > { %s166_s10 = sshll.u32 %s4414_s0, 4  ;;  %s2994_s26 = sshra.s32 %s212_s9, 4  ;;  %s167_s10 = int_to_ptr.hbm [resolvable:$true] %s166_s10  ;;  %s2995_s26 = int_to_ptr.hbm [resolvable:$true] %s2994_s26 }
  0x34   : > { %2846 = dma.hbm_to_vmem [thread:$0]  (!%p2844_p2), %s167_s10, 4096, %s169_s14, [#allocation3]  }
  0x35   : > { %s2996_s0 = scalar_lea.hbm %s2995_s26, 2  ;;  %s3001_s22 = scalar_lea.hbm %s4402_s2, 4 }
  0x36   : > { %p2997_p5 = scmp.ne.s32.totalorder %s2995_s26, %s2996_s0  ;;  %p3002_p13 = scmp.lt.s32.totalorder %s2995_s26, %s4402_s2 }
  0x37   : > { %p3003_p0 = scmp.lt.s32.totalorder %s3001_s22, %s2996_s0 }
  0x38   : > { %p2999_p7 = pnand %p2997_p5, %p2938_p8 }
  0x39   : > { %p3004_p2 = por %p3003_p0, %p3002_p13 }
  0x3a   : > { %p3000_p9 = pneg %p2999_p7 }
  0x3c   : > { %p3005_p3 = pnand %p3004_p2, %p3000_p9 }
  0x3e   : > { %3008 = shalt.err (!%p3005_p3)
}
  0x3f   : > { %2853 = dma.hbm_to_vmem [thread:$0]  (!%p3209_p6), %s212_s9, 32, %s214_s6, %s3213_s8  }
  0x40   : > { %s2814_s10 = sshll.u32 %s3198_s24, 4  ;;  %s4416_s12 = sshll.u32 %s3128_s18, 4 }
  0x41   : > { %s229_s23 = scalar_lea.hbm %s4403_s3, %s4416_s12  ;;  %s224_s26 = scalar_lea.vmem [#allocation8], %s2814_s10 }
  0x42   : > { %s231_s25 = sshll.u32 %s229_s23, 4  ;;  %s233_s0 = sshll.u32 %s224_s26, 4  ;;  %s232_s25 = int_to_ptr.hbm [resolvable:$true] %s231_s25  ;;  %s234_s0 = int_to_ptr.vmem [resolvable:$true] %s233_s0 }
  0x43   : > { %s221_s22 = scalar_lea.sflag [#allocation9], %s3198_s24  ;;  %s3024_s28 = sshra.s32 %s232_s25, 4  ;;  %s3025_s28 = int_to_ptr.hbm [resolvable:$true] %s3024_s28 }
  0x44   : > { %s3026_s13 = scalar_lea.hbm %s3025_s28, 16  ;;  %s3031_s9 = scalar_lea.hbm %s4403_s3, 32 }
  0x45   : > { %p3027_p3 = scmp.ne.s32.totalorder %s3025_s28, %s3026_s13  ;;  %p3032_p9 = scmp.lt.s32.totalorder %s3025_s28, %s4403_s3 }
  0x46   : > { %p3033_p13 = scmp.lt.s32.totalorder %s3031_s9, %s3026_s13 }
  0x47   : > { %p3029_p5 = pnand %p3027_p3, %p2938_p8 }
  0x48   : > { %p3034_p0 = por %p3033_p13, %p3032_p9 }
  0x49   : > { %p3030_p7 = pneg %p3029_p5 }
  0x4b   : > { %p3035_p2 = pnand %p3034_p0, %p3030_p7 }
  0x4d   : > { %3038 = shalt.err (!%p3035_p2)
}
  0x4e   : > { %2856 = dma.hbm_to_vmem [thread:$0]  (!%p3209_p6), %s232_s25, 256, %s234_s0, %s221_s22  }
  0x4f   : > { %242 = sbr.rel (%p3259_p1) target bundleno = 779 (0x30b), region = 36 }
  0x54   : > { %3099 = dma.done.wait (%p66_p4), [#allocation3], 4096  }
  0x55   : > { %3101 = vsyncadd (%p66_p4), [#allocation3], 4294963200  ;;  %s249_s24 = sand.u32 1, %s3230_s27   ;;  %s3310_s10 = sand.u32 1, %s3120_s16  }
  0x56   : > { %s2819_s12 = sshll.u32 %s3310_s10, 13  ;;  %s250_s1 = scalar_lea.sflag [#allocation6], %s249_s24 }
  0x57   : > { %s3313_s7 = scalar_lea.vmem [#allocation5], %s2819_s12 }
  0x58   : > { %3103 = dma.done.wait (%p3240_p10), %s250_s1, 131104  }
  0x59   : > { %3105 = vsyncadd (%p3240_p10), %s250_s1, 4294836192  ;;  %s2820_s11 = sshll.u32 %s3310_s10, 1  ;;  %s2821_s14 = sshll.u32 %s3310_s10, 4 }
  0x5a   : > { %s3321_s23 = scalar_lea.vmem [#allocation7], %s2820_s11  ;;  %s270_s25 = scalar_lea.sflag [#allocation9], %s3310_s10 }
  0x5b   : > { %s3326_s26 = scalar_lea.vmem [#allocation8], %s2821_s14 }
  0x5c   : > { %3107 = dma.done.wait (%p3240_p10), %s270_s25, 256  }
  0x5d   : > { %3109 = vsyncadd (%p3240_p10), %s270_s25, 4294967040  ;;  %v375_v0 = vld [vmem:[%s3313_s7 + $0xf0] sm:$0xff]  ;;  %v373_v2 = vld [vmem:[%s3313_s7 + $0xe0] sm:$0xff]  ;;  %s4116_s29 = scalar_lea.vmem [#allocation10], %s2821_s14  ;;  %s2830_s0 = sshll.u32 %s3230_s27, 4 }
  0x5e   : > { %v439_v1 = vld [vmem:[%s3313_s7 + $0x2f0] sm:$0xff]  ;;  %1375 = vmatpush.msra.mxu0 %v375_v0  ;;  %v437_v4 = vld [vmem:[%s3313_s7 + $0x2e0] sm:$0xff]  ;;  %s2675_s13 = scalar_lea.hbm %s4404_s4, %s2830_s0  ;;  %s2677_s8 = sshll.u32 %s4116_s29, 4  ;;  %s2678_s8 = int_to_ptr.vmem [resolvable:$true] %s2677_s8 }
  0x5f   : > { %1415 = vmatpush.msra.mxu2 %v439_v1  ;;  %v407_v3 = vld [vmem:[%s3313_s7 + $0x1f0] sm:$0xff]  ;;  %v405_v7 = vld [vmem:[%s3313_s7 + $0x1e0] sm:$0xff]  ;;  %s2679_s6 = sshll.u32 %s2675_s13, 4  ;;  %s2664_s9 = scalar_lea.sflag [#allocation4], %s3310_s10  ;;  %s2680_s6 = int_to_ptr.hbm [resolvable:$true] %s2679_s6 }
  0x60   : > { %v471_v5 = vld [vmem:[%s3313_s7 + $0x3f0] sm:$0xff]  ;;  %1395 = vmatpush.msra.mxu1 %v407_v3  ;;  %1376 = vmatpush.msra.mxu0 %v373_v2  ;;  %v469_v9 = vld [vmem:[%s3313_s7 + $0x3e0] sm:$0xff]  ;;  %s3068_s27 = sshra.s32 %s2680_s6, 4  ;;  %s3074_s12 = scalar_lea.hbm %s4404_s4, 32  ;;  %s3069_s27 = int_to_ptr.hbm [resolvable:$true] %s3068_s27 }
  0x61   : > { %1435 = vmatpush.msra.mxu3 %v471_v5  ;;  %v371_v6 = vld [vmem:[%s3313_s7 + $0xd0] sm:$0xff]  ;;  %1416 = vmatpush.msra.mxu2 %v437_v4  ;;  %v369_v11 = vld [vmem:[%s3313_s7 + $0xc0] sm:$0xff]  ;;  %s3070_s21 = scalar_lea.hbm %s3069_s27, 16  ;;  %p3075_p10 = scmp.lt.s32.totalorder %s3069_s27, %s4404_s4 }
  0x62   : > { %v435_v8 = vld [vmem:[%s3313_s7 + $0x2d0] sm:$0xff]  ;;  %1396 = vmatpush.msra.mxu1 %v405_v7  ;;  %v433_v12 = vld [vmem:[%s3313_s7 + $0x2c0] sm:$0xff]  ;;  %1377 = vmatpush.msra.mxu0 %v371_v6  ;;  %p3071_p6 = scmp.ne.s32.totalorder %s3069_s27, %s3070_s21  ;;  %p3076_p1 = scmp.lt.s32.totalorder %s3074_s12, %s3070_s21 }
  0x63   : > { %v403_v10 = vld [vmem:[%s3313_s7 + $0x1d0] sm:$0xff]  ;;  %1436 = vmatpush.msra.mxu3 %v469_v9  ;;  %1417 = vmatpush.msra.mxu2 %v435_v8  ;;  %v401_v14 = vld [vmem:[%s3313_s7 + $0x1c0] sm:$0xff] }
  0x64   : > { %v467_v13 = vld [vmem:[%s3313_s7 + $0x3d0] sm:$0xff]  ;;  %v465_v15 = vld [vmem:[%s3313_s7 + $0x3c0] sm:$0xff]  ;;  %1397 = vmatpush.msra.mxu1 %v403_v10  ;;  %1378 = vmatpush.msra.mxu0 %v369_v11  ;;  %p3072_p8 = pnand %p3071_p6, %p3247_p11  ;;  %p3077_p3 = por %p3076_p1, %p3075_p10 }
  0x65   : > { %1437 = vmatpush.msra.mxu3 %v467_v13  ;;  %v367_v16 = vld [vmem:[%s3313_s7 + $0xb0] sm:$0xff]  ;;  %1418 = vmatpush.msra.mxu2 %v433_v12  ;;  %v365_v20 = vld [vmem:[%s3313_s7 + $0xa0] sm:$0xff] }
  0x66   : > { %v431_v17 = vld [vmem:[%s3313_s7 + $0x2b0] sm:$0xff]  ;;  %1398 = vmatpush.msra.mxu1 %v401_v14  ;;  %v429_v21 = vld [vmem:[%s3313_s7 + $0x2a0] sm:$0xff]  ;;  %1379 = vmatpush.msra.mxu0 %v367_v16  ;;  %p3073_p4 = pneg %p3072_p8 }
  0x67   : > { %v399_v18 = vld [vmem:[%s3313_s7 + $0x1b0] sm:$0xff]  ;;  %1438 = vmatpush.msra.mxu3 %v465_v15  ;;  %1419 = vmatpush.msra.mxu2 %v431_v17  ;;  %v397_v22 = vld [vmem:[%s3313_s7 + $0x1a0] sm:$0xff] }
  0x68   : > { %v463_v19 = vld [vmem:[%s3313_s7 + $0x3b0] sm:$0xff]  ;;  %v461_v23 = vld [vmem:[%s3313_s7 + $0x3a0] sm:$0xff]  ;;  %1399 = vmatpush.msra.mxu1 %v399_v18  ;;  %1380 = vmatpush.msra.mxu0 %v365_v20  ;;  %p3078_p5 = pnand %p3077_p3, %p3073_p4 }
  0x69   : > { %1439 = vmatpush.msra.mxu3 %v463_v19  ;;  %v363_v24 = vld [vmem:[%s3313_s7 + $0x90] sm:$0xff]  ;;  %1420 = vmatpush.msra.mxu2 %v429_v21  ;;  %v361_v28 = vld [vmem:[%s3313_s7 + $0x80] sm:$0xff] }
  0x6a   : > { %v427_v25 = vld [vmem:[%s3313_s7 + $0x290] sm:$0xff]  ;;  %1400 = vmatpush.msra.mxu1 %v397_v22  ;;  %v425_v29 = vld [vmem:[%s3313_s7 + $0x280] sm:$0xff]  ;;  %1381 = vmatpush.msra.mxu0 %v363_v24 }
  0x6b   : > { %v395_v26 = vld [vmem:[%s3313_s7 + $0x190] sm:$0xff]  ;;  %1440 = vmatpush.msra.mxu3 %v461_v23  ;;  %1421 = vmatpush.msra.mxu2 %v427_v25  ;;  %v393_v30 = vld [vmem:[%s3313_s7 + $0x180] sm:$0xff] }
  0x6c   : > { %v459_v27 = vld [vmem:[%s3313_s7 + $0x390] sm:$0xff]  ;;  %v457_v31 = vld [vmem:[%s3313_s7 + $0x380] sm:$0xff]  ;;  %1401 = vmatpush.msra.mxu1 %v395_v26  ;;  %1382 = vmatpush.msra.mxu0 %v361_v28 }
  0x6d   : > { %1441 = vmatpush.msra.mxu3 %v459_v27  ;;  %v359_v32 = vld [vmem:[%s3313_s7 + $0x70] sm:$0xff]  ;;  %1422 = vmatpush.msra.mxu2 %v425_v29  ;;  %v357_v36 = vld [vmem:[%s3313_s7 + $0x60] sm:$0xff] }
  0x6e   : > { %v423_v33 = vld [vmem:[%s3313_s7 + $0x270] sm:$0xff]  ;;  %1402 = vmatpush.msra.mxu1 %v393_v30  ;;  %v421_v37 = vld [vmem:[%s3313_s7 + $0x260] sm:$0xff]  ;;  %1383 = vmatpush.msra.mxu0 %v359_v32 }
  0x6f   : > { %v391_v34 = vld [vmem:[%s3313_s7 + $0x170] sm:$0xff]  ;;  %1442 = vmatpush.msra.mxu3 %v457_v31  ;;  %1423 = vmatpush.msra.mxu2 %v423_v33  ;;  %v389_v38 = vld [vmem:[%s3313_s7 + $0x160] sm:$0xff] }
  0x70   : > { %v455_v35 = vld [vmem:[%s3313_s7 + $0x370] sm:$0xff]  ;;  %v453_v39 = vld [vmem:[%s3313_s7 + $0x360] sm:$0xff]  ;;  %1403 = vmatpush.msra.mxu1 %v391_v34  ;;  %1384 = vmatpush.msra.mxu0 %v357_v36 }
  0x71   : > { %1443 = vmatpush.msra.mxu3 %v455_v35  ;;  %v355_v40 = vld [vmem:[%s3313_s7 + $0x50] sm:$0xff]  ;;  %1424 = vmatpush.msra.mxu2 %v421_v37  ;;  %v353_v44 = vld [vmem:[%s3313_s7 + $0x40] sm:$0xff] }
  0x72   : > { %v419_v41 = vld [vmem:[%s3313_s7 + $0x250] sm:$0xff]  ;;  %1404 = vmatpush.msra.mxu1 %v389_v38  ;;  %v417_v45 = vld [vmem:[%s3313_s7 + $0x240] sm:$0xff]  ;;  %1385 = vmatpush.msra.mxu0 %v355_v40 }
  0x73   : > { %v387_v42 = vld [vmem:[%s3313_s7 + $0x150] sm:$0xff]  ;;  %1444 = vmatpush.msra.mxu3 %v453_v39  ;;  %1425 = vmatpush.msra.mxu2 %v419_v41  ;;  %v385_v46 = vld [vmem:[%s3313_s7 + $0x140] sm:$0xff] }
  0x74   : > { %v451_v43 = vld [vmem:[%s3313_s7 + $0x350] sm:$0xff]  ;;  %v449_v47 = vld [vmem:[%s3313_s7 + $0x340] sm:$0xff]  ;;  %1405 = vmatpush.msra.mxu1 %v387_v42  ;;  %1386 = vmatpush.msra.mxu0 %v353_v44 }
  0x75   : > { %1445 = vmatpush.msra.mxu3 %v451_v43  ;;  %v351_v48 = vld [vmem:[%s3313_s7 + $0x30] sm:$0xff]  ;;  %1426 = vmatpush.msra.mxu2 %v417_v45  ;;  %v349_v52 = vld [vmem:[%s3313_s7 + $0x20] sm:$0xff] }
  0x76   : > { %v415_v49 = vld [vmem:[%s3313_s7 + $0x230] sm:$0xff]  ;;  %1406 = vmatpush.msra.mxu1 %v385_v46  ;;  %v413_v53 = vld [vmem:[%s3313_s7 + $0x220] sm:$0xff]  ;;  %1387 = vmatpush.msra.mxu0 %v351_v48 }
  0x77   : > { %v383_v50 = vld [vmem:[%s3313_s7 + $0x130] sm:$0xff]  ;;  %1446 = vmatpush.msra.mxu3 %v449_v47  ;;  %1427 = vmatpush.msra.mxu2 %v415_v49  ;;  %v381_v54 = vld [vmem:[%s3313_s7 + $0x120] sm:$0xff] }
  0x78   : > { %v447_v51 = vld [vmem:[%s3313_s7 + $0x330] sm:$0xff]  ;;  %v445_v55 = vld [vmem:[%s3313_s7 + $0x320] sm:$0xff]  ;;  %1407 = vmatpush.msra.mxu1 %v383_v50  ;;  %1388 = vmatpush.msra.mxu0 %v349_v52 }
  0x79   : > { %1447 = vmatpush.msra.mxu3 %v447_v51  ;;  %v347_v56 = vld [vmem:[%s3313_s7 + $0x10] sm:$0xff]  ;;  %1428 = vmatpush.msra.mxu2 %v413_v53  ;;  %v345_v60 = vld [vmem:[%s3313_s7] sm:$0xff] }
  0x7a   : > { %v411_v57 = vld [vmem:[%s3313_s7 + $0x210] sm:$0xff]  ;;  %1408 = vmatpush.msra.mxu1 %v381_v54  ;;  %v409_v61 = vld [vmem:[%s3313_s7 + $0x200] sm:$0xff]  ;;  %1389 = vmatpush.msra.mxu0 %v347_v56 }
  0x7b   : > { %v379_v58 = vld [vmem:[%s3313_s7 + $0x110] sm:$0xff]  ;;  %1448 = vmatpush.msra.mxu3 %v445_v55  ;;  %1429 = vmatpush.msra.mxu2 %v411_v57  ;;  %v377_v0 = vld [vmem:[%s3313_s7 + $0x100] sm:$0xff] }
  0x7c   : > { %v443_v59 = vld [vmem:[%s3313_s7 + $0x310] sm:$0xff]  ;;  %1409 = vmatpush.msra.mxu1 %v379_v58  ;;  %v441_v1 = vld [vmem:[%s3313_s7 + $0x300] sm:$0xff]  ;;  %1390 = vmatpush.msra.mxu0 %v345_v60 }
  0x7d   : > { %v503_v62 = vld [vmem:[%s3313_s7 + $0x4f0] sm:$0xff]  ;;  %1449 = vmatpush.msra.mxu3 %v443_v59  ;;  %1430 = vmatpush.msra.mxu2 %v409_v61  ;;  %v501_v2 = vld [vmem:[%s3313_s7 + $0x4e0] sm:$0xff] }
  0x7e   : > { %v567_v63 = vld [vmem:[%s3313_s7 + $0x6f0] sm:$0xff]  ;;  %1455 = vmatpush.msrb.mxu0 %v503_v62  ;;  %v565_v4 = vld [vmem:[%s3313_s7 + $0x6e0] sm:$0xff]  ;;  %1410 = vmatpush.msra.mxu1 %v377_v0 }
  0x7f   : > { %v535_v3 = vld [vmem:[%s3313_s7 + $0x5f0] sm:$0xff]  ;;  %1495 = vmatpush.msrb.mxu2 %v567_v63  ;;  %1450 = vmatpush.msra.mxu3 %v441_v1  ;;  %v533_v7 = vld [vmem:[%s3313_s7 + $0x5e0] sm:$0xff] }
  0x80   : > { %v599_v5 = vld [vmem:[%s3313_s7 + $0x7f0] sm:$0xff]  ;;  %1456 = vmatpush.msrb.mxu0 %v501_v2  ;;  %1475 = vmatpush.msrb.mxu1 %v535_v3  ;;  %v597_v9 = vld [vmem:[%s3313_s7 + $0x7e0] sm:$0xff] }
  0x81   : > { %v499_v6 = vld [vmem:[%s3313_s7 + $0x4d0] sm:$0xff]  ;;  %1496 = vmatpush.msrb.mxu2 %v565_v4  ;;  %1515 = vmatpush.msrb.mxu3 %v599_v5  ;;  %v497_v10 = vld [vmem:[%s3313_s7 + $0x4c0] sm:$0xff]  ;;  %v314_v4 = vld [vmem:[#allocation2 + $0x8] sm:$0xff] }
  0x82   : > { %v563_v8 = vld [vmem:[%s3313_s7 + $0x6d0] sm:$0xff]  ;;  %1457 = vmatpush.msrb.mxu0 %v499_v6  ;;  %1476 = vmatpush.msrb.mxu1 %v533_v7  ;;  %v561_v12 = vld [vmem:[%s3313_s7 + $0x6c0] sm:$0xff]  ;;  %v316_v5 = vld [vmem:[#allocation2 + $0x18] sm:$0xff] }
  0x83   : > { %v531_v11 = vld [vmem:[%s3313_s7 + $0x5d0] sm:$0xff]  ;;  %1497 = vmatpush.msrb.mxu2 %v563_v8  ;;  %1516 = vmatpush.msrb.mxu3 %v597_v9  ;;  %v529_v15 = vld [vmem:[%s3313_s7 + $0x5c0] sm:$0xff] }
  0x84   : > { %v595_v13 = vld [vmem:[%s3313_s7 + $0x7d0] sm:$0xff]  ;;  %1458 = vmatpush.msrb.mxu0 %v497_v10  ;;  %1477 = vmatpush.msrb.mxu1 %v531_v11  ;;  %v593_v17 = vld [vmem:[%s3313_s7 + $0x7c0] sm:$0xff] }
  0x85   : > { %v495_v14 = vld [vmem:[%s3313_s7 + $0x4b0] sm:$0xff]  ;;  %1498 = vmatpush.msrb.mxu2 %v561_v12  ;;  %1517 = vmatpush.msrb.mxu3 %v595_v13  ;;  %v493_v18 = vld [vmem:[%s3313_s7 + $0x4a0] sm:$0xff] }
  0x86   : > { %v559_v16 = vld [vmem:[%s3313_s7 + $0x6b0] sm:$0xff]  ;;  %1459 = vmatpush.msrb.mxu0 %v495_v14  ;;  %1478 = vmatpush.msrb.mxu1 %v529_v15  ;;  %v557_v20 = vld [vmem:[%s3313_s7 + $0x6a0] sm:$0xff] }
  0x87   : > { %v527_v19 = vld [vmem:[%s3313_s7 + $0x5b0] sm:$0xff]  ;;  %1499 = vmatpush.msrb.mxu2 %v559_v16  ;;  %1518 = vmatpush.msrb.mxu3 %v593_v17  ;;  %v525_v23 = vld [vmem:[%s3313_s7 + $0x5a0] sm:$0xff] }
  0x88   : > { %v591_v21 = vld [vmem:[%s3313_s7 + $0x7b0] sm:$0xff]  ;;  %1460 = vmatpush.msrb.mxu0 %v493_v18  ;;  %1479 = vmatpush.msrb.mxu1 %v527_v19  ;;  %v589_v25 = vld [vmem:[%s3313_s7 + $0x7a0] sm:$0xff] }
  0x89   : > { %v491_v22 = vld [vmem:[%s3313_s7 + $0x490] sm:$0xff]  ;;  %1500 = vmatpush.msrb.mxu2 %v557_v20  ;;  %1519 = vmatpush.msrb.mxu3 %v591_v21  ;;  %v489_v26 = vld [vmem:[%s3313_s7 + $0x480] sm:$0xff] }
  0x8a   : > { %v555_v24 = vld [vmem:[%s3313_s7 + $0x690] sm:$0xff]  ;;  %1461 = vmatpush.msrb.mxu0 %v491_v22  ;;  %1480 = vmatpush.msrb.mxu1 %v525_v23  ;;  %v553_v28 = vld [vmem:[%s3313_s7 + $0x680] sm:$0xff] }
  0x8b   : > { %v523_v27 = vld [vmem:[%s3313_s7 + $0x590] sm:$0xff]  ;;  %1501 = vmatpush.msrb.mxu2 %v555_v24  ;;  %1520 = vmatpush.msrb.mxu3 %v589_v25  ;;  %v521_v31 = vld [vmem:[%s3313_s7 + $0x580] sm:$0xff]  ;;  %v320_v24 = vld [vmem:[#allocation2 + $0x38] sm:$0xff] }
  0x8c   : > { %v587_v29 = vld [vmem:[%s3313_s7 + $0x790] sm:$0xff]  ;;  %1462 = vmatpush.msrb.mxu0 %v489_v26  ;;  %1481 = vmatpush.msrb.mxu1 %v523_v27  ;;  %v585_v33 = vld [vmem:[%s3313_s7 + $0x780] sm:$0xff] }
  0x8d   : > { %v487_v30 = vld [vmem:[%s3313_s7 + $0x470] sm:$0xff]  ;;  %1502 = vmatpush.msrb.mxu2 %v553_v28  ;;  %1521 = vmatpush.msrb.mxu3 %v587_v29  ;;  %v485_v34 = vld [vmem:[%s3313_s7 + $0x460] sm:$0xff]  ;;  %v318_v29 = vld [vmem:[#allocation2 + $0x28] sm:$0xff] }
  0x8e   : > { %v551_v32 = vld [vmem:[%s3313_s7 + $0x670] sm:$0xff]  ;;  %1463 = vmatpush.msrb.mxu0 %v487_v30  ;;  %1482 = vmatpush.msrb.mxu1 %v521_v31  ;;  %v549_v36 = vld [vmem:[%s3313_s7 + $0x660] sm:$0xff] }
  0x8f   : > { %v519_v35 = vld [vmem:[%s3313_s7 + $0x570] sm:$0xff]  ;;  %1503 = vmatpush.msrb.mxu2 %v551_v32  ;;  %1522 = vmatpush.msrb.mxu3 %v585_v33  ;;  %v517_v39 = vld [vmem:[%s3313_s7 + $0x560] sm:$0xff] }
  0x90   : > { %v583_v37 = vld [vmem:[%s3313_s7 + $0x770] sm:$0xff]  ;;  %1464 = vmatpush.msrb.mxu0 %v485_v34  ;;  %1483 = vmatpush.msrb.mxu1 %v519_v35  ;;  %v581_v41 = vld [vmem:[%s3313_s7 + $0x760] sm:$0xff] }
  0x91   : > { %v483_v38 = vld [vmem:[%s3313_s7 + $0x450] sm:$0xff]  ;;  %1504 = vmatpush.msrb.mxu2 %v549_v36  ;;  %1523 = vmatpush.msrb.mxu3 %v583_v37  ;;  %v481_v42 = vld [vmem:[%s3313_s7 + $0x440] sm:$0xff] }
  0x92   : > { %v547_v40 = vld [vmem:[%s3313_s7 + $0x650] sm:$0xff]  ;;  %1465 = vmatpush.msrb.mxu0 %v483_v38  ;;  %1484 = vmatpush.msrb.mxu1 %v517_v39  ;;  %v545_v44 = vld [vmem:[%s3313_s7 + $0x640] sm:$0xff] }
  0x93   : > { %v515_v43 = vld [vmem:[%s3313_s7 + $0x550] sm:$0xff]  ;;  %1505 = vmatpush.msrb.mxu2 %v547_v40  ;;  %1524 = vmatpush.msrb.mxu3 %v581_v41  ;;  %v513_v47 = vld [vmem:[%s3313_s7 + $0x540] sm:$0xff] }
  0x94   : > { %v579_v45 = vld [vmem:[%s3313_s7 + $0x750] sm:$0xff]  ;;  %1466 = vmatpush.msrb.mxu0 %v481_v42  ;;  %1485 = vmatpush.msrb.mxu1 %v515_v43  ;;  %v577_v49 = vld [vmem:[%s3313_s7 + $0x740] sm:$0xff] }
  0x95   : > { %v479_v46 = vld [vmem:[%s3313_s7 + $0x430] sm:$0xff]  ;;  %1506 = vmatpush.msrb.mxu2 %v545_v44  ;;  %1525 = vmatpush.msrb.mxu3 %v579_v45  ;;  %v477_v50 = vld [vmem:[%s3313_s7 + $0x420] sm:$0xff] }
  0x96   : > { %v543_v48 = vld [vmem:[%s3313_s7 + $0x630] sm:$0xff]  ;;  %1467 = vmatpush.msrb.mxu0 %v479_v46  ;;  %1486 = vmatpush.msrb.mxu1 %v513_v47  ;;  %v541_v52 = vld [vmem:[%s3313_s7 + $0x620] sm:$0xff] }
  0x97   : > { %v511_v51 = vld [vmem:[%s3313_s7 + $0x530] sm:$0xff]  ;;  %1507 = vmatpush.msrb.mxu2 %v543_v48  ;;  %1526 = vmatpush.msrb.mxu3 %v577_v49  ;;  %v509_v55 = vld [vmem:[%s3313_s7 + $0x520] sm:$0xff] }
  0x98   : > { %v575_v53 = vld [vmem:[%s3313_s7 + $0x730] sm:$0xff]  ;;  %1468 = vmatpush.msrb.mxu0 %v477_v50  ;;  %1487 = vmatpush.msrb.mxu1 %v511_v51  ;;  %v573_v57 = vld [vmem:[%s3313_s7 + $0x720] sm:$0xff] }
  0x99   : > { %v475_v54 = vld [vmem:[%s3313_s7 + $0x410] sm:$0xff]  ;;  %1508 = vmatpush.msrb.mxu2 %v541_v52  ;;  %1527 = vmatpush.msrb.mxu3 %v575_v53  ;;  %v473_v58 = vld [vmem:[%s3313_s7 + $0x400] sm:$0xff] }
  0x9a   : > { %v539_v56 = vld [vmem:[%s3313_s7 + $0x610] sm:$0xff]  ;;  %1469 = vmatpush.msrb.mxu0 %v475_v54  ;;  %1488 = vmatpush.msrb.mxu1 %v509_v55  ;;  %v537_v60 = vld [vmem:[%s3313_s7 + $0x600] sm:$0xff] }
  0x9b   : > { %v507_v59 = vld [vmem:[%s3313_s7 + $0x510] sm:$0xff]  ;;  %1509 = vmatpush.msrb.mxu2 %v539_v56  ;;  %1528 = vmatpush.msrb.mxu3 %v573_v57  ;;  %v313_v62 = vld [vmem:[#allocation2] sm:$0xff] }
  0x9c   : > { %v571_v61 = vld [vmem:[%s3313_s7 + $0x710] sm:$0xff]  ;;  %1470 = vmatpush.msrb.mxu0 %v473_v58  ;;  %1489 = vmatpush.msrb.mxu1 %v507_v59  ;;  %v505_v2 = vld [vmem:[%s3313_s7 + $0x500] sm:$0xff] }
  0x9d   : > { %v315_v63 = vld [vmem:[#allocation2 + $0x10] sm:$0xff]  ;;  %1510 = vmatpush.msrb.mxu2 %v537_v60  ;;  %1529 = vmatpush.msrb.mxu3 %v571_v61  ;;  %v569_v3 = vld [vmem:[%s3313_s7 + $0x700] sm:$0xff] }
  0x9e   : > { %v631_v0 = vld [vmem:[%s3313_s7 + $0x8f0] sm:$0xff]  ;;  %1391 = vmatmul.f32.vlgmr.msra.gmra.mxu0 %v313_v62  ;;  %1431 = vmatmul.f32.vlgmr.msra.gmra.mxu2 %v315_v63  ;;  %v629_v6 = vld [vmem:[%s3313_s7 + $0x8e0] sm:$0xff] }
  0x9f   : > { %v695_v1 = vld [vmem:[%s3313_s7 + $0xaf0] sm:$0xff]  ;;  %1535 = vmatpush.msra.mxu0 %v631_v0  ;;  %1490 = vmatpush.msrb.mxu1 %v505_v2  ;;  %v693_v8 = vld [vmem:[%s3313_s7 + $0xae0] sm:$0xff] }
  0xa0   : > { %1575 = vmatpush.msra.mxu2 %v695_v1  ;;  %v663_v7 = vld [vmem:[%s3313_s7 + $0x9f0] sm:$0xff]  ;;  %1530 = vmatpush.msrb.mxu3 %v569_v3  ;;  %v661_v11 = vld [vmem:[%s3313_s7 + $0x9e0] sm:$0xff] }
  0xa1   : > { %v727_v9 = vld [vmem:[%s3313_s7 + $0xbf0] sm:$0xff]  ;;  %1411 = vmatmul.f32.vlgmr.msra.gmra.mxu1 %v314_v4  ;;  %1451 = vmatmul.f32.vlgmr.msra.gmra.mxu3 %v316_v5  ;;  %v725_v13 = vld [vmem:[%s3313_s7 + $0xbe0] sm:$0xff] }
  0xa2   : > { %v627_v10 = vld [vmem:[%s3313_s7 + $0x8d0] sm:$0xff]  ;;  %1536 = vmatpush.msra.mxu0 %v629_v6  ;;  %1555 = vmatpush.msra.mxu1 %v663_v7  ;;  %v625_v14 = vld [vmem:[%s3313_s7 + $0x8c0] sm:$0xff] }
  0xa3   : > { %v691_v12 = vld [vmem:[%s3313_s7 + $0xad0] sm:$0xff]  ;;  %1576 = vmatpush.msra.mxu2 %v693_v8  ;;  %1595 = vmatpush.msra.mxu3 %v727_v9  ;;  %v689_v16 = vld [vmem:[%s3313_s7 + $0xac0] sm:$0xff] }
  0xa4   : > { %v659_v15 = vld [vmem:[%s3313_s7 + $0x9d0] sm:$0xff]  ;;  %1537 = vmatpush.msra.mxu0 %v627_v10  ;;  %1556 = vmatpush.msra.mxu1 %v661_v11  ;;  %v657_v20 = vld [vmem:[%s3313_s7 + $0x9c0] sm:$0xff] }
  0xa5   : > { %v723_v17 = vld [vmem:[%s3313_s7 + $0xbd0] sm:$0xff]  ;;  %1577 = vmatpush.msra.mxu2 %v691_v12  ;;  %1596 = vmatpush.msra.mxu3 %v725_v13  ;;  %v721_v22 = vld [vmem:[%s3313_s7 + $0xbc0] sm:$0xff]  ;;  %v322_v12 = vld [vmem:[#allocation2 + $0x48] sm:$0xff] }
  0xa6   : > { %v319_v18 = vld [vmem:[#allocation2 + $0x30] sm:$0xff]  ;;  %1538 = vmatpush.msra.mxu0 %v625_v14  ;;  %1557 = vmatpush.msra.mxu1 %v659_v15  ;;  %v317_v23 = vld [vmem:[#allocation2 + $0x20] sm:$0xff]  ;;  %v324_v13 = vld [vmem:[#allocation2 + $0x58] sm:$0xff] }
  0xa7   : > { %v623_v19 = vld [vmem:[%s3313_s7 + $0x8b0] sm:$0xff]  ;;  %1578 = vmatpush.msra.mxu2 %v689_v16  ;;  %1597 = vmatpush.msra.mxu3 %v723_v17  ;;  %v621_v25 = vld [vmem:[%s3313_s7 + $0x8a0] sm:$0xff] }
  0xa8   : > { %v687_v21 = vld [vmem:[%s3313_s7 + $0xab0] sm:$0xff]  ;;  %1511 = vmatmul.f32.vlgmr.msrb.gmra.mxu2 %v319_v18  ;;  %1539 = vmatpush.msra.mxu0 %v623_v19  ;;  %v685_v27 = vld [vmem:[%s3313_s7 + $0xaa0] sm:$0xff] }
  0xa9   : > { %1558 = vmatpush.msra.mxu1 %v657_v20  ;;  %1579 = vmatpush.msra.mxu2 %v687_v21  ;;  %v655_v26 = vld [vmem:[%s3313_s7 + $0x9b0] sm:$0xff]  ;;  %v653_v31 = vld [vmem:[%s3313_s7 + $0x9a0] sm:$0xff] }
  0xaa   : > { %1598 = vmatpush.msra.mxu3 %v721_v22  ;;  %1471 = vmatmul.f32.vlgmr.msrb.gmra.mxu0 %v317_v23  ;;  %v719_v28 = vld [vmem:[%s3313_s7 + $0xbb0] sm:$0xff]  ;;  %v717_v33 = vld [vmem:[%s3313_s7 + $0xba0] sm:$0xff] }
  0xab   : > { %1531 = vmatmul.f32.vlgmr.msrb.gmra.mxu3 %v320_v24  ;;  %1540 = vmatpush.msra.mxu0 %v621_v25  ;;  %v619_v30 = vld [vmem:[%s3313_s7 + $0x890] sm:$0xff]  ;;  %v617_v34 = vld [vmem:[%s3313_s7 + $0x880] sm:$0xff] }
  0xac   : > { %1559 = vmatpush.msra.mxu1 %v655_v26  ;;  %1580 = vmatpush.msra.mxu2 %v685_v27  ;;  %v683_v32 = vld [vmem:[%s3313_s7 + $0xa90] sm:$0xff]  ;;  %v681_v36 = vld [vmem:[%s3313_s7 + $0xa80] sm:$0xff] }
  0xad   : > { %1599 = vmatpush.msra.mxu3 %v719_v28  ;;  %1491 = vmatmul.f32.vlgmr.msrb.gmra.mxu1 %v318_v29  ;;  %v651_v35 = vld [vmem:[%s3313_s7 + $0x990] sm:$0xff]  ;;  %v649_v39 = vld [vmem:[%s3313_s7 + $0x980] sm:$0xff] }
  0xae   : > { %1541 = vmatpush.msra.mxu0 %v619_v30  ;;  %1560 = vmatpush.msra.mxu1 %v653_v31  ;;  %v715_v37 = vld [vmem:[%s3313_s7 + $0xb90] sm:$0xff]  ;;  %v713_v41 = vld [vmem:[%s3313_s7 + $0xb80] sm:$0xff] }
  0xaf   : > { %1581 = vmatpush.msra.mxu2 %v683_v32  ;;  %1600 = vmatpush.msra.mxu3 %v717_v33  ;;  %v615_v38 = vld [vmem:[%s3313_s7 + $0x870] sm:$0xff]  ;;  %v613_v42 = vld [vmem:[%s3313_s7 + $0x860] sm:$0xff] }
  0xb0   : > { %1542 = vmatpush.msra.mxu0 %v617_v34  ;;  %1561 = vmatpush.msra.mxu1 %v651_v35  ;;  %v679_v40 = vld [vmem:[%s3313_s7 + $0xa70] sm:$0xff]  ;;  %v677_v44 = vld [vmem:[%s3313_s7 + $0xa60] sm:$0xff] }
  0xb1   : > { %1582 = vmatpush.msra.mxu2 %v681_v36  ;;  %1601 = vmatpush.msra.mxu3 %v715_v37  ;;  %v647_v43 = vld [vmem:[%s3313_s7 + $0x970] sm:$0xff]  ;;  %v645_v47 = vld [vmem:[%s3313_s7 + $0x960] sm:$0xff] }
  0xb2   : > { %1543 = vmatpush.msra.mxu0 %v615_v38  ;;  %1562 = vmatpush.msra.mxu1 %v649_v39  ;;  %v711_v45 = vld [vmem:[%s3313_s7 + $0xb70] sm:$0xff]  ;;  %v709_v49 = vld [vmem:[%s3313_s7 + $0xb60] sm:$0xff] }
  0xb3   : > { %1583 = vmatpush.msra.mxu2 %v679_v40  ;;  %1602 = vmatpush.msra.mxu3 %v713_v41  ;;  %v611_v46 = vld [vmem:[%s3313_s7 + $0x850] sm:$0xff]  ;;  %v609_v50 = vld [vmem:[%s3313_s7 + $0x840] sm:$0xff] }
  0xb4   : > { %1544 = vmatpush.msra.mxu0 %v613_v42  ;;  %1563 = vmatpush.msra.mxu1 %v647_v43  ;;  %v675_v48 = vld [vmem:[%s3313_s7 + $0xa50] sm:$0xff]  ;;  %v673_v52 = vld [vmem:[%s3313_s7 + $0xa40] sm:$0xff] }
  0xb5   : > { %1584 = vmatpush.msra.mxu2 %v677_v44  ;;  %1603 = vmatpush.msra.mxu3 %v711_v45  ;;  %v643_v51 = vld [vmem:[%s3313_s7 + $0x950] sm:$0xff]  ;;  %v641_v55 = vld [vmem:[%s3313_s7 + $0x940] sm:$0xff] }
  0xb6   : > { %1545 = vmatpush.msra.mxu0 %v611_v46  ;;  %1564 = vmatpush.msra.mxu1 %v645_v47  ;;  %v707_v53 = vld [vmem:[%s3313_s7 + $0xb50] sm:$0xff]  ;;  %v705_v57 = vld [vmem:[%s3313_s7 + $0xb40] sm:$0xff] }
  0xb7   : > { %1585 = vmatpush.msra.mxu2 %v675_v48  ;;  %1604 = vmatpush.msra.mxu3 %v709_v49  ;;  %v607_v54 = vld [vmem:[%s3313_s7 + $0x830] sm:$0xff]  ;;  %v605_v58 = vld [vmem:[%s3313_s7 + $0x820] sm:$0xff] }
  0xb8   : > { %1546 = vmatpush.msra.mxu0 %v609_v50  ;;  %1565 = vmatpush.msra.mxu1 %v643_v51  ;;  %v671_v56 = vld [vmem:[%s3313_s7 + $0xa30] sm:$0xff]  ;;  %v669_v60 = vld [vmem:[%s3313_s7 + $0xa20] sm:$0xff] }
  0xb9   : > { %1586 = vmatpush.msra.mxu2 %v673_v52  ;;  %1605 = vmatpush.msra.mxu3 %v707_v53  ;;  %v639_v59 = vld [vmem:[%s3313_s7 + $0x930] sm:$0xff]  ;;  %v637_v63 = vld [vmem:[%s3313_s7 + $0x920] sm:$0xff] }
  0xba   : > { %1547 = vmatpush.msra.mxu0 %v607_v54  ;;  %1566 = vmatpush.msra.mxu1 %v641_v55  ;;  %v703_v61 = vld [vmem:[%s3313_s7 + $0xb30] sm:$0xff]  ;;  %v701_v1 = vld [vmem:[%s3313_s7 + $0xb20] sm:$0xff] }
  0xbb   : > { %1587 = vmatpush.msra.mxu2 %v671_v56  ;;  %1606 = vmatpush.msra.mxu3 %v705_v57  ;;  %v603_v62 = vld [vmem:[%s3313_s7 + $0x810] sm:$0xff]  ;;  %v601_v2 = vld [vmem:[%s3313_s7 + $0x800] sm:$0xff] }
  0xbc   : > { %1548 = vmatpush.msra.mxu0 %v605_v58  ;;  %1567 = vmatpush.msra.mxu1 %v639_v59  ;;  %v667_v0 = vld [vmem:[%s3313_s7 + $0xa10] sm:$0xff]  ;;  %v665_v4 = vld [vmem:[%s3313_s7 + $0xa00] sm:$0xff] }
  0xbd   : > { %1588 = vmatpush.msra.mxu2 %v669_v60  ;;  %1607 = vmatpush.msra.mxu3 %v703_v61  ;;  %v635_v3 = vld [vmem:[%s3313_s7 + $0x910] sm:$0xff]  ;;  %v321_v6 = vld [vmem:[#allocation2 + $0x40] sm:$0xff] }
  0xbe   : > { %1549 = vmatpush.msra.mxu0 %v603_v62  ;;  %1568 = vmatpush.msra.mxu1 %v637_v63  ;;  %v699_v5 = vld [vmem:[%s3313_s7 + $0xb10] sm:$0xff]  ;;  %v633_v10 = vld [vmem:[%s3313_s7 + $0x900] sm:$0xff] }
  0xbf   : > { %1589 = vmatpush.msra.mxu2 %v667_v0  ;;  %1608 = vmatpush.msra.mxu3 %v701_v1  ;;  %v323_v7 = vld [vmem:[#allocation2 + $0x50] sm:$0xff]  ;;  %v697_v11 = vld [vmem:[%s3313_s7 + $0xb00] sm:$0xff] }
  0xc0   : > { %1550 = vmatpush.msra.mxu0 %v601_v2  ;;  %1569 = vmatpush.msra.mxu1 %v635_v3  ;;  %v759_v8 = vld [vmem:[%s3313_s7 + $0xcf0] sm:$0xff]  ;;  %v757_v14 = vld [vmem:[%s3313_s7 + $0xce0] sm:$0xff] }
  0xc1   : > { %v823_v9 = vld [vmem:[%s3313_s7 + $0xef0] sm:$0xff]  ;;  %1590 = vmatpush.msra.mxu2 %v665_v4  ;;  %1609 = vmatpush.msra.mxu3 %v699_v5  ;;  %v821_v16 = vld [vmem:[%s3313_s7 + $0xee0] sm:$0xff] }
  0xc2   : > { %1551 = vmatmul.f32.vlgmr.msra.gmra.mxu0 %v321_v6  ;;  %1591 = vmatmul.f32.vlgmr.msra.gmra.mxu2 %v323_v7  ;;  %v791_v15 = vld [vmem:[%s3313_s7 + $0xdf0] sm:$0xff]  ;;  %v789_v19 = vld [vmem:[%s3313_s7 + $0xde0] sm:$0xff] }
  0xc3   : > { %1615 = vmatpush.msrb.mxu0 %v759_v8  ;;  %1655 = vmatpush.msrb.mxu2 %v823_v9  ;;  %v855_v17 = vld [vmem:[%s3313_s7 + $0xff0] sm:$0xff]  ;;  %v853_v21 = vld [vmem:[%s3313_s7 + $0xfe0] sm:$0xff] }
  0xc4   : > { %1570 = vmatpush.msra.mxu1 %v633_v10  ;;  %1610 = vmatpush.msra.mxu3 %v697_v11  ;;  %v755_v18 = vld [vmem:[%s3313_s7 + $0xcd0] sm:$0xff]  ;;  %v753_v22 = vld [vmem:[%s3313_s7 + $0xcc0] sm:$0xff] }
  0xc5   : > { %1571 = vmatmul.f32.vlgmr.msra.gmra.mxu1 %v322_v12  ;;  %1611 = vmatmul.f32.vlgmr.msra.gmra.mxu3 %v324_v13  ;;  %v819_v20 = vld [vmem:[%s3313_s7 + $0xed0] sm:$0xff]  ;;  %v817_v24 = vld [vmem:[%s3313_s7 + $0xec0] sm:$0xff] }
  0xc6   : > { %1616 = vmatpush.msrb.mxu0 %v757_v14  ;;  %1635 = vmatpush.msrb.mxu1 %v791_v15  ;;  %v787_v23 = vld [vmem:[%s3313_s7 + $0xdd0] sm:$0xff]  ;;  %v785_v27 = vld [vmem:[%s3313_s7 + $0xdc0] sm:$0xff] }
  0xc7   : > { %1656 = vmatpush.msrb.mxu2 %v821_v16  ;;  %1675 = vmatpush.msrb.mxu3 %v855_v17  ;;  %v851_v25 = vld [vmem:[%s3313_s7 + $0xfd0] sm:$0xff]  ;;  %v849_v29 = vld [vmem:[%s3313_s7 + $0xfc0] sm:$0xff]  ;;  %v326_v16 = vld [vmem:[#allocation2 + $0x68] sm:$0xff] }
  0xc8   : > { %1617 = vmatpush.msrb.mxu0 %v755_v18  ;;  %1636 = vmatpush.msrb.mxu1 %v789_v19  ;;  %v751_v26 = vld [vmem:[%s3313_s7 + $0xcb0] sm:$0xff]  ;;  %v749_v30 = vld [vmem:[%s3313_s7 + $0xca0] sm:$0xff]  ;;  %v328_v17 = vld [vmem:[#allocation2 + $0x78] sm:$0xff] }
  0xc9   : > { %1657 = vmatpush.msrb.mxu2 %v819_v20  ;;  %1676 = vmatpush.msrb.mxu3 %v853_v21  ;;  %v815_v28 = vld [vmem:[%s3313_s7 + $0xeb0] sm:$0xff]  ;;  %v813_v32 = vld [vmem:[%s3313_s7 + $0xea0] sm:$0xff] }
  0xca   : > { %1618 = vmatpush.msrb.mxu0 %v753_v22  ;;  %1637 = vmatpush.msrb.mxu1 %v787_v23  ;;  %v783_v31 = vld [vmem:[%s3313_s7 + $0xdb0] sm:$0xff]  ;;  %v781_v35 = vld [vmem:[%s3313_s7 + $0xda0] sm:$0xff] }
  0xcb   : > { %1658 = vmatpush.msrb.mxu2 %v817_v24  ;;  %1677 = vmatpush.msrb.mxu3 %v851_v25  ;;  %v847_v33 = vld [vmem:[%s3313_s7 + $0xfb0] sm:$0xff]  ;;  %v845_v37 = vld [vmem:[%s3313_s7 + $0xfa0] sm:$0xff] }
  0xcc   : > { %1619 = vmatpush.msrb.mxu0 %v751_v26  ;;  %1638 = vmatpush.msrb.mxu1 %v785_v27  ;;  %v747_v34 = vld [vmem:[%s3313_s7 + $0xc90] sm:$0xff]  ;;  %v745_v38 = vld [vmem:[%s3313_s7 + $0xc80] sm:$0xff] }
  0xcd   : > { %1659 = vmatpush.msrb.mxu2 %v815_v28  ;;  %1678 = vmatpush.msrb.mxu3 %v849_v29  ;;  %v811_v36 = vld [vmem:[%s3313_s7 + $0xe90] sm:$0xff]  ;;  %v809_v40 = vld [vmem:[%s3313_s7 + $0xe80] sm:$0xff] }
  0xce   : > { %1620 = vmatpush.msrb.mxu0 %v749_v30  ;;  %1639 = vmatpush.msrb.mxu1 %v783_v31  ;;  %v779_v39 = vld [vmem:[%s3313_s7 + $0xd90] sm:$0xff]  ;;  %v777_v43 = vld [vmem:[%s3313_s7 + $0xd80] sm:$0xff] }
  0xcf   : > { %1660 = vmatpush.msrb.mxu2 %v813_v32  ;;  %1679 = vmatpush.msrb.mxu3 %v847_v33  ;;  %v843_v41 = vld [vmem:[%s3313_s7 + $0xf90] sm:$0xff]  ;;  %v841_v45 = vld [vmem:[%s3313_s7 + $0xf80] sm:$0xff] }
  0xd0   : > { %1621 = vmatpush.msrb.mxu0 %v747_v34  ;;  %1640 = vmatpush.msrb.mxu1 %v781_v35  ;;  %v743_v42 = vld [vmem:[%s3313_s7 + $0xc70] sm:$0xff]  ;;  %v741_v46 = vld [vmem:[%s3313_s7 + $0xc60] sm:$0xff] }
  0xd1   : > { %1661 = vmatpush.msrb.mxu2 %v811_v36  ;;  %1680 = vmatpush.msrb.mxu3 %v845_v37  ;;  %v807_v44 = vld [vmem:[%s3313_s7 + $0xe70] sm:$0xff]  ;;  %v805_v48 = vld [vmem:[%s3313_s7 + $0xe60] sm:$0xff] }
  0xd2   : > { %1622 = vmatpush.msrb.mxu0 %v745_v38  ;;  %1641 = vmatpush.msrb.mxu1 %v779_v39  ;;  %v775_v47 = vld [vmem:[%s3313_s7 + $0xd70] sm:$0xff]  ;;  %v773_v51 = vld [vmem:[%s3313_s7 + $0xd60] sm:$0xff] }
  0xd3   : > { %1662 = vmatpush.msrb.mxu2 %v809_v40  ;;  %1681 = vmatpush.msrb.mxu3 %v843_v41  ;;  %v839_v49 = vld [vmem:[%s3313_s7 + $0xf70] sm:$0xff]  ;;  %v837_v53 = vld [vmem:[%s3313_s7 + $0xf60] sm:$0xff] }
  0xd4   : > { %1623 = vmatpush.msrb.mxu0 %v743_v42  ;;  %1642 = vmatpush.msrb.mxu1 %v777_v43  ;;  %v739_v50 = vld [vmem:[%s3313_s7 + $0xc50] sm:$0xff]  ;;  %v737_v54 = vld [vmem:[%s3313_s7 + $0xc40] sm:$0xff] }
  0xd5   : > { %1663 = vmatpush.msrb.mxu2 %v807_v44  ;;  %1682 = vmatpush.msrb.mxu3 %v841_v45  ;;  %v803_v52 = vld [vmem:[%s3313_s7 + $0xe50] sm:$0xff]  ;;  %v801_v56 = vld [vmem:[%s3313_s7 + $0xe40] sm:$0xff] }
  0xd6   : > { %1624 = vmatpush.msrb.mxu0 %v741_v46  ;;  %1643 = vmatpush.msrb.mxu1 %v775_v47  ;;  %v771_v55 = vld [vmem:[%s3313_s7 + $0xd50] sm:$0xff]  ;;  %v769_v59 = vld [vmem:[%s3313_s7 + $0xd40] sm:$0xff] }
  0xd7   : > { %1664 = vmatpush.msrb.mxu2 %v805_v48  ;;  %1683 = vmatpush.msrb.mxu3 %v839_v49  ;;  %v835_v57 = vld [vmem:[%s3313_s7 + $0xf50] sm:$0xff]  ;;  %v833_v61 = vld [vmem:[%s3313_s7 + $0xf40] sm:$0xff] }
  0xd8   : > { %1625 = vmatpush.msrb.mxu0 %v739_v50  ;;  %1644 = vmatpush.msrb.mxu1 %v773_v51  ;;  %v735_v58 = vld [vmem:[%s3313_s7 + $0xc30] sm:$0xff]  ;;  %v733_v62 = vld [vmem:[%s3313_s7 + $0xc20] sm:$0xff] }
  0xd9   : > { %1665 = vmatpush.msrb.mxu2 %v803_v52  ;;  %1684 = vmatpush.msrb.mxu3 %v837_v53  ;;  %v799_v60 = vld [vmem:[%s3313_s7 + $0xe30] sm:$0xff]  ;;  %v797_v0 = vld [vmem:[%s3313_s7 + $0xe20] sm:$0xff] }
  0xda   : > { %1626 = vmatpush.msrb.mxu0 %v737_v54  ;;  %1645 = vmatpush.msrb.mxu1 %v771_v55  ;;  %v767_v63 = vld [vmem:[%s3313_s7 + $0xd30] sm:$0xff]  ;;  %v765_v3 = vld [vmem:[%s3313_s7 + $0xd20] sm:$0xff] }
  0xdb   : > { %1666 = vmatpush.msrb.mxu2 %v801_v56  ;;  %1685 = vmatpush.msrb.mxu3 %v835_v57  ;;  %v831_v1 = vld [vmem:[%s3313_s7 + $0xf30] sm:$0xff]  ;;  %v829_v5 = vld [vmem:[%s3313_s7 + $0xf20] sm:$0xff] }
  0xdc   : > { %1627 = vmatpush.msrb.mxu0 %v735_v58  ;;  %1646 = vmatpush.msrb.mxu1 %v769_v59  ;;  %v731_v2 = vld [vmem:[%s3313_s7 + $0xc10] sm:$0xff]  ;;  %v729_v6 = vld [vmem:[%s3313_s7 + $0xc00] sm:$0xff] }
  0xdd   : > { %1667 = vmatpush.msrb.mxu2 %v799_v60  ;;  %1686 = vmatpush.msrb.mxu3 %v833_v61  ;;  %v795_v4 = vld [vmem:[%s3313_s7 + $0xe10] sm:$0xff]  ;;  %v793_v8 = vld [vmem:[%s3313_s7 + $0xe00] sm:$0xff] }
  0xde   : > { %1628 = vmatpush.msrb.mxu0 %v733_v62  ;;  %1647 = vmatpush.msrb.mxu1 %v767_v63  ;;  %v763_v7 = vld [vmem:[%s3313_s7 + $0xd10] sm:$0xff]  ;;  %v325_v10 = vld [vmem:[#allocation2 + $0x60] sm:$0xff] }
  0xdf   : > { %1668 = vmatpush.msrb.mxu2 %v797_v0  ;;  %1687 = vmatpush.msrb.mxu3 %v831_v1  ;;  %v827_v9 = vld [vmem:[%s3313_s7 + $0xf10] sm:$0xff]  ;;  %v761_v14 = vld [vmem:[%s3313_s7 + $0xd00] sm:$0xff] }
  0xe0   : > { %1629 = vmatpush.msrb.mxu0 %v731_v2  ;;  %1648 = vmatpush.msrb.mxu1 %v765_v3  ;;  %v327_v11 = vld [vmem:[#allocation2 + $0x70] sm:$0xff]  ;;  %v825_v15 = vld [vmem:[%s3313_s7 + $0xf00] sm:$0xff] }
  0xe1   : > { %1669 = vmatpush.msrb.mxu2 %v795_v4  ;;  %1688 = vmatpush.msrb.mxu3 %v829_v5  ;;  %v887_v12 = vld [vmem:[%s3313_s7 + $0x10f0] sm:$0xff]  ;;  %v885_v18 = vld [vmem:[%s3313_s7 + $0x10e0] sm:$0xff] }
  0xe2   : > { %1630 = vmatpush.msrb.mxu0 %v729_v6  ;;  %1649 = vmatpush.msrb.mxu1 %v763_v7  ;;  %v951_v13 = vld [vmem:[%s3313_s7 + $0x12f0] sm:$0xff]  ;;  %v949_v20 = vld [vmem:[%s3313_s7 + $0x12e0] sm:$0xff] }
  0xe3   : > { %1670 = vmatpush.msrb.mxu2 %v793_v8  ;;  %1689 = vmatpush.msrb.mxu3 %v827_v9  ;;  %v919_v19 = vld [vmem:[%s3313_s7 + $0x11f0] sm:$0xff]  ;;  %v917_v23 = vld [vmem:[%s3313_s7 + $0x11e0] sm:$0xff] }
  0xe4   : > { %1631 = vmatmul.f32.vlgmr.msrb.gmra.mxu0 %v325_v10  ;;  %1671 = vmatmul.f32.vlgmr.msrb.gmra.mxu2 %v327_v11  ;;  %v983_v21 = vld [vmem:[%s3313_s7 + $0x13f0] sm:$0xff]  ;;  %v981_v25 = vld [vmem:[%s3313_s7 + $0x13e0] sm:$0xff] }
  0xe5   : > { %1695 = vmatpush.msra.mxu0 %v887_v12  ;;  %1735 = vmatpush.msra.mxu2 %v951_v13  ;;  %v883_v22 = vld [vmem:[%s3313_s7 + $0x10d0] sm:$0xff]  ;;  %v881_v26 = vld [vmem:[%s3313_s7 + $0x10c0] sm:$0xff] }
  0xe6   : > { %1650 = vmatpush.msrb.mxu1 %v761_v14  ;;  %1690 = vmatpush.msrb.mxu3 %v825_v15  ;;  %v947_v24 = vld [vmem:[%s3313_s7 + $0x12d0] sm:$0xff]  ;;  %v945_v28 = vld [vmem:[%s3313_s7 + $0x12c0] sm:$0xff] }
  0xe7   : > { %1651 = vmatmul.f32.vlgmr.msrb.gmra.mxu1 %v326_v16  ;;  %1691 = vmatmul.f32.vlgmr.msrb.gmra.mxu3 %v328_v17  ;;  %v915_v27 = vld [vmem:[%s3313_s7 + $0x11d0] sm:$0xff]  ;;  %v913_v31 = vld [vmem:[%s3313_s7 + $0x11c0] sm:$0xff] }
  0xe8   : > { %1696 = vmatpush.msra.mxu0 %v885_v18  ;;  %1715 = vmatpush.msra.mxu1 %v919_v19  ;;  %v979_v29 = vld [vmem:[%s3313_s7 + $0x13d0] sm:$0xff]  ;;  %v977_v33 = vld [vmem:[%s3313_s7 + $0x13c0] sm:$0xff] }
  0xe9   : > { %1736 = vmatpush.msra.mxu2 %v949_v20  ;;  %1755 = vmatpush.msra.mxu3 %v983_v21  ;;  %v879_v30 = vld [vmem:[%s3313_s7 + $0x10b0] sm:$0xff]  ;;  %v877_v34 = vld [vmem:[%s3313_s7 + $0x10a0] sm:$0xff]  ;;  %v330_v20 = vld [vmem:[#allocation2 + $0x88] sm:$0xff] }
  0xea   : > { %1697 = vmatpush.msra.mxu0 %v883_v22  ;;  %1716 = vmatpush.msra.mxu1 %v917_v23  ;;  %v943_v32 = vld [vmem:[%s3313_s7 + $0x12b0] sm:$0xff]  ;;  %v941_v36 = vld [vmem:[%s3313_s7 + $0x12a0] sm:$0xff]  ;;  %v332_v21 = vld [vmem:[#allocation2 + $0x98] sm:$0xff] }
  0xeb   : > { %1737 = vmatpush.msra.mxu2 %v947_v24  ;;  %1756 = vmatpush.msra.mxu3 %v981_v25  ;;  %v911_v35 = vld [vmem:[%s3313_s7 + $0x11b0] sm:$0xff]  ;;  %v909_v39 = vld [vmem:[%s3313_s7 + $0x11a0] sm:$0xff] }
  0xec   : > { %1698 = vmatpush.msra.mxu0 %v881_v26  ;;  %1717 = vmatpush.msra.mxu1 %v915_v27  ;;  %v975_v37 = vld [vmem:[%s3313_s7 + $0x13b0] sm:$0xff]  ;;  %v973_v41 = vld [vmem:[%s3313_s7 + $0x13a0] sm:$0xff] }
  0xed   : > { %1738 = vmatpush.msra.mxu2 %v945_v28  ;;  %1757 = vmatpush.msra.mxu3 %v979_v29  ;;  %v875_v38 = vld [vmem:[%s3313_s7 + $0x1090] sm:$0xff]  ;;  %v873_v42 = vld [vmem:[%s3313_s7 + $0x1080] sm:$0xff] }
  0xee   : > { %1699 = vmatpush.msra.mxu0 %v879_v30  ;;  %1718 = vmatpush.msra.mxu1 %v913_v31  ;;  %v939_v40 = vld [vmem:[%s3313_s7 + $0x1290] sm:$0xff]  ;;  %v937_v44 = vld [vmem:[%s3313_s7 + $0x1280] sm:$0xff] }
  0xef   : > { %1739 = vmatpush.msra.mxu2 %v943_v32  ;;  %1758 = vmatpush.msra.mxu3 %v977_v33  ;;  %v907_v43 = vld [vmem:[%s3313_s7 + $0x1190] sm:$0xff]  ;;  %v905_v47 = vld [vmem:[%s3313_s7 + $0x1180] sm:$0xff] }
  0xf0   : > { %1700 = vmatpush.msra.mxu0 %v877_v34  ;;  %1719 = vmatpush.msra.mxu1 %v911_v35  ;;  %v971_v45 = vld [vmem:[%s3313_s7 + $0x1390] sm:$0xff]  ;;  %v969_v49 = vld [vmem:[%s3313_s7 + $0x1380] sm:$0xff] }
  0xf1   : > { %1740 = vmatpush.msra.mxu2 %v941_v36  ;;  %1759 = vmatpush.msra.mxu3 %v975_v37  ;;  %v871_v46 = vld [vmem:[%s3313_s7 + $0x1070] sm:$0xff]  ;;  %v869_v50 = vld [vmem:[%s3313_s7 + $0x1060] sm:$0xff] }
  0xf2   : > { %1701 = vmatpush.msra.mxu0 %v875_v38  ;;  %1720 = vmatpush.msra.mxu1 %v909_v39  ;;  %v935_v48 = vld [vmem:[%s3313_s7 + $0x1270] sm:$0xff]  ;;  %v933_v52 = vld [vmem:[%s3313_s7 + $0x1260] sm:$0xff] }
  0xf3   : > { %1741 = vmatpush.msra.mxu2 %v939_v40  ;;  %1760 = vmatpush.msra.mxu3 %v973_v41  ;;  %v903_v51 = vld [vmem:[%s3313_s7 + $0x1170] sm:$0xff]  ;;  %v901_v55 = vld [vmem:[%s3313_s7 + $0x1160] sm:$0xff] }
  0xf4   : > { %1702 = vmatpush.msra.mxu0 %v873_v42  ;;  %1721 = vmatpush.msra.mxu1 %v907_v43  ;;  %v967_v53 = vld [vmem:[%s3313_s7 + $0x1370] sm:$0xff]  ;;  %v965_v57 = vld [vmem:[%s3313_s7 + $0x1360] sm:$0xff] }
  0xf5   : > { %1742 = vmatpush.msra.mxu2 %v937_v44  ;;  %1761 = vmatpush.msra.mxu3 %v971_v45  ;;  %v867_v54 = vld [vmem:[%s3313_s7 + $0x1050] sm:$0xff]  ;;  %v865_v58 = vld [vmem:[%s3313_s7 + $0x1040] sm:$0xff] }
  0xf6   : > { %1703 = vmatpush.msra.mxu0 %v871_v46  ;;  %1722 = vmatpush.msra.mxu1 %v905_v47  ;;  %v931_v56 = vld [vmem:[%s3313_s7 + $0x1250] sm:$0xff]  ;;  %v929_v60 = vld [vmem:[%s3313_s7 + $0x1240] sm:$0xff] }
  0xf7   : > { %1743 = vmatpush.msra.mxu2 %v935_v48  ;;  %1762 = vmatpush.msra.mxu3 %v969_v49  ;;  %v899_v59 = vld [vmem:[%s3313_s7 + $0x1150] sm:$0xff]  ;;  %v897_v63 = vld [vmem:[%s3313_s7 + $0x1140] sm:$0xff] }
  0xf8   : > { %1704 = vmatpush.msra.mxu0 %v869_v50  ;;  %1723 = vmatpush.msra.mxu1 %v903_v51  ;;  %v963_v61 = vld [vmem:[%s3313_s7 + $0x1350] sm:$0xff]  ;;  %v961_v1 = vld [vmem:[%s3313_s7 + $0x1340] sm:$0xff] }
  0xf9   : > { %1744 = vmatpush.msra.mxu2 %v933_v52  ;;  %1763 = vmatpush.msra.mxu3 %v967_v53  ;;  %v863_v62 = vld [vmem:[%s3313_s7 + $0x1030] sm:$0xff]  ;;  %v861_v2 = vld [vmem:[%s3313_s7 + $0x1020] sm:$0xff] }
  0xfa   : > { %1705 = vmatpush.msra.mxu0 %v867_v54  ;;  %1724 = vmatpush.msra.mxu1 %v901_v55  ;;  %v927_v0 = vld [vmem:[%s3313_s7 + $0x1230] sm:$0xff]  ;;  %v925_v4 = vld [vmem:[%s3313_s7 + $0x1220] sm:$0xff] }
  0xfb   : > { %1745 = vmatpush.msra.mxu2 %v931_v56  ;;  %1764 = vmatpush.msra.mxu3 %v965_v57  ;;  %v895_v3 = vld [vmem:[%s3313_s7 + $0x1130] sm:$0xff]  ;;  %v893_v7 = vld [vmem:[%s3313_s7 + $0x1120] sm:$0xff] }
  0xfc   : > { %1706 = vmatpush.msra.mxu0 %v865_v58  ;;  %1725 = vmatpush.msra.mxu1 %v899_v59  ;;  %v959_v5 = vld [vmem:[%s3313_s7 + $0x1330] sm:$0xff]  ;;  %v957_v9 = vld [vmem:[%s3313_s7 + $0x1320] sm:$0xff] }
  0xfd   : > { %1746 = vmatpush.msra.mxu2 %v929_v60  ;;  %1765 = vmatpush.msra.mxu3 %v963_v61  ;;  %v859_v6 = vld [vmem:[%s3313_s7 + $0x1010] sm:$0xff]  ;;  %v857_v10 = vld [vmem:[%s3313_s7 + $0x1000] sm:$0xff] }
  0xfe   : > { %1707 = vmatpush.msra.mxu0 %v863_v62  ;;  %1726 = vmatpush.msra.mxu1 %v897_v63  ;;  %v923_v8 = vld [vmem:[%s3313_s7 + $0x1210] sm:$0xff]  ;;  %v921_v12 = vld [vmem:[%s3313_s7 + $0x1200] sm:$0xff] }
  0xff   : > { %1747 = vmatpush.msra.mxu2 %v927_v0  ;;  %1766 = vmatpush.msra.mxu3 %v961_v1  ;;  %v891_v11 = vld [vmem:[%s3313_s7 + $0x1110] sm:$0xff]  ;;  %v329_v14 = vld [vmem:[#allocation2 + $0x80] sm:$0xff] }
 0x100   : > { %1708 = vmatpush.msra.mxu0 %v861_v2  ;;  %1727 = vmatpush.msra.mxu1 %v895_v3  ;;  %v955_v13 = vld [vmem:[%s3313_s7 + $0x1310] sm:$0xff]  ;;  %v889_v18 = vld [vmem:[%s3313_s7 + $0x1100] sm:$0xff] }
 0x101   : > { %1748 = vmatpush.msra.mxu2 %v925_v4  ;;  %1767 = vmatpush.msra.mxu3 %v959_v5  ;;  %v331_v15 = vld [vmem:[#allocation2 + $0x90] sm:$0xff]  ;;  %v953_v19 = vld [vmem:[%s3313_s7 + $0x1300] sm:$0xff] }
 0x102   : > { %1709 = vmatpush.msra.mxu0 %v859_v6  ;;  %1728 = vmatpush.msra.mxu1 %v893_v7  ;;  %v1015_v16 = vld [vmem:[%s3313_s7 + $0x14f0] sm:$0xff]  ;;  %v1013_v22 = vld [vmem:[%s3313_s7 + $0x14e0] sm:$0xff] }
 0x103   : > { %1749 = vmatpush.msra.mxu2 %v923_v8  ;;  %1768 = vmatpush.msra.mxu3 %v957_v9  ;;  %v1079_v17 = vld [vmem:[%s3313_s7 + $0x16f0] sm:$0xff]  ;;  %v1077_v24 = vld [vmem:[%s3313_s7 + $0x16e0] sm:$0xff] }
 0x104   : > { %1710 = vmatpush.msra.mxu0 %v857_v10  ;;  %1729 = vmatpush.msra.mxu1 %v891_v11  ;;  %v1047_v23 = vld [vmem:[%s3313_s7 + $0x15f0] sm:$0xff]  ;;  %v1045_v27 = vld [vmem:[%s3313_s7 + $0x15e0] sm:$0xff] }
 0x105   : > { %1750 = vmatpush.msra.mxu2 %v921_v12  ;;  %1769 = vmatpush.msra.mxu3 %v955_v13  ;;  %v1111_v25 = vld [vmem:[%s3313_s7 + $0x17f0] sm:$0xff]  ;;  %v1109_v29 = vld [vmem:[%s3313_s7 + $0x17e0] sm:$0xff] }
 0x106   : > { %1711 = vmatmul.f32.vlgmr.msra.gmra.mxu0 %v329_v14  ;;  %1751 = vmatmul.f32.vlgmr.msra.gmra.mxu2 %v331_v15  ;;  %v1011_v26 = vld [vmem:[%s3313_s7 + $0x14d0] sm:$0xff]  ;;  %v1009_v30 = vld [vmem:[%s3313_s7 + $0x14c0] sm:$0xff] }
 0x107   : > { %1775 = vmatpush.msrb.mxu0 %v1015_v16  ;;  %1815 = vmatpush.msrb.mxu2 %v1079_v17  ;;  %v1075_v28 = vld [vmem:[%s3313_s7 + $0x16d0] sm:$0xff]  ;;  %v1073_v32 = vld [vmem:[%s3313_s7 + $0x16c0] sm:$0xff] }
 0x108   : > { %1730 = vmatpush.msra.mxu1 %v889_v18  ;;  %1770 = vmatpush.msra.mxu3 %v953_v19  ;;  %v1043_v31 = vld [vmem:[%s3313_s7 + $0x15d0] sm:$0xff]  ;;  %v1041_v35 = vld [vmem:[%s3313_s7 + $0x15c0] sm:$0xff] }
 0x109   : > { %1731 = vmatmul.f32.vlgmr.msra.gmra.mxu1 %v330_v20  ;;  %1771 = vmatmul.f32.vlgmr.msra.gmra.mxu3 %v332_v21  ;;  %v1107_v33 = vld [vmem:[%s3313_s7 + $0x17d0] sm:$0xff]  ;;  %v1105_v37 = vld [vmem:[%s3313_s7 + $0x17c0] sm:$0xff] }
 0x10a   : > { %1776 = vmatpush.msrb.mxu0 %v1013_v22  ;;  %1795 = vmatpush.msrb.mxu1 %v1047_v23  ;;  %v1007_v34 = vld [vmem:[%s3313_s7 + $0x14b0] sm:$0xff]  ;;  %v1005_v38 = vld [vmem:[%s3313_s7 + $0x14a0] sm:$0xff] }
 0x10b   : > { %1816 = vmatpush.msrb.mxu2 %v1077_v24  ;;  %1835 = vmatpush.msrb.mxu3 %v1111_v25  ;;  %v1071_v36 = vld [vmem:[%s3313_s7 + $0x16b0] sm:$0xff]  ;;  %v1069_v40 = vld [vmem:[%s3313_s7 + $0x16a0] sm:$0xff]  ;;  %v334_v24 = vld [vmem:[#allocation2 + $0xa8] sm:$0xff] }
 0x10c   : > { %1777 = vmatpush.msrb.mxu0 %v1011_v26  ;;  %1796 = vmatpush.msrb.mxu1 %v1045_v27  ;;  %v1039_v39 = vld [vmem:[%s3313_s7 + $0x15b0] sm:$0xff]  ;;  %v1037_v43 = vld [vmem:[%s3313_s7 + $0x15a0] sm:$0xff]  ;;  %v336_v25 = vld [vmem:[#allocation2 + $0xb8] sm:$0xff] }
 0x10d   : > { %1817 = vmatpush.msrb.mxu2 %v1075_v28  ;;  %1836 = vmatpush.msrb.mxu3 %v1109_v29  ;;  %v1103_v41 = vld [vmem:[%s3313_s7 + $0x17b0] sm:$0xff]  ;;  %v1101_v45 = vld [vmem:[%s3313_s7 + $0x17a0] sm:$0xff] }
 0x10e   : > { %1778 = vmatpush.msrb.mxu0 %v1009_v30  ;;  %1797 = vmatpush.msrb.mxu1 %v1043_v31  ;;  %v1003_v42 = vld [vmem:[%s3313_s7 + $0x1490] sm:$0xff]  ;;  %v1001_v46 = vld [vmem:[%s3313_s7 + $0x1480] sm:$0xff] }
 0x10f   : > { %1818 = vmatpush.msrb.mxu2 %v1073_v32  ;;  %1837 = vmatpush.msrb.mxu3 %v1107_v33  ;;  %v1067_v44 = vld [vmem:[%s3313_s7 + $0x1690] sm:$0xff]  ;;  %v1065_v48 = vld [vmem:[%s3313_s7 + $0x1680] sm:$0xff] }
 0x110   : > { %1779 = vmatpush.msrb.mxu0 %v1007_v34  ;;  %1798 = vmatpush.msrb.mxu1 %v1041_v35  ;;  %v1035_v47 = vld [vmem:[%s3313_s7 + $0x1590] sm:$0xff]  ;;  %v1033_v51 = vld [vmem:[%s3313_s7 + $0x1580] sm:$0xff] }
 0x111   : > { %1819 = vmatpush.msrb.mxu2 %v1071_v36  ;;  %1838 = vmatpush.msrb.mxu3 %v1105_v37  ;;  %v1099_v49 = vld [vmem:[%s3313_s7 + $0x1790] sm:$0xff]  ;;  %v1097_v53 = vld [vmem:[%s3313_s7 + $0x1780] sm:$0xff] }
 0x112   : > { %1780 = vmatpush.msrb.mxu0 %v1005_v38  ;;  %1799 = vmatpush.msrb.mxu1 %v1039_v39  ;;  %v999_v50 = vld [vmem:[%s3313_s7 + $0x1470] sm:$0xff]  ;;  %v997_v54 = vld [vmem:[%s3313_s7 + $0x1460] sm:$0xff] }
 0x113   : > { %1820 = vmatpush.msrb.mxu2 %v1069_v40  ;;  %1839 = vmatpush.msrb.mxu3 %v1103_v41  ;;  %v1063_v52 = vld [vmem:[%s3313_s7 + $0x1670] sm:$0xff]  ;;  %v1061_v56 = vld [vmem:[%s3313_s7 + $0x1660] sm:$0xff] }
 0x114   : > { %1781 = vmatpush.msrb.mxu0 %v1003_v42  ;;  %1800 = vmatpush.msrb.mxu1 %v1037_v43  ;;  %v1031_v55 = vld [vmem:[%s3313_s7 + $0x1570] sm:$0xff]  ;;  %v1029_v59 = vld [vmem:[%s3313_s7 + $0x1560] sm:$0xff] }
 0x115   : > { %1821 = vmatpush.msrb.mxu2 %v1067_v44  ;;  %1840 = vmatpush.msrb.mxu3 %v1101_v45  ;;  %v1095_v57 = vld [vmem:[%s3313_s7 + $0x1770] sm:$0xff]  ;;  %v1093_v61 = vld [vmem:[%s3313_s7 + $0x1760] sm:$0xff] }
 0x116   : > { %1782 = vmatpush.msrb.mxu0 %v1001_v46  ;;  %1801 = vmatpush.msrb.mxu1 %v1035_v47  ;;  %v995_v58 = vld [vmem:[%s3313_s7 + $0x1450] sm:$0xff]  ;;  %v993_v62 = vld [vmem:[%s3313_s7 + $0x1440] sm:$0xff] }
 0x117   : > { %1822 = vmatpush.msrb.mxu2 %v1065_v48  ;;  %1841 = vmatpush.msrb.mxu3 %v1099_v49  ;;  %v1059_v60 = vld [vmem:[%s3313_s7 + $0x1650] sm:$0xff]  ;;  %v1057_v0 = vld [vmem:[%s3313_s7 + $0x1640] sm:$0xff] }
 0x118   : > { %1783 = vmatpush.msrb.mxu0 %v999_v50  ;;  %1802 = vmatpush.msrb.mxu1 %v1033_v51  ;;  %v1027_v63 = vld [vmem:[%s3313_s7 + $0x1550] sm:$0xff]  ;;  %v1025_v3 = vld [vmem:[%s3313_s7 + $0x1540] sm:$0xff] }
 0x119   : > { %1823 = vmatpush.msrb.mxu2 %v1063_v52  ;;  %1842 = vmatpush.msrb.mxu3 %v1097_v53  ;;  %v1091_v1 = vld [vmem:[%s3313_s7 + $0x1750] sm:$0xff]  ;;  %v1089_v5 = vld [vmem:[%s3313_s7 + $0x1740] sm:$0xff] }
 0x11a   : > { %1784 = vmatpush.msrb.mxu0 %v997_v54  ;;  %1803 = vmatpush.msrb.mxu1 %v1031_v55  ;;  %v991_v2 = vld [vmem:[%s3313_s7 + $0x1430] sm:$0xff]  ;;  %v989_v6 = vld [vmem:[%s3313_s7 + $0x1420] sm:$0xff] }
 0x11b   : > { %1824 = vmatpush.msrb.mxu2 %v1061_v56  ;;  %1843 = vmatpush.msrb.mxu3 %v1095_v57  ;;  %v1055_v4 = vld [vmem:[%s3313_s7 + $0x1630] sm:$0xff]  ;;  %v1053_v8 = vld [vmem:[%s3313_s7 + $0x1620] sm:$0xff] }
 0x11c   : > { %1785 = vmatpush.msrb.mxu0 %v995_v58  ;;  %1804 = vmatpush.msrb.mxu1 %v1029_v59  ;;  %v1023_v7 = vld [vmem:[%s3313_s7 + $0x1530] sm:$0xff]  ;;  %v1021_v11 = vld [vmem:[%s3313_s7 + $0x1520] sm:$0xff] }
 0x11d   : > { %1825 = vmatpush.msrb.mxu2 %v1059_v60  ;;  %1844 = vmatpush.msrb.mxu3 %v1093_v61  ;;  %v1087_v9 = vld [vmem:[%s3313_s7 + $0x1730] sm:$0xff]  ;;  %v1085_v13 = vld [vmem:[%s3313_s7 + $0x1720] sm:$0xff] }
 0x11e   : > { %1786 = vmatpush.msrb.mxu0 %v993_v62  ;;  %1805 = vmatpush.msrb.mxu1 %v1027_v63  ;;  %v987_v10 = vld [vmem:[%s3313_s7 + $0x1410] sm:$0xff]  ;;  %v985_v14 = vld [vmem:[%s3313_s7 + $0x1400] sm:$0xff] }
 0x11f   : > { %1826 = vmatpush.msrb.mxu2 %v1057_v0  ;;  %1845 = vmatpush.msrb.mxu3 %v1091_v1  ;;  %v1051_v12 = vld [vmem:[%s3313_s7 + $0x1610] sm:$0xff]  ;;  %v1049_v16 = vld [vmem:[%s3313_s7 + $0x1600] sm:$0xff] }
 0x120   : > { %1787 = vmatpush.msrb.mxu0 %v991_v2  ;;  %1806 = vmatpush.msrb.mxu1 %v1025_v3  ;;  %v1019_v15 = vld [vmem:[%s3313_s7 + $0x1510] sm:$0xff]  ;;  %v333_v18 = vld [vmem:[#allocation2 + $0xa0] sm:$0xff] }
 0x121   : > { %1827 = vmatpush.msrb.mxu2 %v1055_v4  ;;  %1846 = vmatpush.msrb.mxu3 %v1089_v5  ;;  %v1083_v17 = vld [vmem:[%s3313_s7 + $0x1710] sm:$0xff]  ;;  %v1017_v22 = vld [vmem:[%s3313_s7 + $0x1500] sm:$0xff] }
 0x122   : > { %1788 = vmatpush.msrb.mxu0 %v989_v6  ;;  %1807 = vmatpush.msrb.mxu1 %v1023_v7  ;;  %v335_v19 = vld [vmem:[#allocation2 + $0xb0] sm:$0xff]  ;;  %v1081_v23 = vld [vmem:[%s3313_s7 + $0x1700] sm:$0xff] }
 0x123   : > { %1828 = vmatpush.msrb.mxu2 %v1053_v8  ;;  %1847 = vmatpush.msrb.mxu3 %v1087_v9  ;;  %v1143_v20 = vld [vmem:[%s3313_s7 + $0x18f0] sm:$0xff]  ;;  %v1141_v26 = vld [vmem:[%s3313_s7 + $0x18e0] sm:$0xff] }
 0x124   : > { %1789 = vmatpush.msrb.mxu0 %v987_v10  ;;  %1808 = vmatpush.msrb.mxu1 %v1021_v11  ;;  %v1207_v21 = vld [vmem:[%s3313_s7 + $0x1af0] sm:$0xff]  ;;  %v1205_v28 = vld [vmem:[%s3313_s7 + $0x1ae0] sm:$0xff] }
 0x125   : > { %1829 = vmatpush.msrb.mxu2 %v1051_v12  ;;  %1848 = vmatpush.msrb.mxu3 %v1085_v13  ;;  %v1175_v27 = vld [vmem:[%s3313_s7 + $0x19f0] sm:$0xff]  ;;  %v1173_v31 = vld [vmem:[%s3313_s7 + $0x19e0] sm:$0xff] }
 0x126   : > { %1790 = vmatpush.msrb.mxu0 %v985_v14  ;;  %1809 = vmatpush.msrb.mxu1 %v1019_v15  ;;  %v1239_v29 = vld [vmem:[%s3313_s7 + $0x1bf0] sm:$0xff]  ;;  %v1237_v33 = vld [vmem:[%s3313_s7 + $0x1be0] sm:$0xff] }
 0x127   : > { %1830 = vmatpush.msrb.mxu2 %v1049_v16  ;;  %1849 = vmatpush.msrb.mxu3 %v1083_v17  ;;  %v1139_v30 = vld [vmem:[%s3313_s7 + $0x18d0] sm:$0xff]  ;;  %v1137_v34 = vld [vmem:[%s3313_s7 + $0x18c0] sm:$0xff] }
 0x128   : > { %1791 = vmatmul.f32.vlgmr.msrb.gmra.mxu0 %v333_v18  ;;  %1831 = vmatmul.f32.vlgmr.msrb.gmra.mxu2 %v335_v19  ;;  %v1203_v32 = vld [vmem:[%s3313_s7 + $0x1ad0] sm:$0xff]  ;;  %v1201_v36 = vld [vmem:[%s3313_s7 + $0x1ac0] sm:$0xff] }
 0x129   : > { %1855 = vmatpush.msra.mxu0 %v1143_v20  ;;  %1895 = vmatpush.msra.mxu2 %v1207_v21  ;;  %v1171_v35 = vld [vmem:[%s3313_s7 + $0x19d0] sm:$0xff]  ;;  %v1169_v39 = vld [vmem:[%s3313_s7 + $0x19c0] sm:$0xff] }
 0x12a   : > { %1810 = vmatpush.msrb.mxu1 %v1017_v22  ;;  %1850 = vmatpush.msrb.mxu3 %v1081_v23  ;;  %v1235_v37 = vld [vmem:[%s3313_s7 + $0x1bd0] sm:$0xff]  ;;  %v1233_v41 = vld [vmem:[%s3313_s7 + $0x1bc0] sm:$0xff] }
 0x12b   : > { %1811 = vmatmul.f32.vlgmr.msrb.gmra.mxu1 %v334_v24  ;;  %1851 = vmatmul.f32.vlgmr.msrb.gmra.mxu3 %v336_v25  ;;  %v1135_v38 = vld [vmem:[%s3313_s7 + $0x18b0] sm:$0xff]  ;;  %v1133_v42 = vld [vmem:[%s3313_s7 + $0x18a0] sm:$0xff] }
 0x12c   : > { %1856 = vmatpush.msra.mxu0 %v1141_v26  ;;  %1875 = vmatpush.msra.mxu1 %v1175_v27  ;;  %v1199_v40 = vld [vmem:[%s3313_s7 + $0x1ab0] sm:$0xff]  ;;  %v1197_v44 = vld [vmem:[%s3313_s7 + $0x1aa0] sm:$0xff] }
 0x12d   : > { %1896 = vmatpush.msra.mxu2 %v1205_v28  ;;  %1915 = vmatpush.msra.mxu3 %v1239_v29  ;;  %v1167_v43 = vld [vmem:[%s3313_s7 + $0x19b0] sm:$0xff]  ;;  %v1165_v47 = vld [vmem:[%s3313_s7 + $0x19a0] sm:$0xff]  ;;  %v338_v28 = vld [vmem:[#allocation2 + $0xc8] sm:$0xff] }
 0x12e   : > { %1857 = vmatpush.msra.mxu0 %v1139_v30  ;;  %1876 = vmatpush.msra.mxu1 %v1173_v31  ;;  %v1231_v45 = vld [vmem:[%s3313_s7 + $0x1bb0] sm:$0xff]  ;;  %v1229_v49 = vld [vmem:[%s3313_s7 + $0x1ba0] sm:$0xff]  ;;  %v340_v29 = vld [vmem:[#allocation2 + $0xd8] sm:$0xff] }
 0x12f   : > { %1897 = vmatpush.msra.mxu2 %v1203_v32  ;;  %1916 = vmatpush.msra.mxu3 %v1237_v33  ;;  %v1131_v46 = vld [vmem:[%s3313_s7 + $0x1890] sm:$0xff]  ;;  %v1129_v50 = vld [vmem:[%s3313_s7 + $0x1880] sm:$0xff] }
 0x130   : > { %1858 = vmatpush.msra.mxu0 %v1137_v34  ;;  %1877 = vmatpush.msra.mxu1 %v1171_v35  ;;  %v1195_v48 = vld [vmem:[%s3313_s7 + $0x1a90] sm:$0xff]  ;;  %v1193_v52 = vld [vmem:[%s3313_s7 + $0x1a80] sm:$0xff] }
 0x131   : > { %1898 = vmatpush.msra.mxu2 %v1201_v36  ;;  %1917 = vmatpush.msra.mxu3 %v1235_v37  ;;  %v1163_v51 = vld [vmem:[%s3313_s7 + $0x1990] sm:$0xff]  ;;  %v1161_v55 = vld [vmem:[%s3313_s7 + $0x1980] sm:$0xff] }
 0x132   : > { %1859 = vmatpush.msra.mxu0 %v1135_v38  ;;  %1878 = vmatpush.msra.mxu1 %v1169_v39  ;;  %v1227_v53 = vld [vmem:[%s3313_s7 + $0x1b90] sm:$0xff]  ;;  %v1225_v57 = vld [vmem:[%s3313_s7 + $0x1b80] sm:$0xff] }
 0x133   : > { %1899 = vmatpush.msra.mxu2 %v1199_v40  ;;  %1918 = vmatpush.msra.mxu3 %v1233_v41  ;;  %v1127_v54 = vld [vmem:[%s3313_s7 + $0x1870] sm:$0xff]  ;;  %v1125_v58 = vld [vmem:[%s3313_s7 + $0x1860] sm:$0xff] }
 0x134   : > { %1860 = vmatpush.msra.mxu0 %v1133_v42  ;;  %1879 = vmatpush.msra.mxu1 %v1167_v43  ;;  %v1191_v56 = vld [vmem:[%s3313_s7 + $0x1a70] sm:$0xff]  ;;  %v1189_v60 = vld [vmem:[%s3313_s7 + $0x1a60] sm:$0xff] }
 0x135   : > { %1900 = vmatpush.msra.mxu2 %v1197_v44  ;;  %1919 = vmatpush.msra.mxu3 %v1231_v45  ;;  %v1159_v59 = vld [vmem:[%s3313_s7 + $0x1970] sm:$0xff]  ;;  %v1157_v63 = vld [vmem:[%s3313_s7 + $0x1960] sm:$0xff] }
 0x136   : > { %1861 = vmatpush.msra.mxu0 %v1131_v46  ;;  %1880 = vmatpush.msra.mxu1 %v1165_v47  ;;  %v1223_v61 = vld [vmem:[%s3313_s7 + $0x1b70] sm:$0xff]  ;;  %v1221_v1 = vld [vmem:[%s3313_s7 + $0x1b60] sm:$0xff] }
 0x137   : > { %1901 = vmatpush.msra.mxu2 %v1195_v48  ;;  %1920 = vmatpush.msra.mxu3 %v1229_v49  ;;  %v1123_v62 = vld [vmem:[%s3313_s7 + $0x1850] sm:$0xff]  ;;  %v1121_v2 = vld [vmem:[%s3313_s7 + $0x1840] sm:$0xff] }
 0x138   : > { %1862 = vmatpush.msra.mxu0 %v1129_v50  ;;  %1881 = vmatpush.msra.mxu1 %v1163_v51  ;;  %v1187_v0 = vld [vmem:[%s3313_s7 + $0x1a50] sm:$0xff]  ;;  %v1185_v4 = vld [vmem:[%s3313_s7 + $0x1a40] sm:$0xff] }
 0x139   : > { %1902 = vmatpush.msra.mxu2 %v1193_v52  ;;  %1921 = vmatpush.msra.mxu3 %v1227_v53  ;;  %v1155_v3 = vld [vmem:[%s3313_s7 + $0x1950] sm:$0xff]  ;;  %v1153_v7 = vld [vmem:[%s3313_s7 + $0x1940] sm:$0xff] }
 0x13a   : > { %1863 = vmatpush.msra.mxu0 %v1127_v54  ;;  %1882 = vmatpush.msra.mxu1 %v1161_v55  ;;  %v1219_v5 = vld [vmem:[%s3313_s7 + $0x1b50] sm:$0xff]  ;;  %v1217_v9 = vld [vmem:[%s3313_s7 + $0x1b40] sm:$0xff] }
 0x13b   : > { %1903 = vmatpush.msra.mxu2 %v1191_v56  ;;  %1922 = vmatpush.msra.mxu3 %v1225_v57  ;;  %v1119_v6 = vld [vmem:[%s3313_s7 + $0x1830] sm:$0xff]  ;;  %v1117_v10 = vld [vmem:[%s3313_s7 + $0x1820] sm:$0xff] }
 0x13c   : > { %1864 = vmatpush.msra.mxu0 %v1125_v58  ;;  %1883 = vmatpush.msra.mxu1 %v1159_v59  ;;  %v1183_v8 = vld [vmem:[%s3313_s7 + $0x1a30] sm:$0xff]  ;;  %v1181_v12 = vld [vmem:[%s3313_s7 + $0x1a20] sm:$0xff] }
 0x13d   : > { %1904 = vmatpush.msra.mxu2 %v1189_v60  ;;  %1923 = vmatpush.msra.mxu3 %v1223_v61  ;;  %v1151_v11 = vld [vmem:[%s3313_s7 + $0x1930] sm:$0xff]  ;;  %v1149_v15 = vld [vmem:[%s3313_s7 + $0x1920] sm:$0xff] }
 0x13e   : > { %1865 = vmatpush.msra.mxu0 %v1123_v62  ;;  %1884 = vmatpush.msra.mxu1 %v1157_v63  ;;  %v1215_v13 = vld [vmem:[%s3313_s7 + $0x1b30] sm:$0xff]  ;;  %v1213_v17 = vld [vmem:[%s3313_s7 + $0x1b20] sm:$0xff] }
 0x13f   : > { %1905 = vmatpush.msra.mxu2 %v1187_v0  ;;  %1924 = vmatpush.msra.mxu3 %v1221_v1  ;;  %v1115_v14 = vld [vmem:[%s3313_s7 + $0x1810] sm:$0xff]  ;;  %v1113_v18 = vld [vmem:[%s3313_s7 + $0x1800] sm:$0xff] }
 0x140   : > { %1866 = vmatpush.msra.mxu0 %v1121_v2  ;;  %1885 = vmatpush.msra.mxu1 %v1155_v3  ;;  %v1179_v16 = vld [vmem:[%s3313_s7 + $0x1a10] sm:$0xff]  ;;  %v1177_v20 = vld [vmem:[%s3313_s7 + $0x1a00] sm:$0xff] }
 0x141   : > { %1906 = vmatpush.msra.mxu2 %v1185_v4  ;;  %1925 = vmatpush.msra.mxu3 %v1219_v5  ;;  %v1147_v19 = vld [vmem:[%s3313_s7 + $0x1910] sm:$0xff]  ;;  %v337_v22 = vld [vmem:[#allocation2 + $0xc0] sm:$0xff] }
 0x142   : > { %1867 = vmatpush.msra.mxu0 %v1119_v6  ;;  %1886 = vmatpush.msra.mxu1 %v1153_v7  ;;  %v1211_v21 = vld [vmem:[%s3313_s7 + $0x1b10] sm:$0xff]  ;;  %v1145_v26 = vld [vmem:[%s3313_s7 + $0x1900] sm:$0xff] }
 0x143   : > { %1907 = vmatpush.msra.mxu2 %v1183_v8  ;;  %1926 = vmatpush.msra.mxu3 %v1217_v9  ;;  %v339_v23 = vld [vmem:[#allocation2 + $0xd0] sm:$0xff]  ;;  %v1209_v27 = vld [vmem:[%s3313_s7 + $0x1b00] sm:$0xff] }
 0x144   : > { %1868 = vmatpush.msra.mxu0 %v1117_v10  ;;  %1887 = vmatpush.msra.mxu1 %v1151_v11  ;;  %v1271_v24 = vld [vmem:[%s3313_s7 + $0x1cf0] sm:$0xff]  ;;  %v1269_v30 = vld [vmem:[%s3313_s7 + $0x1ce0] sm:$0xff] }
 0x145   : > { %1908 = vmatpush.msra.mxu2 %v1181_v12  ;;  %1927 = vmatpush.msra.mxu3 %v1215_v13  ;;  %v1335_v25 = vld [vmem:[%s3313_s7 + $0x1ef0] sm:$0xff]  ;;  %v1333_v32 = vld [vmem:[%s3313_s7 + $0x1ee0] sm:$0xff] }
 0x146   : > { %1869 = vmatpush.msra.mxu0 %v1115_v14  ;;  %1888 = vmatpush.msra.mxu1 %v1149_v15  ;;  %v1303_v31 = vld [vmem:[%s3313_s7 + $0x1df0] sm:$0xff]  ;;  %v1301_v35 = vld [vmem:[%s3313_s7 + $0x1de0] sm:$0xff] }
 0x147   : > { %1909 = vmatpush.msra.mxu2 %v1179_v16  ;;  %1928 = vmatpush.msra.mxu3 %v1213_v17  ;;  %v1367_v33 = vld [vmem:[%s3313_s7 + $0x1ff0] sm:$0xff]  ;;  %v1365_v37 = vld [vmem:[%s3313_s7 + $0x1fe0] sm:$0xff] }
 0x148   : > { %1870 = vmatpush.msra.mxu0 %v1113_v18  ;;  %1889 = vmatpush.msra.mxu1 %v1147_v19  ;;  %v1267_v34 = vld [vmem:[%s3313_s7 + $0x1cd0] sm:$0xff]  ;;  %v1265_v38 = vld [vmem:[%s3313_s7 + $0x1cc0] sm:$0xff] }
 0x149   : > { %1910 = vmatpush.msra.mxu2 %v1177_v20  ;;  %1929 = vmatpush.msra.mxu3 %v1211_v21  ;;  %v1331_v36 = vld [vmem:[%s3313_s7 + $0x1ed0] sm:$0xff]  ;;  %v1329_v40 = vld [vmem:[%s3313_s7 + $0x1ec0] sm:$0xff] }
 0x14a   : > { %1871 = vmatmul.f32.vlgmr.msra.gmra.mxu0 %v337_v22  ;;  %1911 = vmatmul.f32.vlgmr.msra.gmra.mxu2 %v339_v23  ;;  %v1299_v39 = vld [vmem:[%s3313_s7 + $0x1dd0] sm:$0xff]  ;;  %v1297_v43 = vld [vmem:[%s3313_s7 + $0x1dc0] sm:$0xff] }
 0x14b   : > { %1935 = vmatpush.msrb.mxu0 %v1271_v24  ;;  %1975 = vmatpush.msrb.mxu2 %v1335_v25  ;;  %v1363_v41 = vld [vmem:[%s3313_s7 + $0x1fd0] sm:$0xff]  ;;  %v1361_v45 = vld [vmem:[%s3313_s7 + $0x1fc0] sm:$0xff] }
 0x14c   : > { %1890 = vmatpush.msra.mxu1 %v1145_v26  ;;  %1930 = vmatpush.msra.mxu3 %v1209_v27  ;;  %v1263_v42 = vld [vmem:[%s3313_s7 + $0x1cb0] sm:$0xff]  ;;  %v1261_v46 = vld [vmem:[%s3313_s7 + $0x1ca0] sm:$0xff] }
 0x14d   : > { %1891 = vmatmul.f32.vlgmr.msra.gmra.mxu1 %v338_v28  ;;  %1931 = vmatmul.f32.vlgmr.msra.gmra.mxu3 %v340_v29  ;;  %v1327_v44 = vld [vmem:[%s3313_s7 + $0x1eb0] sm:$0xff]  ;;  %v1325_v48 = vld [vmem:[%s3313_s7 + $0x1ea0] sm:$0xff]  ;;  %v376_v28 = vld [vmem:[%s3313_s7 + $0xf8] sm:$0xff] }
 0x14e   : > { %1936 = vmatpush.msrb.mxu0 %v1269_v30  ;;  %1955 = vmatpush.msrb.mxu1 %v1303_v31  ;;  %v1295_v47 = vld [vmem:[%s3313_s7 + $0x1db0] sm:$0xff]  ;;  %v1293_v51 = vld [vmem:[%s3313_s7 + $0x1da0] sm:$0xff]  ;;  %v440_v29 = vld [vmem:[%s3313_s7 + $0x2f8] sm:$0xff] }
 0x14f   : > { %1976 = vmatpush.msrb.mxu2 %v1333_v32  ;;  %1995 = vmatpush.msrb.mxu3 %v1367_v33  ;;  %v1359_v49 = vld [vmem:[%s3313_s7 + $0x1fb0] sm:$0xff]  ;;  %v1357_v53 = vld [vmem:[%s3313_s7 + $0x1fa0] sm:$0xff]  ;;  %v342_v32 = vld [vmem:[#allocation2 + $0xe8] sm:$0xff] }
 0x150   : > { %1937 = vmatpush.msrb.mxu0 %v1267_v34  ;;  %1956 = vmatpush.msrb.mxu1 %v1301_v35  ;;  %v1259_v50 = vld [vmem:[%s3313_s7 + $0x1c90] sm:$0xff]  ;;  %v1257_v54 = vld [vmem:[%s3313_s7 + $0x1c80] sm:$0xff]  ;;  %v344_v33 = vld [vmem:[#allocation2 + $0xf8] sm:$0xff] }
 0x151   : > { %1977 = vmatpush.msrb.mxu2 %v1331_v36  ;;  %1996 = vmatpush.msrb.mxu3 %v1365_v37  ;;  %v1323_v52 = vld [vmem:[%s3313_s7 + $0x1e90] sm:$0xff]  ;;  %v1321_v56 = vld [vmem:[%s3313_s7 + $0x1e80] sm:$0xff]  ;;  %v374_v34 = vld [vmem:[%s3313_s7 + $0xe8] sm:$0xff] }
 0x152   : > { %1938 = vmatpush.msrb.mxu0 %v1265_v38  ;;  %1957 = vmatpush.msrb.mxu1 %v1299_v39  ;;  %v1291_v55 = vld [vmem:[%s3313_s7 + $0x1d90] sm:$0xff]  ;;  %v1289_v59 = vld [vmem:[%s3313_s7 + $0x1d80] sm:$0xff]  ;;  %v408_v35 = vld [vmem:[%s3313_s7 + $0x1f8] sm:$0xff] }
 0x153   : > { %1978 = vmatpush.msrb.mxu2 %v1329_v40  ;;  %1997 = vmatpush.msrb.mxu3 %v1363_v41  ;;  %v1355_v57 = vld [vmem:[%s3313_s7 + $0x1f90] sm:$0xff]  ;;  %v1353_v61 = vld [vmem:[%s3313_s7 + $0x1f80] sm:$0xff]  ;;  %v438_v36 = vld [vmem:[%s3313_s7 + $0x2e8] sm:$0xff] }
 0x154   : > { %1939 = vmatpush.msrb.mxu0 %v1263_v42  ;;  %1958 = vmatpush.msrb.mxu1 %v1297_v43  ;;  %v1255_v58 = vld [vmem:[%s3313_s7 + $0x1c70] sm:$0xff]  ;;  %v1253_v62 = vld [vmem:[%s3313_s7 + $0x1c60] sm:$0xff]  ;;  %v472_v37 = vld [vmem:[%s3313_s7 + $0x3f8] sm:$0xff] }
 0x155   : > { %1979 = vmatpush.msrb.mxu2 %v1327_v44  ;;  %1998 = vmatpush.msrb.mxu3 %v1361_v45  ;;  %v1319_v60 = vld [vmem:[%s3313_s7 + $0x1e70] sm:$0xff]  ;;  %v1317_v0 = vld [vmem:[%s3313_s7 + $0x1e60] sm:$0xff]  ;;  %v372_v38 = vld [vmem:[%s3313_s7 + $0xd8] sm:$0xff] }
 0x156   : > { %1940 = vmatpush.msrb.mxu0 %v1261_v46  ;;  %1959 = vmatpush.msrb.mxu1 %v1295_v47  ;;  %v1287_v63 = vld [vmem:[%s3313_s7 + $0x1d70] sm:$0xff]  ;;  %v1285_v3 = vld [vmem:[%s3313_s7 + $0x1d60] sm:$0xff]  ;;  %v406_v39 = vld [vmem:[%s3313_s7 + $0x1e8] sm:$0xff] }
 0x157   : > { %1980 = vmatpush.msrb.mxu2 %v1325_v48  ;;  %1999 = vmatpush.msrb.mxu3 %v1359_v49  ;;  %v1351_v1 = vld [vmem:[%s3313_s7 + $0x1f70] sm:$0xff]  ;;  %v1349_v5 = vld [vmem:[%s3313_s7 + $0x1f60] sm:$0xff]  ;;  %v436_v40 = vld [vmem:[%s3313_s7 + $0x2d8] sm:$0xff] }
 0x158   : > { %1941 = vmatpush.msrb.mxu0 %v1259_v50  ;;  %1960 = vmatpush.msrb.mxu1 %v1293_v51  ;;  %v1251_v2 = vld [vmem:[%s3313_s7 + $0x1c50] sm:$0xff]  ;;  %v1249_v6 = vld [vmem:[%s3313_s7 + $0x1c40] sm:$0xff]  ;;  %v470_v41 = vld [vmem:[%s3313_s7 + $0x3e8] sm:$0xff] }
 0x159   : > { %1981 = vmatpush.msrb.mxu2 %v1323_v52  ;;  %2000 = vmatpush.msrb.mxu3 %v1357_v53  ;;  %v1315_v4 = vld [vmem:[%s3313_s7 + $0x1e50] sm:$0xff]  ;;  %v1313_v8 = vld [vmem:[%s3313_s7 + $0x1e40] sm:$0xff]  ;;  %v370_v42 = vld [vmem:[%s3313_s7 + $0xc8] sm:$0xff] }
 0x15a   : > { %1942 = vmatpush.msrb.mxu0 %v1257_v54  ;;  %1961 = vmatpush.msrb.mxu1 %v1291_v55  ;;  %v1283_v7 = vld [vmem:[%s3313_s7 + $0x1d50] sm:$0xff]  ;;  %v1281_v11 = vld [vmem:[%s3313_s7 + $0x1d40] sm:$0xff]  ;;  %v404_v43 = vld [vmem:[%s3313_s7 + $0x1d8] sm:$0xff] }
 0x15b   : > { %1982 = vmatpush.msrb.mxu2 %v1321_v56  ;;  %2001 = vmatpush.msrb.mxu3 %v1355_v57  ;;  %v1347_v9 = vld [vmem:[%s3313_s7 + $0x1f50] sm:$0xff]  ;;  %v1345_v13 = vld [vmem:[%s3313_s7 + $0x1f40] sm:$0xff]  ;;  %v434_v44 = vld [vmem:[%s3313_s7 + $0x2c8] sm:$0xff] }
 0x15c   : > { %1943 = vmatpush.msrb.mxu0 %v1255_v58  ;;  %1962 = vmatpush.msrb.mxu1 %v1289_v59  ;;  %v1247_v10 = vld [vmem:[%s3313_s7 + $0x1c30] sm:$0xff]  ;;  %v1245_v14 = vld [vmem:[%s3313_s7 + $0x1c20] sm:$0xff]  ;;  %v468_v45 = vld [vmem:[%s3313_s7 + $0x3d8] sm:$0xff] }
 0x15d   : > { %1983 = vmatpush.msrb.mxu2 %v1319_v60  ;;  %2002 = vmatpush.msrb.mxu3 %v1353_v61  ;;  %v1311_v12 = vld [vmem:[%s3313_s7 + $0x1e30] sm:$0xff]  ;;  %v1309_v16 = vld [vmem:[%s3313_s7 + $0x1e20] sm:$0xff]  ;;  %v368_v46 = vld [vmem:[%s3313_s7 + $0xb8] sm:$0xff] }
 0x15e   : > { %1944 = vmatpush.msrb.mxu0 %v1253_v62  ;;  %1963 = vmatpush.msrb.mxu1 %v1287_v63  ;;  %v1279_v15 = vld [vmem:[%s3313_s7 + $0x1d30] sm:$0xff]  ;;  %v1277_v19 = vld [vmem:[%s3313_s7 + $0x1d20] sm:$0xff]  ;;  %v402_v47 = vld [vmem:[%s3313_s7 + $0x1c8] sm:$0xff] }
 0x15f   : > { %1984 = vmatpush.msrb.mxu2 %v1317_v0  ;;  %2003 = vmatpush.msrb.mxu3 %v1351_v1  ;;  %v1343_v17 = vld [vmem:[%s3313_s7 + $0x1f30] sm:$0xff]  ;;  %v1341_v21 = vld [vmem:[%s3313_s7 + $0x1f20] sm:$0xff]  ;;  %v432_v48 = vld [vmem:[%s3313_s7 + $0x2b8] sm:$0xff] }
 0x160   : > { %1945 = vmatpush.msrb.mxu0 %v1251_v2  ;;  %1964 = vmatpush.msrb.mxu1 %v1285_v3  ;;  %v1243_v18 = vld [vmem:[%s3313_s7 + $0x1c10] sm:$0xff]  ;;  %v1241_v22 = vld [vmem:[%s3313_s7 + $0x1c00] sm:$0xff]  ;;  %v466_v49 = vld [vmem:[%s3313_s7 + $0x3c8] sm:$0xff] }
 0x161   : > { %1985 = vmatpush.msrb.mxu2 %v1315_v4  ;;  %2004 = vmatpush.msrb.mxu3 %v1349_v5  ;;  %v1307_v20 = vld [vmem:[%s3313_s7 + $0x1e10] sm:$0xff]  ;;  %v1305_v24 = vld [vmem:[%s3313_s7 + $0x1e00] sm:$0xff]  ;;  %v366_v50 = vld [vmem:[%s3313_s7 + $0xa8] sm:$0xff] }
 0x162   : > { %1946 = vmatpush.msrb.mxu0 %v1249_v6  ;;  %1965 = vmatpush.msrb.mxu1 %v1283_v7  ;;  %v1275_v23 = vld [vmem:[%s3313_s7 + $0x1d10] sm:$0xff]  ;;  %v341_v26 = vld [vmem:[#allocation2 + $0xe0] sm:$0xff]  ;;  %v400_v51 = vld [vmem:[%s3313_s7 + $0x1b8] sm:$0xff] }
 0x163   : > { %1986 = vmatpush.msrb.mxu2 %v1313_v8  ;;  %2005 = vmatpush.msrb.mxu3 %v1347_v9  ;;  %v1339_v25 = vld [vmem:[%s3313_s7 + $0x1f10] sm:$0xff]  ;;  %v1273_v30 = vld [vmem:[%s3313_s7 + $0x1d00] sm:$0xff]  ;;  %v430_v52 = vld [vmem:[%s3313_s7 + $0x2a8] sm:$0xff] }
 0x164   : > { %1947 = vmatpush.msrb.mxu0 %v1247_v10  ;;  %1966 = vmatpush.msrb.mxu1 %v1281_v11  ;;  %v343_v27 = vld [vmem:[#allocation2 + $0xf0] sm:$0xff]  ;;  %v1337_v31 = vld [vmem:[%s3313_s7 + $0x1f00] sm:$0xff]  ;;  %v464_v53 = vld [vmem:[%s3313_s7 + $0x3b8] sm:$0xff] }
 0x165   : > { %1987 = vmatpush.msrb.mxu2 %v1311_v12  ;;  %2006 = vmatpush.msrb.mxu3 %v1345_v13  ;;  %v364_v54 = vld [vmem:[%s3313_s7 + $0x98] sm:$0xff]  ;;  %v398_v55 = vld [vmem:[%s3313_s7 + $0x1a8] sm:$0xff] }
 0x166   : > { %1948 = vmatpush.msrb.mxu0 %v1245_v14  ;;  %1967 = vmatpush.msrb.mxu1 %v1279_v15  ;;  %v428_v56 = vld [vmem:[%s3313_s7 + $0x298] sm:$0xff]  ;;  %v462_v57 = vld [vmem:[%s3313_s7 + $0x3a8] sm:$0xff] }
 0x167   : > { %1988 = vmatpush.msrb.mxu2 %v1309_v16  ;;  %2007 = vmatpush.msrb.mxu3 %v1343_v17  ;;  %v362_v58 = vld [vmem:[%s3313_s7 + $0x88] sm:$0xff]  ;;  %v396_v59 = vld [vmem:[%s3313_s7 + $0x198] sm:$0xff] }
 0x168   : > { %1949 = vmatpush.msrb.mxu0 %v1243_v18  ;;  %1968 = vmatpush.msrb.mxu1 %v1277_v19  ;;  %v426_v60 = vld [vmem:[%s3313_s7 + $0x288] sm:$0xff]  ;;  %v460_v61 = vld [vmem:[%s3313_s7 + $0x398] sm:$0xff] }
 0x169   : > { %1989 = vmatpush.msrb.mxu2 %v1307_v20  ;;  %2008 = vmatpush.msrb.mxu3 %v1341_v21  ;;  %v360_v62 = vld [vmem:[%s3313_s7 + $0x78] sm:$0xff]  ;;  %v394_v63 = vld [vmem:[%s3313_s7 + $0x188] sm:$0xff] }
 0x16a   : > { %1950 = vmatpush.msrb.mxu0 %v1241_v22  ;;  %1969 = vmatpush.msrb.mxu1 %v1275_v23  ;;  %v424_v0 = vld [vmem:[%s3313_s7 + $0x278] sm:$0xff]  ;;  %v458_v1 = vld [vmem:[%s3313_s7 + $0x388] sm:$0xff] }
 0x16b   : > { %1990 = vmatpush.msrb.mxu2 %v1305_v24  ;;  %2009 = vmatpush.msrb.mxu3 %v1339_v25  ;;  %v358_v2 = vld [vmem:[%s3313_s7 + $0x68] sm:$0xff]  ;;  %v392_v3 = vld [vmem:[%s3313_s7 + $0x178] sm:$0xff] }
 0x16c   : > { %1951 = vmatmul.f32.vlgmr.msrb.gmra.mxu0 %v341_v26  ;;  %1991 = vmatmul.f32.vlgmr.msrb.gmra.mxu2 %v343_v27  ;;  %v422_v4 = vld [vmem:[%s3313_s7 + $0x268] sm:$0xff]  ;;  %v456_v5 = vld [vmem:[%s3313_s7 + $0x378] sm:$0xff]  ;;  %v1369_v26 = vld [vmem:[%s3321_s23] sm:$0x3] }
 0x16d   : > { %2015 = vmatpush.msra.mxu0 %v376_v28  ;;  %2055 = vmatpush.msra.mxu2 %v440_v29  ;;  %v356_v6 = vld [vmem:[%s3313_s7 + $0x58] sm:$0xff]  ;;  %v390_v7 = vld [vmem:[%s3313_s7 + $0x168] sm:$0xff] }
 0x16e   : > { %1970 = vmatpush.msrb.mxu1 %v1273_v30  ;;  %2010 = vmatpush.msrb.mxu3 %v1337_v31  ;;  %v420_v8 = vld [vmem:[%s3313_s7 + $0x258] sm:$0xff]  ;;  %v454_v9 = vld [vmem:[%s3313_s7 + $0x368] sm:$0xff] }
 0x16f   : > { %1971 = vmatmul.f32.vlgmr.msrb.gmra.mxu1 %v342_v32  ;;  %2011 = vmatmul.f32.vlgmr.msrb.gmra.mxu3 %v344_v33  ;;  %v354_v10 = vld [vmem:[%s3313_s7 + $0x48] sm:$0xff]  ;;  %v388_v11 = vld [vmem:[%s3313_s7 + $0x158] sm:$0xff]  ;;  %v1371_v33 = vperm.slane %v1369_v26, 0 }
 0x170   : > { %2016 = vmatpush.msra.mxu0 %v374_v34  ;;  %2035 = vmatpush.msra.mxu1 %v408_v35  ;;  %v418_v12 = vld [vmem:[%s3313_s7 + $0x248] sm:$0xff]  ;;  %v452_v13 = vld [vmem:[%s3313_s7 + $0x358] sm:$0xff] }
 0x171   : > { %2056 = vmatpush.msra.mxu2 %v438_v36  ;;  %2075 = vmatpush.msra.mxu3 %v472_v37  ;;  %v352_v14 = vld [vmem:[%s3313_s7 + $0x38] sm:$0xff]  ;;  %v386_v15 = vld [vmem:[%s3313_s7 + $0x148] sm:$0xff]  ;;  %v1392_v36 = vpop.f32.mrf.mxu0 }
 0x172   : > { %2017 = vmatpush.msra.mxu0 %v372_v38  ;;  %2036 = vmatpush.msra.mxu1 %v406_v39  ;;  %v416_v16 = vld [vmem:[%s3313_s7 + $0x238] sm:$0xff]  ;;  %v450_v17 = vld [vmem:[%s3313_s7 + $0x348] sm:$0xff] }
 0x173   : > { %2057 = vmatpush.msra.mxu2 %v436_v40  ;;  %2076 = vmatpush.msra.mxu3 %v470_v41  ;;  %v350_v18 = vld [vmem:[%s3313_s7 + $0x28] sm:$0xff]  ;;  %v384_v19 = vld [vmem:[%s3313_s7 + $0x138] sm:$0xff] }
 0x174   : > { %2018 = vmatpush.msra.mxu0 %v370_v42  ;;  %2037 = vmatpush.msra.mxu1 %v404_v43  ;;  %v414_v20 = vld [vmem:[%s3313_s7 + $0x228] sm:$0xff]  ;;  %v448_v21 = vld [vmem:[%s3313_s7 + $0x338] sm:$0xff]  ;;  %v1393_v43 = vadd.f32 %v1392_v36, %v1371_v33 }
 0x175   : > { %2058 = vmatpush.msra.mxu2 %v434_v44  ;;  %2077 = vmatpush.msra.mxu3 %v468_v45  ;;  %v348_v22 = vld [vmem:[%s3313_s7 + $0x18] sm:$0xff]  ;;  %v382_v23 = vld [vmem:[%s3313_s7 + $0x128] sm:$0xff] }
 0x176   : > { %2019 = vmatpush.msra.mxu0 %v368_v46  ;;  %2038 = vmatpush.msra.mxu1 %v402_v47  ;;  %v412_v24 = vld [vmem:[%s3313_s7 + $0x218] sm:$0xff]  ;;  %v446_v25 = vld [vmem:[%s3313_s7 + $0x328] sm:$0xff]  ;;  %v1412_v46 = vpop.f32.mrf.mxu1 }
 0x177   : > { %2059 = vmatpush.msra.mxu2 %v432_v48  ;;  %2078 = vmatpush.msra.mxu3 %v466_v49  ;;  %v346_v27 = vld [vmem:[%s3313_s7 + $0x8] sm:$0xff]  ;;  %v380_v28 = vld [vmem:[%s3313_s7 + $0x118] sm:$0xff] }
 0x178   : > { %2020 = vmatpush.msra.mxu0 %v366_v50  ;;  %2039 = vmatpush.msra.mxu1 %v400_v51  ;;  %v410_v29 = vld [vmem:[%s3313_s7 + $0x208] sm:$0xff]  ;;  %v444_v30 = vld [vmem:[%s3313_s7 + $0x318] sm:$0xff] }
 0x179   : > { %2060 = vmatpush.msra.mxu2 %v430_v52  ;;  %2079 = vmatpush.msra.mxu3 %v464_v53  ;;  %v504_v31 = vld [vmem:[%s3313_s7 + $0x4f8] sm:$0xff]  ;;  %v378_v34 = vld [vmem:[%s3313_s7 + $0x108] sm:$0xff]  ;;  %v1413_v53 = vadd.f32 %v1412_v46, %v1393_v43 }
 0x17a   : > { %2021 = vmatpush.msra.mxu0 %v364_v54  ;;  %2040 = vmatpush.msra.mxu1 %v398_v55  ;;  %v568_v32 = vld [vmem:[%s3313_s7 + $0x6f8] sm:$0xff]  ;;  %v442_v35 = vld [vmem:[%s3313_s7 + $0x308] sm:$0xff] }
 0x17b   : > { %2061 = vmatpush.msra.mxu2 %v428_v56  ;;  %2080 = vmatpush.msra.mxu3 %v462_v57  ;;  %v502_v37 = vld [vmem:[%s3313_s7 + $0x4e8] sm:$0xff]  ;;  %v536_v38 = vld [vmem:[%s3313_s7 + $0x5f8] sm:$0xff]  ;;  %v1432_v56 = vpop.f32.mrf.mxu2 }
 0x17c   : > { %2022 = vmatpush.msra.mxu0 %v362_v58  ;;  %2041 = vmatpush.msra.mxu1 %v396_v59  ;;  %v566_v39 = vld [vmem:[%s3313_s7 + $0x6e8] sm:$0xff]  ;;  %v600_v40 = vld [vmem:[%s3313_s7 + $0x7f8] sm:$0xff] }
 0x17d   : > { %2062 = vmatpush.msra.mxu2 %v426_v60  ;;  %2081 = vmatpush.msra.mxu3 %v460_v61  ;;  %v500_v41 = vld [vmem:[%s3313_s7 + $0x4d8] sm:$0xff]  ;;  %v534_v42 = vld [vmem:[%s3313_s7 + $0x5e8] sm:$0xff] }
 0x17e   : > { %2023 = vmatpush.msra.mxu0 %v360_v62  ;;  %2042 = vmatpush.msra.mxu1 %v394_v63  ;;  %v564_v44 = vld [vmem:[%s3313_s7 + $0x6d8] sm:$0xff]  ;;  %v598_v45 = vld [vmem:[%s3313_s7 + $0x7e8] sm:$0xff]  ;;  %v1433_v63 = vadd.f32 %v1432_v56, %v1413_v53 }
 0x17f   : > { %2063 = vmatpush.msra.mxu2 %v424_v0  ;;  %2082 = vmatpush.msra.mxu3 %v458_v1  ;;  %v498_v47 = vld [vmem:[%s3313_s7 + $0x4c8] sm:$0xff]  ;;  %v532_v48 = vld [vmem:[%s3313_s7 + $0x5d8] sm:$0xff] }
 0x180   : > { %2024 = vmatpush.msra.mxu0 %v358_v2  ;;  %2043 = vmatpush.msra.mxu1 %v392_v3  ;;  %v562_v49 = vld [vmem:[%s3313_s7 + $0x6c8] sm:$0xff]  ;;  %v596_v50 = vld [vmem:[%s3313_s7 + $0x7d8] sm:$0xff]  ;;  %v1452_v2 = vpop.f32.mrf.mxu3 }
 0x181   : > { %2064 = vmatpush.msra.mxu2 %v422_v4  ;;  %2083 = vmatpush.msra.mxu3 %v456_v5  ;;  %v496_v51 = vld [vmem:[%s3313_s7 + $0x4b8] sm:$0xff]  ;;  %v530_v52 = vld [vmem:[%s3313_s7 + $0x5c8] sm:$0xff] }
 0x182   : > { %2025 = vmatpush.msra.mxu0 %v356_v6  ;;  %2044 = vmatpush.msra.mxu1 %v390_v7  ;;  %v560_v54 = vld [vmem:[%s3313_s7 + $0x6b8] sm:$0xff]  ;;  %v594_v55 = vld [vmem:[%s3313_s7 + $0x7c8] sm:$0xff] }
 0x183   : > { %2065 = vmatpush.msra.mxu2 %v420_v8  ;;  %2084 = vmatpush.msra.mxu3 %v454_v9  ;;  %v494_v57 = vld [vmem:[%s3313_s7 + $0x4a8] sm:$0xff]  ;;  %v528_v58 = vld [vmem:[%s3313_s7 + $0x5b8] sm:$0xff]  ;;  %v1453_v9 = vadd.f32 %v1452_v2, %v1433_v63 }
 0x184   : > { %2026 = vmatpush.msra.mxu0 %v354_v10  ;;  %2045 = vmatpush.msra.mxu1 %v388_v11  ;;  %v558_v59 = vld [vmem:[%s3313_s7 + $0x6a8] sm:$0xff]  ;;  %v592_v60 = vld [vmem:[%s3313_s7 + $0x7b8] sm:$0xff] }
 0x185   : > { %2066 = vmatpush.msra.mxu2 %v418_v12  ;;  %2085 = vmatpush.msra.mxu3 %v452_v13  ;;  %v492_v61 = vld [vmem:[%s3313_s7 + $0x498] sm:$0xff]  ;;  %v526_v62 = vld [vmem:[%s3313_s7 + $0x5a8] sm:$0xff]  ;;  %v1472_v12 = vpop.f32.mrf.mxu0 }
 0x186   : > { %2027 = vmatpush.msra.mxu0 %v352_v14  ;;  %2046 = vmatpush.msra.mxu1 %v386_v15  ;;  %v556_v0 = vld [vmem:[%s3313_s7 + $0x698] sm:$0xff]  ;;  %v590_v1 = vld [vmem:[%s3313_s7 + $0x7a8] sm:$0xff] }
 0x187   : > { %2067 = vmatpush.msra.mxu2 %v416_v16  ;;  %2086 = vmatpush.msra.mxu3 %v450_v17  ;;  %v490_v3 = vld [vmem:[%s3313_s7 + $0x488] sm:$0xff]  ;;  %v524_v4 = vld [vmem:[%s3313_s7 + $0x598] sm:$0xff] }
 0x188   : > { %2028 = vmatpush.msra.mxu0 %v350_v18  ;;  %2047 = vmatpush.msra.mxu1 %v384_v19  ;;  %v554_v5 = vld [vmem:[%s3313_s7 + $0x688] sm:$0xff]  ;;  %v588_v6 = vld [vmem:[%s3313_s7 + $0x798] sm:$0xff]  ;;  %v1473_v19 = vadd.f32 %v1472_v12, %v1453_v9 }
 0x189   : > { %2068 = vmatpush.msra.mxu2 %v414_v20  ;;  %2087 = vmatpush.msra.mxu3 %v448_v21  ;;  %v488_v7 = vld [vmem:[%s3313_s7 + $0x478] sm:$0xff]  ;;  %v522_v8 = vld [vmem:[%s3313_s7 + $0x588] sm:$0xff] }
 0x18a   : > { %2029 = vmatpush.msra.mxu0 %v348_v22  ;;  %2048 = vmatpush.msra.mxu1 %v382_v23  ;;  %v552_v10 = vld [vmem:[%s3313_s7 + $0x678] sm:$0xff]  ;;  %v586_v11 = vld [vmem:[%s3313_s7 + $0x788] sm:$0xff]  ;;  %v1492_v22 = vpop.f32.mrf.mxu1 }
 0x18b   : > { %2069 = vmatpush.msra.mxu2 %v412_v24  ;;  %2088 = vmatpush.msra.mxu3 %v446_v25  ;;  %v486_v13 = vld [vmem:[%s3313_s7 + $0x468] sm:$0xff]  ;;  %v520_v14 = vld [vmem:[%s3313_s7 + $0x578] sm:$0xff] }
 0x18c   : > { %2030 = vmatpush.msra.mxu0 %v346_v27  ;;  %2049 = vmatpush.msra.mxu1 %v380_v28  ;;  %v550_v15 = vld [vmem:[%s3313_s7 + $0x668] sm:$0xff]  ;;  %v584_v16 = vld [vmem:[%s3313_s7 + $0x778] sm:$0xff] }
 0x18d   : > { %2070 = vmatpush.msra.mxu2 %v410_v29  ;;  %2089 = vmatpush.msra.mxu3 %v444_v30  ;;  %v484_v17 = vld [vmem:[%s3313_s7 + $0x458] sm:$0xff]  ;;  %v518_v18 = vld [vmem:[%s3313_s7 + $0x568] sm:$0xff]  ;;  %v1493_v29 = vadd.f32 %v1492_v22, %v1473_v19  ;;  %v2906_v22 = vld [vmem:[#allocation2 + $0x20] sm:$0xff] }
 0x18e   : > { %2095 = vmatpush.msrb.mxu0 %v504_v31  ;;  %2050 = vmatpush.msra.mxu1 %v378_v34  ;;  %v548_v20 = vld [vmem:[%s3313_s7 + $0x658] sm:$0xff]  ;;  %v582_v21 = vld [vmem:[%s3313_s7 + $0x768] sm:$0xff] }
 0x18f   : > { %2135 = vmatpush.msrb.mxu2 %v568_v32  ;;  %2090 = vmatpush.msra.mxu3 %v442_v35  ;;  %v482_v23 = vld [vmem:[%s3313_s7 + $0x448] sm:$0xff]  ;;  %v516_v24 = vld [vmem:[%s3313_s7 + $0x558] sm:$0xff]  ;;  %v1512_v32 = vpop.f32.mrf.mxu2 }
 0x190   : > { %2096 = vmatpush.msrb.mxu0 %v502_v37  ;;  %2115 = vmatpush.msrb.mxu1 %v536_v38  ;;  %v546_v25 = vld [vmem:[%s3313_s7 + $0x648] sm:$0xff]  ;;  %v580_v26 = vld [vmem:[%s3313_s7 + $0x758] sm:$0xff] }
 0x191   : > { %2136 = vmatpush.msrb.mxu2 %v566_v39  ;;  %2155 = vmatpush.msrb.mxu3 %v600_v40  ;;  %v480_v27 = vld [vmem:[%s3313_s7 + $0x438] sm:$0xff]  ;;  %v514_v28 = vld [vmem:[%s3313_s7 + $0x548] sm:$0xff]  ;;  %v1513_v39 = vadd.f32 %v1512_v32, %v1493_v29 }
 0x192   : > { %2097 = vmatpush.msrb.mxu0 %v500_v41  ;;  %2116 = vmatpush.msrb.mxu1 %v534_v42  ;;  %v544_v30 = vld [vmem:[%s3313_s7 + $0x638] sm:$0xff]  ;;  %v578_v31 = vld [vmem:[%s3313_s7 + $0x748] sm:$0xff]  ;;  %v1532_v42 = vpop.f32.mrf.mxu3  ;;  %v1572_v56 = vpop.f32.mrf.mxu1 }
 0x193   : > { %2137 = vmatpush.msrb.mxu2 %v564_v44  ;;  %2156 = vmatpush.msrb.mxu3 %v598_v45  ;;  %v478_v33 = vld [vmem:[%s3313_s7 + $0x428] sm:$0xff]  ;;  %v512_v34 = vld [vmem:[%s3313_s7 + $0x538] sm:$0xff] }
 0x194   : > { %2098 = vmatpush.msrb.mxu0 %v498_v47  ;;  %2117 = vmatpush.msrb.mxu1 %v532_v48  ;;  %v542_v35 = vld [vmem:[%s3313_s7 + $0x628] sm:$0xff]  ;;  %v576_v36 = vld [vmem:[%s3313_s7 + $0x738] sm:$0xff]  ;;  %v1552_v47 = vpop.f32.mrf.mxu0  ;;  %v1533_v48 = vadd.f32 %v1532_v42, %v1513_v39 }
 0x195   : > { %2138 = vmatpush.msrb.mxu2 %v562_v49  ;;  %2157 = vmatpush.msrb.mxu3 %v596_v50  ;;  %v476_v37 = vld [vmem:[%s3313_s7 + $0x418] sm:$0xff]  ;;  %v510_v38 = vld [vmem:[%s3313_s7 + $0x528] sm:$0xff] }
 0x196   : > { %2099 = vmatpush.msrb.mxu0 %v496_v51  ;;  %2118 = vmatpush.msrb.mxu1 %v530_v52  ;;  %v540_v40 = vld [vmem:[%s3313_s7 + $0x618] sm:$0xff]  ;;  %v574_v41 = vld [vmem:[%s3313_s7 + $0x728] sm:$0xff]  ;;  %v1553_v53 = vadd.f32 %v1552_v47, %v1533_v48 }
 0x197   : > { %2139 = vmatpush.msrb.mxu2 %v560_v54  ;;  %2158 = vmatpush.msrb.mxu3 %v594_v55  ;;  %v474_v43 = vld [vmem:[%s3313_s7 + $0x408] sm:$0xff]  ;;  %v508_v44 = vld [vmem:[%s3313_s7 + $0x518] sm:$0xff]  ;;  %v2901_v54 = vld [vmem:[#allocation2] sm:$0xff] }
 0x198   : > { %2100 = vmatpush.msrb.mxu0 %v494_v57  ;;  %2119 = vmatpush.msrb.mxu1 %v528_v58  ;;  %v538_v45 = vld [vmem:[%s3313_s7 + $0x608] sm:$0xff]  ;;  %v572_v46 = vld [vmem:[%s3313_s7 + $0x718] sm:$0xff]  ;;  %v2902_v55 = vld [vmem:[#allocation2 + $0x10] sm:$0xff]  ;;  %v1573_v2 = vadd.f32 %v1572_v56, %v1553_v53 }
 0x199   : > { %2140 = vmatpush.msrb.mxu2 %v558_v59  ;;  %2159 = vmatpush.msrb.mxu3 %v592_v60  ;;  %v632_v49 = vld [vmem:[%s3313_s7 + $0x8f8] sm:$0xff]  ;;  %v506_v51 = vld [vmem:[%s3313_s7 + $0x508] sm:$0xff] }
 0x19a   : > { %2101 = vmatpush.msrb.mxu0 %v492_v61  ;;  %2120 = vmatpush.msrb.mxu1 %v526_v62  ;;  %v696_v50 = vld [vmem:[%s3313_s7 + $0xaf8] sm:$0xff]  ;;  %v570_v52 = vld [vmem:[%s3313_s7 + $0x708] sm:$0xff]  ;;  %v1592_v61 = vpop.f32.mrf.mxu2 }
 0x19b   : > { %2141 = vmatpush.msrb.mxu2 %v556_v0  ;;  %2160 = vmatpush.msrb.mxu3 %v590_v1  ;;  %v630_v57 = vld [vmem:[%s3313_s7 + $0x8e8] sm:$0xff]  ;;  %v664_v58 = vld [vmem:[%s3313_s7 + $0x9f8] sm:$0xff] }
 0x19c   : > { %2102 = vmatpush.msrb.mxu0 %v490_v3  ;;  %2121 = vmatpush.msrb.mxu1 %v524_v4  ;;  %v694_v59 = vld [vmem:[%s3313_s7 + $0xae8] sm:$0xff]  ;;  %v728_v60 = vld [vmem:[%s3313_s7 + $0xbf8] sm:$0xff] }
 0x19d   : > { %2142 = vmatpush.msrb.mxu2 %v554_v5  ;;  %2161 = vmatpush.msrb.mxu3 %v588_v6  ;;  %v2903_v62 = vld [vmem:[#allocation2 + $0x8] sm:$0xff]  ;;  %v2904_v63 = vld [vmem:[#allocation2 + $0x18] sm:$0xff] }
 0x19e   : > { %2103 = vmatpush.msrb.mxu0 %v488_v7  ;;  %2122 = vmatpush.msrb.mxu1 %v522_v8  ;;  %v628_v0 = vld [vmem:[%s3313_s7 + $0x8d8] sm:$0xff]  ;;  %v662_v1 = vld [vmem:[%s3313_s7 + $0x9e8] sm:$0xff]  ;;  %v1593_v7 = vadd.f32 %v1592_v61, %v1573_v2 }
 0x19f   : > { %2143 = vmatpush.msrb.mxu2 %v552_v10  ;;  %2162 = vmatpush.msrb.mxu3 %v586_v11  ;;  %v692_v3 = vld [vmem:[%s3313_s7 + $0xad8] sm:$0xff]  ;;  %v726_v4 = vld [vmem:[%s3313_s7 + $0xbe8] sm:$0xff]  ;;  %v1612_v10 = vpop.f32.mrf.mxu3 }
 0x1a0   : > { %2104 = vmatpush.msrb.mxu0 %v486_v13  ;;  %2123 = vmatpush.msrb.mxu1 %v520_v14  ;;  %v626_v5 = vld [vmem:[%s3313_s7 + $0x8c8] sm:$0xff]  ;;  %v660_v6 = vld [vmem:[%s3313_s7 + $0x9d8] sm:$0xff]  ;;  %v1632_v14 = vpop.f32.mrf.mxu0 }
 0x1a1   : > { %2144 = vmatpush.msrb.mxu2 %v550_v15  ;;  %2163 = vmatpush.msrb.mxu3 %v584_v16  ;;  %v690_v8 = vld [vmem:[%s3313_s7 + $0xac8] sm:$0xff]  ;;  %v724_v9 = vld [vmem:[%s3313_s7 + $0xbd8] sm:$0xff]  ;;  %v1613_v16 = vadd.f32 %v1612_v10, %v1593_v7 }
 0x1a2   : > { %2105 = vmatpush.msrb.mxu0 %v484_v17  ;;  %2124 = vmatpush.msrb.mxu1 %v518_v18  ;;  %v624_v11 = vld [vmem:[%s3313_s7 + $0x8b8] sm:$0xff]  ;;  %v658_v12 = vld [vmem:[%s3313_s7 + $0x9c8] sm:$0xff]  ;;  %v2905_v17 = vld [vmem:[#allocation2 + $0x30] sm:$0xff] }
 0x1a3   : > { %2145 = vmatpush.msrb.mxu2 %v548_v20  ;;  %2164 = vmatpush.msrb.mxu3 %v582_v21  ;;  %v688_v13 = vld [vmem:[%s3313_s7 + $0xab8] sm:$0xff]  ;;  %v722_v15 = vld [vmem:[%s3313_s7 + $0xbc8] sm:$0xff]  ;;  %v1633_v21 = vadd.f32 %v1632_v14, %v1613_v16 }
 0x1a4   : > { %2106 = vmatpush.msrb.mxu0 %v482_v23  ;;  %2125 = vmatpush.msrb.mxu1 %v516_v24  ;;  %v622_v18 = vld [vmem:[%s3313_s7 + $0x8a8] sm:$0xff]  ;;  %v656_v19 = vld [vmem:[%s3313_s7 + $0x9b8] sm:$0xff]  ;;  %v1652_v24 = vpop.f32.mrf.mxu1 }
 0x1a5   : > { %2146 = vmatpush.msrb.mxu2 %v546_v25  ;;  %2165 = vmatpush.msrb.mxu3 %v580_v26  ;;  %v686_v20 = vld [vmem:[%s3313_s7 + $0xaa8] sm:$0xff]  ;;  %v720_v23 = vld [vmem:[%s3313_s7 + $0xbb8] sm:$0xff] }
 0x1a6   : > { %2107 = vmatpush.msrb.mxu0 %v480_v27  ;;  %2126 = vmatpush.msrb.mxu1 %v514_v28  ;;  %v2907_v25 = vld [vmem:[#allocation2 + $0x38] sm:$0xff]  ;;  %v654_v27 = vld [vmem:[%s3313_s7 + $0x9a8] sm:$0xff] }
 0x1a7   : > { %2147 = vmatpush.msrb.mxu2 %v544_v30  ;;  %2166 = vmatpush.msrb.mxu3 %v578_v31  ;;  %v620_v26 = vld [vmem:[%s3313_s7 + $0x898] sm:$0xff]  ;;  %v718_v29 = vld [vmem:[%s3313_s7 + $0xba8] sm:$0xff]  ;;  %v1672_v30 = vpop.f32.mrf.mxu2  ;;  %v1692_v42 = vpop.f32.mrf.mxu3 }
 0x1a8   : > { %2108 = vmatpush.msrb.mxu0 %v478_v33  ;;  %2127 = vmatpush.msrb.mxu1 %v512_v34  ;;  %v684_v28 = vld [vmem:[%s3313_s7 + $0xa98] sm:$0xff]  ;;  %v2908_v31 = vld [vmem:[#allocation2 + $0x28] sm:$0xff]  ;;  %v1653_v34 = vadd.f32 %v1652_v24, %v1633_v21  ;;  %v1712_v47 = vpop.f32.mrf.mxu0 }
 0x1a9   : > { %2148 = vmatpush.msrb.mxu2 %v542_v35  ;;  %2167 = vmatpush.msrb.mxu3 %v576_v36  ;;  %v618_v32 = vld [vmem:[%s3313_s7 + $0x888] sm:$0xff]  ;;  %v652_v33 = vld [vmem:[%s3313_s7 + $0x998] sm:$0xff] }
 0x1aa   : > { %2109 = vmatpush.msrb.mxu0 %v476_v37  ;;  %2128 = vmatpush.msrb.mxu1 %v510_v38  ;;  %v682_v35 = vld [vmem:[%s3313_s7 + $0xa88] sm:$0xff]  ;;  %v716_v36 = vld [vmem:[%s3313_s7 + $0xb98] sm:$0xff]  ;;  %v1673_v39 = vadd.f32 %v1672_v30, %v1653_v34 }
 0x1ab   : > { %2149 = vmatpush.msrb.mxu2 %v540_v40  ;;  %2168 = vmatpush.msrb.mxu3 %v574_v41  ;;  %v616_v37 = vld [vmem:[%s3313_s7 + $0x878] sm:$0xff]  ;;  %v650_v38 = vld [vmem:[%s3313_s7 + $0x988] sm:$0xff] }
 0x1ac   : > { %2110 = vmatpush.msrb.mxu0 %v474_v43  ;;  %2129 = vmatpush.msrb.mxu1 %v508_v44  ;;  %v680_v40 = vld [vmem:[%s3313_s7 + $0xa78] sm:$0xff]  ;;  %v714_v41 = vld [vmem:[%s3313_s7 + $0xb88] sm:$0xff] }
 0x1ad   : > { %2150 = vmatpush.msrb.mxu2 %v538_v45  ;;  %2169 = vmatpush.msrb.mxu3 %v572_v46  ;;  %v614_v43 = vld [vmem:[%s3313_s7 + $0x868] sm:$0xff]  ;;  %v648_v44 = vld [vmem:[%s3313_s7 + $0x978] sm:$0xff] }
 0x1ae   : > { %2031 = vmatmul.f32.vlgmr.msra.gmra.mxu0 %v2901_v54  ;;  %2071 = vmatmul.f32.vlgmr.msra.gmra.mxu2 %v2902_v55  ;;  %v678_v45 = vld [vmem:[%s3313_s7 + $0xa68] sm:$0xff]  ;;  %v712_v46 = vld [vmem:[%s3313_s7 + $0xb78] sm:$0xff] }
 0x1af   : > { %2175 = vmatpush.msra.mxu0 %v632_v49  ;;  %2215 = vmatpush.msra.mxu2 %v696_v50  ;;  %v612_v48 = vld [vmem:[%s3313_s7 + $0x858] sm:$0xff]  ;;  %v646_v49 = vld [vmem:[%s3313_s7 + $0x968] sm:$0xff]  ;;  %v1693_v50 = vadd.f32 %v1692_v42, %v1673_v39  ;;  %v1772_v10 = vpop.f32.mrf.mxu3 }
 0x1b0   : > { %2130 = vmatpush.msrb.mxu1 %v506_v51  ;;  %2170 = vmatpush.msrb.mxu3 %v570_v52  ;;  %v676_v51 = vld [vmem:[%s3313_s7 + $0xa58] sm:$0xff]  ;;  %v710_v52 = vld [vmem:[%s3313_s7 + $0xb68] sm:$0xff] }
 0x1b1   : > { %2051 = vmatmul.f32.vlgmr.msra.gmra.mxu1 %v2903_v62  ;;  %2091 = vmatmul.f32.vlgmr.msra.gmra.mxu3 %v2904_v63  ;;  %v610_v53 = vld [vmem:[%s3313_s7 + $0x848] sm:$0xff]  ;;  %v644_v54 = vld [vmem:[%s3313_s7 + $0x958] sm:$0xff]  ;;  %v1713_v55 = vadd.f32 %v1712_v47, %v1693_v50  ;;  %v1752_v63 = vpop.f32.mrf.mxu2 }
 0x1b2   : > { %2176 = vmatpush.msra.mxu0 %v630_v57  ;;  %2195 = vmatpush.msra.mxu1 %v664_v58  ;;  %v674_v56 = vld [vmem:[%s3313_s7 + $0xa48] sm:$0xff]  ;;  %v708_v57 = vld [vmem:[%s3313_s7 + $0xb58] sm:$0xff]  ;;  %v1732_v58 = vpop.f32.mrf.mxu1 }
 0x1b3   : > { %2216 = vmatpush.msra.mxu2 %v694_v59  ;;  %2235 = vmatpush.msra.mxu3 %v728_v60  ;;  %v608_v59 = vld [vmem:[%s3313_s7 + $0x838] sm:$0xff]  ;;  %v642_v60 = vld [vmem:[%s3313_s7 + $0x948] sm:$0xff]  ;;  %v1733_v2 = vadd.f32 %v1732_v58, %v1713_v55 }
 0x1b4   : > { %2177 = vmatpush.msra.mxu0 %v628_v0  ;;  %2196 = vmatpush.msra.mxu1 %v662_v1  ;;  %v672_v61 = vld [vmem:[%s3313_s7 + $0xa38] sm:$0xff]  ;;  %v706_v62 = vld [vmem:[%s3313_s7 + $0xb48] sm:$0xff] }
 0x1b5   : > { %2217 = vmatpush.msra.mxu2 %v692_v3  ;;  %2236 = vmatpush.msra.mxu3 %v726_v4  ;;  %v606_v0 = vld [vmem:[%s3313_s7 + $0x828] sm:$0xff]  ;;  %v640_v1 = vld [vmem:[%s3313_s7 + $0x938] sm:$0xff]  ;;  %v1753_v7 = vadd.f32 %v1752_v63, %v1733_v2 }
 0x1b6   : > { %2178 = vmatpush.msra.mxu0 %v626_v5  ;;  %2197 = vmatpush.msra.mxu1 %v660_v6  ;;  %v670_v3 = vld [vmem:[%s3313_s7 + $0xa28] sm:$0xff]  ;;  %v704_v4 = vld [vmem:[%s3313_s7 + $0xb38] sm:$0xff] }
 0x1b7   : > { %2218 = vmatpush.msra.mxu2 %v690_v8  ;;  %2237 = vmatpush.msra.mxu3 %v724_v9  ;;  %v604_v5 = vld [vmem:[%s3313_s7 + $0x818] sm:$0xff]  ;;  %v638_v6 = vld [vmem:[%s3313_s7 + $0x928] sm:$0xff]  ;;  %v1773_v16 = vadd.f32 %v1772_v10, %v1753_v7  ;;  %v1852_v42 = vpop.f32.mrf.mxu3 }
 0x1b8   : > { %2151 = vmatmul.f32.vlgmr.msrb.gmra.mxu2 %v2905_v17  ;;  %2179 = vmatpush.msra.mxu0 %v624_v11  ;;  %v668_v8 = vld [vmem:[%s3313_s7 + $0xa18] sm:$0xff]  ;;  %v702_v9 = vld [vmem:[%s3313_s7 + $0xb28] sm:$0xff] }
 0x1b9   : > { %2198 = vmatpush.msra.mxu1 %v658_v12  ;;  %2219 = vmatpush.msra.mxu2 %v688_v13  ;;  %v602_v11 = vld [vmem:[%s3313_s7 + $0x808] sm:$0xff]  ;;  %v636_v12 = vld [vmem:[%s3313_s7 + $0x918] sm:$0xff] }
 0x1ba   : > { %2238 = vmatpush.msra.mxu3 %v722_v15  ;;  %2111 = vmatmul.f32.vlgmr.msrb.gmra.mxu0 %v2906_v22  ;;  %v666_v13 = vld [vmem:[%s3313_s7 + $0xa08] sm:$0xff]  ;;  %v700_v14 = vld [vmem:[%s3313_s7 + $0xb18] sm:$0xff]  ;;  %v1792_v15 = vpop.f32.mrf.mxu0  ;;  %v2909_v22 = vld [vmem:[#allocation2 + $0x40] sm:$0xff]  ;;  %v1812_v24 = vpop.f32.mrf.mxu1 }
 0x1bb   : > { %2171 = vmatmul.f32.vlgmr.msrb.gmra.mxu3 %v2907_v25  ;;  %2180 = vmatpush.msra.mxu0 %v622_v18  ;;  %v760_v17 = vld [vmem:[%s3313_s7 + $0xcf8] sm:$0xff]  ;;  %v1793_v21 = vadd.f32 %v1792_v15, %v1773_v16  ;;  %v758_v25 = vld [vmem:[%s3313_s7 + $0xce8] sm:$0xff] }
 0x1bc   : > { %2199 = vmatpush.msra.mxu1 %v656_v19  ;;  %2220 = vmatpush.msra.mxu2 %v686_v20  ;;  %v824_v18 = vld [vmem:[%s3313_s7 + $0xef8] sm:$0xff]  ;;  %v634_v19 = vld [vmem:[%s3313_s7 + $0x908] sm:$0xff] }
 0x1bd   : > { %2239 = vmatpush.msra.mxu3 %v720_v23  ;;  %2131 = vmatmul.f32.vlgmr.msrb.gmra.mxu1 %v2908_v31  ;;  %v698_v20 = vld [vmem:[%s3313_s7 + $0xb08] sm:$0xff]  ;;  %v2910_v23 = vld [vmem:[#allocation2 + $0x50] sm:$0xff]  ;;  %v2912_v31 = vld [vmem:[#allocation2 + $0x58] sm:$0xff]  ;;  %v1813_v34 = vadd.f32 %v1812_v24, %v1793_v21 }
 0x1be   : > { %2181 = vmatpush.msra.mxu0 %v620_v26  ;;  %2200 = vmatpush.msra.mxu1 %v654_v27  ;;  %v792_v26 = vld [vmem:[%s3313_s7 + $0xdf8] sm:$0xff]  ;;  %v822_v27 = vld [vmem:[%s3313_s7 + $0xee8] sm:$0xff] }
 0x1bf   : > { %2221 = vmatpush.msra.mxu2 %v684_v28  ;;  %2240 = vmatpush.msra.mxu3 %v718_v29  ;;  %v856_v28 = vld [vmem:[%s3313_s7 + $0xff8] sm:$0xff]  ;;  %v1832_v29 = vpop.f32.mrf.mxu2  ;;  %v2911_v30 = vld [vmem:[#allocation2 + $0x48] sm:$0xff] }
 0x1c0   : > { %2182 = vmatpush.msra.mxu0 %v618_v32  ;;  %2201 = vmatpush.msra.mxu1 %v652_v33  ;;  %v756_v32 = vld [vmem:[%s3313_s7 + $0xcd8] sm:$0xff]  ;;  %v790_v33 = vld [vmem:[%s3313_s7 + $0xde8] sm:$0xff]  ;;  %v1833_v39 = vadd.f32 %v1832_v29, %v1813_v34 }
 0x1c1   : > { %2222 = vmatpush.msra.mxu2 %v682_v35  ;;  %2241 = vmatpush.msra.mxu3 %v716_v36  ;;  %v820_v35 = vld [vmem:[%s3313_s7 + $0xed8] sm:$0xff]  ;;  %v854_v36 = vld [vmem:[%s3313_s7 + $0xfe8] sm:$0xff] }
 0x1c2   : > { %2183 = vmatpush.msra.mxu0 %v616_v37  ;;  %2202 = vmatpush.msra.mxu1 %v650_v38  ;;  %v754_v37 = vld [vmem:[%s3313_s7 + $0xcc8] sm:$0xff]  ;;  %v788_v38 = vld [vmem:[%s3313_s7 + $0xdd8] sm:$0xff]  ;;  %v1853_v50 = vadd.f32 %v1852_v42, %v1833_v39 }
 0x1c3   : > { %2223 = vmatpush.msra.mxu2 %v680_v40  ;;  %2242 = vmatpush.msra.mxu3 %v714_v41  ;;  %v818_v40 = vld [vmem:[%s3313_s7 + $0xec8] sm:$0xff]  ;;  %v852_v41 = vld [vmem:[%s3313_s7 + $0xfd8] sm:$0xff] }
 0x1c4   : > { %2184 = vmatpush.msra.mxu0 %v614_v43  ;;  %2203 = vmatpush.msra.mxu1 %v648_v44  ;;  %v752_v43 = vld [vmem:[%s3313_s7 + $0xcb8] sm:$0xff]  ;;  %v786_v44 = vld [vmem:[%s3313_s7 + $0xdc8] sm:$0xff] }
 0x1c5   : > { %2224 = vmatpush.msra.mxu2 %v678_v45  ;;  %2243 = vmatpush.msra.mxu3 %v712_v46  ;;  %v816_v45 = vld [vmem:[%s3313_s7 + $0xeb8] sm:$0xff]  ;;  %v850_v46 = vld [vmem:[%s3313_s7 + $0xfc8] sm:$0xff] }
 0x1c6   : > { %2185 = vmatpush.msra.mxu0 %v612_v48  ;;  %2204 = vmatpush.msra.mxu1 %v646_v49  ;;  %v750_v48 = vld [vmem:[%s3313_s7 + $0xca8] sm:$0xff]  ;;  %v784_v49 = vld [vmem:[%s3313_s7 + $0xdb8] sm:$0xff] }
 0x1c7   : > { %2225 = vmatpush.msra.mxu2 %v676_v51  ;;  %2244 = vmatpush.msra.mxu3 %v710_v52  ;;  %v1872_v47 = vpop.f32.mrf.mxu0  ;;  %v814_v51 = vld [vmem:[%s3313_s7 + $0xea8] sm:$0xff]  ;;  %v848_v52 = vld [vmem:[%s3313_s7 + $0xfb8] sm:$0xff] }
 0x1c8   : > { %2186 = vmatpush.msra.mxu0 %v610_v53  ;;  %2205 = vmatpush.msra.mxu1 %v644_v54  ;;  %v748_v53 = vld [vmem:[%s3313_s7 + $0xc98] sm:$0xff]  ;;  %v782_v54 = vld [vmem:[%s3313_s7 + $0xda8] sm:$0xff]  ;;  %v1873_v55 = vadd.f32 %v1872_v47, %v1853_v50 }
 0x1c9   : > { %2226 = vmatpush.msra.mxu2 %v674_v56  ;;  %2245 = vmatpush.msra.mxu3 %v708_v57  ;;  %v812_v56 = vld [vmem:[%s3313_s7 + $0xe98] sm:$0xff]  ;;  %v846_v57 = vld [vmem:[%s3313_s7 + $0xfa8] sm:$0xff] }
 0x1ca   : > { %2187 = vmatpush.msra.mxu0 %v608_v59  ;;  %2206 = vmatpush.msra.mxu1 %v642_v60  ;;  %v1892_v58 = vpop.f32.mrf.mxu1  ;;  %v746_v59 = vld [vmem:[%s3313_s7 + $0xc88] sm:$0xff]  ;;  %v780_v60 = vld [vmem:[%s3313_s7 + $0xd98] sm:$0xff] }
 0x1cb   : > { %2227 = vmatpush.msra.mxu2 %v672_v61  ;;  %2246 = vmatpush.msra.mxu3 %v706_v62  ;;  %v810_v61 = vld [vmem:[%s3313_s7 + $0xe88] sm:$0xff]  ;;  %v844_v62 = vld [vmem:[%s3313_s7 + $0xf98] sm:$0xff]  ;;  %v1893_v2 = vadd.f32 %v1892_v58, %v1873_v55 }
 0x1cc   : > { %2188 = vmatpush.msra.mxu0 %v606_v0  ;;  %2207 = vmatpush.msra.mxu1 %v640_v1  ;;  %v744_v0 = vld [vmem:[%s3313_s7 + $0xc78] sm:$0xff]  ;;  %v778_v1 = vld [vmem:[%s3313_s7 + $0xd88] sm:$0xff] }
 0x1cd   : > { %2228 = vmatpush.msra.mxu2 %v670_v3  ;;  %2247 = vmatpush.msra.mxu3 %v704_v4  ;;  %v1912_v63 = vpop.f32.mrf.mxu2  ;;  %v808_v3 = vld [vmem:[%s3313_s7 + $0xe78] sm:$0xff]  ;;  %v842_v4 = vld [vmem:[%s3313_s7 + $0xf88] sm:$0xff] }
 0x1ce   : > { %2189 = vmatpush.msra.mxu0 %v604_v5  ;;  %2208 = vmatpush.msra.mxu1 %v638_v6  ;;  %v742_v5 = vld [vmem:[%s3313_s7 + $0xc68] sm:$0xff]  ;;  %v776_v6 = vld [vmem:[%s3313_s7 + $0xd78] sm:$0xff]  ;;  %v1913_v7 = vadd.f32 %v1912_v63, %v1893_v2 }
 0x1cf   : > { %2229 = vmatpush.msra.mxu2 %v668_v8  ;;  %2248 = vmatpush.msra.mxu3 %v702_v9  ;;  %v806_v8 = vld [vmem:[%s3313_s7 + $0xe68] sm:$0xff]  ;;  %v840_v9 = vld [vmem:[%s3313_s7 + $0xf78] sm:$0xff] }
 0x1d0   : > { %2190 = vmatpush.msra.mxu0 %v602_v11  ;;  %2209 = vmatpush.msra.mxu1 %v636_v12  ;;  %v1932_v10 = vpop.f32.mrf.mxu3  ;;  %v740_v11 = vld [vmem:[%s3313_s7 + $0xc58] sm:$0xff]  ;;  %v774_v12 = vld [vmem:[%s3313_s7 + $0xd68] sm:$0xff] }
 0x1d1   : > { %2230 = vmatpush.msra.mxu2 %v666_v13  ;;  %2249 = vmatpush.msra.mxu3 %v700_v14  ;;  %v804_v13 = vld [vmem:[%s3313_s7 + $0xe58] sm:$0xff]  ;;  %v838_v14 = vld [vmem:[%s3313_s7 + $0xf68] sm:$0xff] }
 0x1d2   : > { %2191 = vmatmul.f32.vlgmr.msra.gmra.mxu0 %v2909_v22  ;;  %2231 = vmatmul.f32.vlgmr.msra.gmra.mxu2 %v2910_v23  ;;  %v738_v15 = vld [vmem:[%s3313_s7 + $0xc48] sm:$0xff]  ;;  %v772_v16 = vld [vmem:[%s3313_s7 + $0xd58] sm:$0xff] }
 0x1d3   : > { %2255 = vmatpush.msrb.mxu0 %v760_v17  ;;  %2295 = vmatpush.msrb.mxu2 %v824_v18  ;;  %v1933_v17 = vadd.f32 %v1932_v10, %v1913_v7  ;;  %v802_v18 = vld [vmem:[%s3313_s7 + $0xe48] sm:$0xff]  ;;  %v800_v23 = vld [vmem:[%s3313_s7 + $0xe38] sm:$0xff] }
 0x1d4   : > { %2210 = vmatpush.msra.mxu1 %v634_v19  ;;  %2250 = vmatpush.msra.mxu3 %v698_v20  ;;  %v836_v19 = vld [vmem:[%s3313_s7 + $0xf58] sm:$0xff]  ;;  %v770_v21 = vld [vmem:[%s3313_s7 + $0xd48] sm:$0xff] }
 0x1d5   : > { %2211 = vmatmul.f32.vlgmr.msra.gmra.mxu1 %v2911_v30  ;;  %2251 = vmatmul.f32.vlgmr.msra.gmra.mxu3 %v2912_v31  ;;  %v736_v20 = vld [vmem:[%s3313_s7 + $0xc38] sm:$0xff]  ;;  %v834_v24 = vld [vmem:[%s3313_s7 + $0xf48] sm:$0xff] }
 0x1d6   : > { %2256 = vmatpush.msrb.mxu0 %v758_v25  ;;  %2275 = vmatpush.msrb.mxu1 %v792_v26  ;;  %v734_v26 = vld [vmem:[%s3313_s7 + $0xc28] sm:$0xff]  ;;  %v832_v29 = vld [vmem:[%s3313_s7 + $0xf38] sm:$0xff] }
 0x1d7   : > { %2296 = vmatpush.msrb.mxu2 %v822_v27  ;;  %2315 = vmatpush.msrb.mxu3 %v856_v28  ;;  %v768_v27 = vld [vmem:[%s3313_s7 + $0xd38] sm:$0xff]  ;;  %v798_v28 = vld [vmem:[%s3313_s7 + $0xe28] sm:$0xff] }
 0x1d8   : > { %2257 = vmatpush.msrb.mxu0 %v756_v32  ;;  %2276 = vmatpush.msrb.mxu1 %v790_v33  ;;  %v732_v31 = vld [vmem:[%s3313_s7 + $0xc18] sm:$0xff]  ;;  %v766_v32 = vld [vmem:[%s3313_s7 + $0xd28] sm:$0xff] }
 0x1d9   : > { %2297 = vmatpush.msrb.mxu2 %v820_v35  ;;  %2316 = vmatpush.msrb.mxu3 %v854_v36  ;;  %v796_v33 = vld [vmem:[%s3313_s7 + $0xe18] sm:$0xff]  ;;  %v830_v34 = vld [vmem:[%s3313_s7 + $0xf28] sm:$0xff] }
 0x1da   : > { %2258 = vmatpush.msrb.mxu0 %v754_v37  ;;  %2277 = vmatpush.msrb.mxu1 %v788_v38  ;;  %v730_v36 = vld [vmem:[%s3313_s7 + $0xc08] sm:$0xff]  ;;  %v764_v37 = vld [vmem:[%s3313_s7 + $0xd18] sm:$0xff] }
 0x1db   : > { %2298 = vmatpush.msrb.mxu2 %v818_v40  ;;  %2317 = vmatpush.msrb.mxu3 %v852_v41  ;;  %v794_v39 = vld [vmem:[%s3313_s7 + $0xe08] sm:$0xff]  ;;  %v828_v40 = vld [vmem:[%s3313_s7 + $0xf18] sm:$0xff] }
 0x1dc   : > { %2259 = vmatpush.msrb.mxu0 %v752_v43  ;;  %2278 = vmatpush.msrb.mxu1 %v786_v44  ;;  %v888_v42 = vld [vmem:[%s3313_s7 + $0x10f8] sm:$0xff]  ;;  %v882_v63 = vld [vmem:[%s3313_s7 + $0x10c8] sm:$0xff] }
 0x1dd   : > { %2299 = vmatpush.msrb.mxu2 %v816_v45  ;;  %2318 = vmatpush.msrb.mxu3 %v850_v46  ;;  %v952_v43 = vld [vmem:[%s3313_s7 + $0x12f8] sm:$0xff]  ;;  %v762_v45 = vld [vmem:[%s3313_s7 + $0xd08] sm:$0xff] }
 0x1de   : > { %2260 = vmatpush.msrb.mxu0 %v750_v48  ;;  %2279 = vmatpush.msrb.mxu1 %v784_v49  ;;  %v826_v46 = vld [vmem:[%s3313_s7 + $0xf08] sm:$0xff]  ;;  %v2913_v48 = vld [vmem:[#allocation2 + $0x60] sm:$0xff]  ;;  %v2914_v49 = vld [vmem:[#allocation2 + $0x70] sm:$0xff] }
 0x1df   : > { %2300 = vmatpush.msrb.mxu2 %v814_v51  ;;  %2319 = vmatpush.msrb.mxu3 %v848_v52  ;;  %v2657_v50 = vld [vmem:[%s3326_s26] sm:$0xff] }
 0x1e0   : > { %2261 = vmatpush.msrb.mxu0 %v748_v53  ;;  %2280 = vmatpush.msrb.mxu1 %v782_v54  ;;  %v886_v51 = vld [vmem:[%s3313_s7 + $0x10e8] sm:$0xff]  ;;  %v920_v52 = vld [vmem:[%s3313_s7 + $0x11f8] sm:$0xff] }
 0x1e1   : > { %2301 = vmatpush.msrb.mxu2 %v812_v56  ;;  %2320 = vmatpush.msrb.mxu3 %v846_v57  ;;  %v950_v54 = vld [vmem:[%s3313_s7 + $0x12e8] sm:$0xff]  ;;  %v984_v55 = vld [vmem:[%s3313_s7 + $0x13f8] sm:$0xff] }
 0x1e2   : > { %2262 = vmatpush.msrb.mxu0 %v746_v59  ;;  %2281 = vmatpush.msrb.mxu1 %v780_v60  ;;  %v2915_v56 = vld [vmem:[#allocation2 + $0x68] sm:$0xff]  ;;  %v2916_v57 = vld [vmem:[#allocation2 + $0x78] sm:$0xff] }
 0x1e3   : > { %2302 = vmatpush.msrb.mxu2 %v810_v61  ;;  %2321 = vmatpush.msrb.mxu3 %v844_v62  ;;  %v884_v58 = vld [vmem:[%s3313_s7 + $0x10d8] sm:$0xff]  ;;  %v918_v59 = vld [vmem:[%s3313_s7 + $0x11e8] sm:$0xff] }
 0x1e4   : > { %2263 = vmatpush.msrb.mxu0 %v744_v0  ;;  %2282 = vmatpush.msrb.mxu1 %v778_v1  ;;  %v948_v61 = vld [vmem:[%s3313_s7 + $0x12d8] sm:$0xff]  ;;  %v982_v62 = vld [vmem:[%s3313_s7 + $0x13e8] sm:$0xff] }
 0x1e5   : > { %2303 = vmatpush.msrb.mxu2 %v808_v3  ;;  %2322 = vmatpush.msrb.mxu3 %v842_v4  ;;  %v916_v0 = vld [vmem:[%s3313_s7 + $0x11d8] sm:$0xff]  ;;  %v946_v1 = vld [vmem:[%s3313_s7 + $0x12c8] sm:$0xff] }
 0x1e6   : > { %2264 = vmatpush.msrb.mxu0 %v742_v5  ;;  %2283 = vmatpush.msrb.mxu1 %v776_v6  ;;  %v980_v2 = vld [vmem:[%s3313_s7 + $0x13d8] sm:$0xff]  ;;  %v914_v4 = vld [vmem:[%s3313_s7 + $0x11c8] sm:$0xff] }
 0x1e7   : > { %2304 = vmatpush.msrb.mxu2 %v806_v8  ;;  %2323 = vmatpush.msrb.mxu3 %v840_v9  ;;  %v880_v3 = vld [vmem:[%s3313_s7 + $0x10b8] sm:$0xff]  ;;  %v978_v6 = vld [vmem:[%s3313_s7 + $0x13c8] sm:$0xff] }
 0x1e8   : > { %2265 = vmatpush.msrb.mxu0 %v740_v11  ;;  %2284 = vmatpush.msrb.mxu1 %v774_v12  ;;  %v944_v5 = vld [vmem:[%s3313_s7 + $0x12b8] sm:$0xff]  ;;  %v878_v7 = vld [vmem:[%s3313_s7 + $0x10a8] sm:$0xff] }
 0x1e9   : > { %2305 = vmatpush.msrb.mxu2 %v804_v13  ;;  %2324 = vmatpush.msrb.mxu3 %v838_v14  ;;  %v1952_v22 = vpop.f32.mrf.mxu0  ;;  %v912_v8 = vld [vmem:[%s3313_s7 + $0x11b8] sm:$0xff]  ;;  %v942_v9 = vld [vmem:[%s3313_s7 + $0x12a8] sm:$0xff] }
 0x1ea   : > { %2266 = vmatpush.msrb.mxu0 %v738_v15  ;;  %2285 = vmatpush.msrb.mxu1 %v772_v16  ;;  %v1953_v25 = vadd.f32 %v1952_v22, %v1933_v17  ;;  %v976_v10 = vld [vmem:[%s3313_s7 + $0x13b8] sm:$0xff]  ;;  %v910_v12 = vld [vmem:[%s3313_s7 + $0x11a8] sm:$0xff] }
 0x1eb   : > { %2306 = vmatpush.msrb.mxu2 %v802_v18  ;;  %2325 = vmatpush.msrb.mxu3 %v836_v19  ;;  %v876_v11 = vld [vmem:[%s3313_s7 + $0x1098] sm:$0xff]  ;;  %v974_v14 = vld [vmem:[%s3313_s7 + $0x13a8] sm:$0xff] }
 0x1ec   : > { %2267 = vmatpush.msrb.mxu0 %v736_v20  ;;  %2286 = vmatpush.msrb.mxu1 %v770_v21  ;;  %v1972_v30 = vpop.f32.mrf.mxu1  ;;  %v940_v13 = vld [vmem:[%s3313_s7 + $0x1298] sm:$0xff]  ;;  %v874_v15 = vld [vmem:[%s3313_s7 + $0x1088] sm:$0xff] }
 0x1ed   : > { %2307 = vmatpush.msrb.mxu2 %v800_v23  ;;  %2326 = vmatpush.msrb.mxu3 %v834_v24  ;;  %v1973_v35 = vadd.f32 %v1972_v30, %v1953_v25  ;;  %v908_v16 = vld [vmem:[%s3313_s7 + $0x1198] sm:$0xff]  ;;  %v938_v17 = vld [vmem:[%s3313_s7 + $0x1288] sm:$0xff] }
 0x1ee   : > { %2268 = vmatpush.msrb.mxu0 %v734_v26  ;;  %2287 = vmatpush.msrb.mxu1 %v768_v27  ;;  %v972_v18 = vld [vmem:[%s3313_s7 + $0x1398] sm:$0xff]  ;;  %v906_v20 = vld [vmem:[%s3313_s7 + $0x1188] sm:$0xff] }
 0x1ef   : > { %2308 = vmatpush.msrb.mxu2 %v798_v28  ;;  %2327 = vmatpush.msrb.mxu3 %v832_v29  ;;  %v1992_v38 = vpop.f32.mrf.mxu2  ;;  %v872_v19 = vld [vmem:[%s3313_s7 + $0x1078] sm:$0xff]  ;;  %v970_v22 = vld [vmem:[%s3313_s7 + $0x1388] sm:$0xff] }
 0x1f0   : > { %2269 = vmatpush.msrb.mxu0 %v732_v31  ;;  %2288 = vmatpush.msrb.mxu1 %v766_v32  ;;  %v1993_v41 = vadd.f32 %v1992_v38, %v1973_v35  ;;  %v936_v21 = vld [vmem:[%s3313_s7 + $0x1278] sm:$0xff]  ;;  %v870_v23 = vld [vmem:[%s3313_s7 + $0x1068] sm:$0xff] }
 0x1f1   : > { %2309 = vmatpush.msrb.mxu2 %v796_v33  ;;  %2328 = vmatpush.msrb.mxu3 %v830_v34  ;;  %v904_v24 = vld [vmem:[%s3313_s7 + $0x1178] sm:$0xff]  ;;  %v934_v25 = vld [vmem:[%s3313_s7 + $0x1268] sm:$0xff] }
 0x1f2   : > { %2270 = vmatpush.msrb.mxu0 %v730_v36  ;;  %2289 = vmatpush.msrb.mxu1 %v764_v37  ;;  %v2012_v44 = vpop.f32.mrf.mxu3  ;;  %v968_v26 = vld [vmem:[%s3313_s7 + $0x1378] sm:$0xff]  ;;  %v902_v28 = vld [vmem:[%s3313_s7 + $0x1168] sm:$0xff] }
 0x1f3   : > { %2310 = vmatpush.msrb.mxu2 %v794_v39  ;;  %2329 = vmatpush.msrb.mxu3 %v828_v40  ;;  %v2013_v47 = vadd.f32 %v2012_v44, %v1993_v41  ;;  %v868_v27 = vld [vmem:[%s3313_s7 + $0x1058] sm:$0xff]  ;;  %v966_v30 = vld [vmem:[%s3313_s7 + $0x1368] sm:$0xff] }
 0x1f4   : > { %2271 = vmatmul.f32.vlgmr.msrb.gmra.mxu0 %v2913_v48  ;;  %2311 = vmatmul.f32.vlgmr.msrb.gmra.mxu2 %v2914_v49  ;;  %v932_v29 = vld [vmem:[%s3313_s7 + $0x1258] sm:$0xff]  ;;  %v866_v31 = vld [vmem:[%s3313_s7 + $0x1048] sm:$0xff] }
 0x1f5   : > { %2335 = vmatpush.msra.mxu0 %v888_v42  ;;  %2375 = vmatpush.msra.mxu2 %v952_v43  ;;  %v2655_v53 = vmax.f32 %v2013_v47, 0.0  ;;  %v900_v32 = vld [vmem:[%s3313_s7 + $0x1158] sm:$0xff]  ;;  %v930_v33 = vld [vmem:[%s3313_s7 + $0x1248] sm:$0xff] }
 0x1f6   : > { %2290 = vmatpush.msrb.mxu1 %v762_v45  ;;  %2330 = vmatpush.msrb.mxu3 %v826_v46  ;;  %v964_v34 = vld [vmem:[%s3313_s7 + $0x1358] sm:$0xff]  ;;  %v898_v36 = vld [vmem:[%s3313_s7 + $0x1148] sm:$0xff] }
 0x1f7   : > { %2291 = vmatmul.f32.vlgmr.msrb.gmra.mxu1 %v2915_v56  ;;  %2331 = vmatmul.f32.vlgmr.msrb.gmra.mxu3 %v2916_v57  ;;  %v2659_v60 = vmul.f32 %v2657_v50, %v2655_v53  ;;  %v864_v35 = vld [vmem:[%s3313_s7 + $0x1038] sm:$0xff]  ;;  %v962_v38 = vld [vmem:[%s3313_s7 + $0x1348] sm:$0xff]  ;;  %v2918_v56 = vld [vmem:[#allocation2 + $0x90] sm:$0xff] }
 0x1f8   : > { %2336 = vmatpush.msra.mxu0 %v886_v51  ;;  %2355 = vmatpush.msra.mxu1 %v920_v52  ;;  %v928_v37 = vld [vmem:[%s3313_s7 + $0x1238] sm:$0xff]  ;;  %v862_v39 = vld [vmem:[%s3313_s7 + $0x1028] sm:$0xff] }
 0x1f9   : > { %2376 = vmatpush.msra.mxu2 %v950_v54  ;;  %2395 = vmatpush.msra.mxu3 %v984_v55  ;;  %2661 = vst [vmem:[%s4116_s29] sm:$0xff] %v2659_v60  ;;  %v896_v40 = vld [vmem:[%s3313_s7 + $0x1138] sm:$0xff]  ;;  %v926_v41 = vld [vmem:[%s3313_s7 + $0x1228] sm:$0xff]  ;;  %v2917_v55 = vld [vmem:[#allocation2 + $0x80] sm:$0xff] }
 0x1fa   : > { %2337 = vmatpush.msra.mxu0 %v884_v58  ;;  %2356 = vmatpush.msra.mxu1 %v918_v59  ;;  %v960_v42 = vld [vmem:[%s3313_s7 + $0x1338] sm:$0xff]  ;;  %v894_v44 = vld [vmem:[%s3313_s7 + $0x1128] sm:$0xff] }
 0x1fb   : > { %2377 = vmatpush.msra.mxu2 %v948_v61  ;;  %2396 = vmatpush.msra.mxu3 %v982_v62  ;;  %v860_v43 = vld [vmem:[%s3313_s7 + $0x1018] sm:$0xff]  ;;  %v958_v46 = vld [vmem:[%s3313_s7 + $0x1328] sm:$0xff] }
 0x1fc   : > { %2338 = vmatpush.msra.mxu0 %v882_v63  ;;  %2357 = vmatpush.msra.mxu1 %v916_v0  ;;  %v924_v45 = vld [vmem:[%s3313_s7 + $0x1218] sm:$0xff]  ;;  %v858_v47 = vld [vmem:[%s3313_s7 + $0x1008] sm:$0xff] }
 0x1fd   : > { %2378 = vmatpush.msra.mxu2 %v946_v1  ;;  %2397 = vmatpush.msra.mxu3 %v980_v2  ;;  %v892_v48 = vld [vmem:[%s3313_s7 + $0x1118] sm:$0xff]  ;;  %v922_v49 = vld [vmem:[%s3313_s7 + $0x1208] sm:$0xff] }
 0x1fe   : > { %2339 = vmatpush.msra.mxu0 %v880_v3  ;;  %2358 = vmatpush.msra.mxu1 %v914_v4  ;;  %v956_v50 = vld [vmem:[%s3313_s7 + $0x1318] sm:$0xff]  ;;  %v890_v53 = vld [vmem:[%s3313_s7 + $0x1108] sm:$0xff] }
 0x1ff   : > { %2379 = vmatpush.msra.mxu2 %v944_v5  ;;  %2398 = vmatpush.msra.mxu3 %v978_v6  ;;  %v1016_v51 = vld [vmem:[%s3313_s7 + $0x14f8] sm:$0xff]  ;;  %v954_v54 = vld [vmem:[%s3313_s7 + $0x1308] sm:$0xff] }
 0x200   : > { %2340 = vmatpush.msra.mxu0 %v878_v7  ;;  %2359 = vmatpush.msra.mxu1 %v912_v8  ;;  %v1080_v52 = vld [vmem:[%s3313_s7 + $0x16f8] sm:$0xff]  ;;  %v1014_v57 = vld [vmem:[%s3313_s7 + $0x14e8] sm:$0xff] }
 0x201   : > { %2380 = vmatpush.msra.mxu2 %v942_v9  ;;  %2399 = vmatpush.msra.mxu3 %v976_v10  ;;  %v1048_v58 = vld [vmem:[%s3313_s7 + $0x15f8] sm:$0xff]  ;;  %v1078_v59 = vld [vmem:[%s3313_s7 + $0x16e8] sm:$0xff] }
 0x202   : > { %2341 = vmatpush.msra.mxu0 %v876_v11  ;;  %2360 = vmatpush.msra.mxu1 %v910_v12  ;;  %v1112_v60 = vld [vmem:[%s3313_s7 + $0x17f8] sm:$0xff]  ;;  %v2919_v61 = vld [vmem:[#allocation2 + $0x88] sm:$0xff] }
 0x203   : > { %2381 = vmatpush.msra.mxu2 %v940_v13  ;;  %2400 = vmatpush.msra.mxu3 %v974_v14  ;;  %v2920_v62 = vld [vmem:[#allocation2 + $0x98] sm:$0xff]  ;;  %v1046_v0 = vld [vmem:[%s3313_s7 + $0x15e8] sm:$0xff] }
 0x204   : > { %2342 = vmatpush.msra.mxu0 %v874_v15  ;;  %2361 = vmatpush.msra.mxu1 %v908_v16  ;;  %v1012_v63 = vld [vmem:[%s3313_s7 + $0x14d8] sm:$0xff]  ;;  %v1110_v2 = vld [vmem:[%s3313_s7 + $0x17e8] sm:$0xff] }
 0x205   : > { %2382 = vmatpush.msra.mxu2 %v938_v17  ;;  %2401 = vmatpush.msra.mxu3 %v972_v18  ;;  %v1076_v1 = vld [vmem:[%s3313_s7 + $0x16d8] sm:$0xff]  ;;  %v1010_v3 = vld [vmem:[%s3313_s7 + $0x14c8] sm:$0xff] }
 0x206   : > { %2343 = vmatpush.msra.mxu0 %v872_v19  ;;  %2362 = vmatpush.msra.mxu1 %v906_v20  ;;  %v1044_v4 = vld [vmem:[%s3313_s7 + $0x15d8] sm:$0xff]  ;;  %v1074_v5 = vld [vmem:[%s3313_s7 + $0x16c8] sm:$0xff] }
 0x207   : > { %2383 = vmatpush.msra.mxu2 %v936_v21  ;;  %2402 = vmatpush.msra.mxu3 %v970_v22  ;;  %v1108_v6 = vld [vmem:[%s3313_s7 + $0x17d8] sm:$0xff]  ;;  %v1042_v8 = vld [vmem:[%s3313_s7 + $0x15c8] sm:$0xff] }
 0x208   : > { %2344 = vmatpush.msra.mxu0 %v870_v23  ;;  %2363 = vmatpush.msra.mxu1 %v904_v24  ;;  %v1008_v7 = vld [vmem:[%s3313_s7 + $0x14b8] sm:$0xff]  ;;  %v1106_v10 = vld [vmem:[%s3313_s7 + $0x17c8] sm:$0xff] }
 0x209   : > { %2384 = vmatpush.msra.mxu2 %v934_v25  ;;  %2403 = vmatpush.msra.mxu3 %v968_v26  ;;  %v1072_v9 = vld [vmem:[%s3313_s7 + $0x16b8] sm:$0xff]  ;;  %v1006_v11 = vld [vmem:[%s3313_s7 + $0x14a8] sm:$0xff] }
 0x20a   : > { %2345 = vmatpush.msra.mxu0 %v868_v27  ;;  %2364 = vmatpush.msra.mxu1 %v902_v28  ;;  %v1040_v12 = vld [vmem:[%s3313_s7 + $0x15b8] sm:$0xff]  ;;  %v1070_v13 = vld [vmem:[%s3313_s7 + $0x16a8] sm:$0xff] }
 0x20b   : > { %2385 = vmatpush.msra.mxu2 %v932_v29  ;;  %2404 = vmatpush.msra.mxu3 %v966_v30  ;;  %v1104_v14 = vld [vmem:[%s3313_s7 + $0x17b8] sm:$0xff]  ;;  %v1038_v16 = vld [vmem:[%s3313_s7 + $0x15a8] sm:$0xff] }
 0x20c   : > { %2346 = vmatpush.msra.mxu0 %v866_v31  ;;  %2365 = vmatpush.msra.mxu1 %v900_v32  ;;  %v1004_v15 = vld [vmem:[%s3313_s7 + $0x1498] sm:$0xff]  ;;  %v1102_v18 = vld [vmem:[%s3313_s7 + $0x17a8] sm:$0xff] }
 0x20d   : > { %2386 = vmatpush.msra.mxu2 %v930_v33  ;;  %2405 = vmatpush.msra.mxu3 %v964_v34  ;;  %v1068_v17 = vld [vmem:[%s3313_s7 + $0x1698] sm:$0xff]  ;;  %v1002_v19 = vld [vmem:[%s3313_s7 + $0x1488] sm:$0xff] }
 0x20e   : > { %2347 = vmatpush.msra.mxu0 %v864_v35  ;;  %2366 = vmatpush.msra.mxu1 %v898_v36  ;;  %v1036_v20 = vld [vmem:[%s3313_s7 + $0x1598] sm:$0xff]  ;;  %v1066_v21 = vld [vmem:[%s3313_s7 + $0x1688] sm:$0xff] }
 0x20f   : > { %2387 = vmatpush.msra.mxu2 %v928_v37  ;;  %2406 = vmatpush.msra.mxu3 %v962_v38  ;;  %v1100_v22 = vld [vmem:[%s3313_s7 + $0x1798] sm:$0xff]  ;;  %v1034_v24 = vld [vmem:[%s3313_s7 + $0x1588] sm:$0xff] }
 0x210   : > { %2348 = vmatpush.msra.mxu0 %v862_v39  ;;  %2367 = vmatpush.msra.mxu1 %v896_v40  ;;  %v1000_v23 = vld [vmem:[%s3313_s7 + $0x1478] sm:$0xff]  ;;  %v1098_v26 = vld [vmem:[%s3313_s7 + $0x1788] sm:$0xff] }
 0x211   : > { %2388 = vmatpush.msra.mxu2 %v926_v41  ;;  %2407 = vmatpush.msra.mxu3 %v960_v42  ;;  %v1064_v25 = vld [vmem:[%s3313_s7 + $0x1678] sm:$0xff]  ;;  %v998_v27 = vld [vmem:[%s3313_s7 + $0x1468] sm:$0xff] }
 0x212   : > { %2349 = vmatpush.msra.mxu0 %v860_v43  ;;  %2368 = vmatpush.msra.mxu1 %v894_v44  ;;  %v1032_v28 = vld [vmem:[%s3313_s7 + $0x1578] sm:$0xff]  ;;  %v1062_v29 = vld [vmem:[%s3313_s7 + $0x1668] sm:$0xff] }
 0x213   : > { %2389 = vmatpush.msra.mxu2 %v924_v45  ;;  %2408 = vmatpush.msra.mxu3 %v958_v46  ;;  %v1096_v30 = vld [vmem:[%s3313_s7 + $0x1778] sm:$0xff]  ;;  %v1030_v32 = vld [vmem:[%s3313_s7 + $0x1568] sm:$0xff] }
 0x214   : > { %2350 = vmatpush.msra.mxu0 %v858_v47  ;;  %2369 = vmatpush.msra.mxu1 %v892_v48  ;;  %v996_v31 = vld [vmem:[%s3313_s7 + $0x1458] sm:$0xff]  ;;  %v1094_v34 = vld [vmem:[%s3313_s7 + $0x1768] sm:$0xff] }
 0x215   : > { %2390 = vmatpush.msra.mxu2 %v922_v49  ;;  %2409 = vmatpush.msra.mxu3 %v956_v50  ;;  %v1060_v33 = vld [vmem:[%s3313_s7 + $0x1658] sm:$0xff]  ;;  %v994_v35 = vld [vmem:[%s3313_s7 + $0x1448] sm:$0xff] }
 0x216   : > { %2351 = vmatmul.f32.vlgmr.msra.gmra.mxu0 %v2917_v55  ;;  %2391 = vmatmul.f32.vlgmr.msra.gmra.mxu2 %v2918_v56  ;;  %v1028_v36 = vld [vmem:[%s3313_s7 + $0x1558] sm:$0xff]  ;;  %v1058_v37 = vld [vmem:[%s3313_s7 + $0x1648] sm:$0xff] }
 0x217   : > { %2415 = vmatpush.msrb.mxu0 %v1016_v51  ;;  %2455 = vmatpush.msrb.mxu2 %v1080_v52  ;;  %v1092_v38 = vld [vmem:[%s3313_s7 + $0x1758] sm:$0xff]  ;;  %v1026_v40 = vld [vmem:[%s3313_s7 + $0x1548] sm:$0xff] }
 0x218   : > { %2370 = vmatpush.msra.mxu1 %v890_v53  ;;  %2410 = vmatpush.msra.mxu3 %v954_v54  ;;  %v992_v39 = vld [vmem:[%s3313_s7 + $0x1438] sm:$0xff]  ;;  %v1090_v42 = vld [vmem:[%s3313_s7 + $0x1748] sm:$0xff] }
 0x219   : > { %2371 = vmatmul.f32.vlgmr.msra.gmra.mxu1 %v2919_v61  ;;  %2411 = vmatmul.f32.vlgmr.msra.gmra.mxu3 %v2920_v62  ;;  %v1056_v41 = vld [vmem:[%s3313_s7 + $0x1638] sm:$0xff]  ;;  %v990_v43 = vld [vmem:[%s3313_s7 + $0x1428] sm:$0xff] }
 0x21a   : > { %2416 = vmatpush.msrb.mxu0 %v1014_v57  ;;  %2435 = vmatpush.msrb.mxu1 %v1048_v58  ;;  %v1024_v44 = vld [vmem:[%s3313_s7 + $0x1538] sm:$0xff]  ;;  %v1054_v45 = vld [vmem:[%s3313_s7 + $0x1628] sm:$0xff] }
 0x21b   : > { %2456 = vmatpush.msrb.mxu2 %v1078_v59  ;;  %2475 = vmatpush.msrb.mxu3 %v1112_v60  ;;  %v1088_v46 = vld [vmem:[%s3313_s7 + $0x1738] sm:$0xff]  ;;  %v1022_v48 = vld [vmem:[%s3313_s7 + $0x1528] sm:$0xff]  ;;  %v2921_v59 = vld [vmem:[#allocation2 + $0xa0] sm:$0xff] }
 0x21c   : > { %2417 = vmatpush.msrb.mxu0 %v1012_v63  ;;  %2436 = vmatpush.msrb.mxu1 %v1046_v0  ;;  %v988_v47 = vld [vmem:[%s3313_s7 + $0x1418] sm:$0xff]  ;;  %v1086_v50 = vld [vmem:[%s3313_s7 + $0x1728] sm:$0xff]  ;;  %v2922_v60 = vld [vmem:[#allocation2 + $0xb0] sm:$0xff] }
 0x21d   : > { %2457 = vmatpush.msrb.mxu2 %v1076_v1  ;;  %2476 = vmatpush.msrb.mxu3 %v1110_v2  ;;  %v1052_v49 = vld [vmem:[%s3313_s7 + $0x1618] sm:$0xff]  ;;  %v986_v51 = vld [vmem:[%s3313_s7 + $0x1408] sm:$0xff] }
 0x21e   : > { %2418 = vmatpush.msrb.mxu0 %v1010_v3  ;;  %2437 = vmatpush.msrb.mxu1 %v1044_v4  ;;  %v1020_v52 = vld [vmem:[%s3313_s7 + $0x1518] sm:$0xff]  ;;  %v1050_v53 = vld [vmem:[%s3313_s7 + $0x1608] sm:$0xff] }
 0x21f   : > { %2458 = vmatpush.msrb.mxu2 %v1074_v5  ;;  %2477 = vmatpush.msrb.mxu3 %v1108_v6  ;;  %v1084_v54 = vld [vmem:[%s3313_s7 + $0x1718] sm:$0xff]  ;;  %v1018_v57 = vld [vmem:[%s3313_s7 + $0x1508] sm:$0xff] }
 0x220   : > { %2419 = vmatpush.msrb.mxu0 %v1008_v7  ;;  %2438 = vmatpush.msrb.mxu1 %v1042_v8  ;;  %v1144_v55 = vld [vmem:[%s3313_s7 + $0x18f8] sm:$0xff]  ;;  %v1082_v58 = vld [vmem:[%s3313_s7 + $0x1708] sm:$0xff] }
 0x221   : > { %2459 = vmatpush.msrb.mxu2 %v1072_v9  ;;  %2478 = vmatpush.msrb.mxu3 %v1106_v10  ;;  %v1208_v56 = vld [vmem:[%s3313_s7 + $0x1af8] sm:$0xff]  ;;  %v1142_v61 = vld [vmem:[%s3313_s7 + $0x18e8] sm:$0xff] }
 0x222   : > { %2420 = vmatpush.msrb.mxu0 %v1006_v11  ;;  %2439 = vmatpush.msrb.mxu1 %v1040_v12  ;;  %v1176_v62 = vld [vmem:[%s3313_s7 + $0x19f8] sm:$0xff]  ;;  %v1206_v63 = vld [vmem:[%s3313_s7 + $0x1ae8] sm:$0xff] }
 0x223   : > { %2460 = vmatpush.msrb.mxu2 %v1070_v13  ;;  %2479 = vmatpush.msrb.mxu3 %v1104_v14  ;;  %v1240_v0 = vld [vmem:[%s3313_s7 + $0x1bf8] sm:$0xff]  ;;  %v2923_v1 = vld [vmem:[#allocation2 + $0xa8] sm:$0xff] }
 0x224   : > { %2421 = vmatpush.msrb.mxu0 %v1004_v15  ;;  %2440 = vmatpush.msrb.mxu1 %v1038_v16  ;;  %v2924_v2 = vld [vmem:[#allocation2 + $0xb8] sm:$0xff]  ;;  %v1174_v4 = vld [vmem:[%s3313_s7 + $0x19e8] sm:$0xff] }
 0x225   : > { %2461 = vmatpush.msrb.mxu2 %v1068_v17  ;;  %2480 = vmatpush.msrb.mxu3 %v1102_v18  ;;  %v1140_v3 = vld [vmem:[%s3313_s7 + $0x18d8] sm:$0xff]  ;;  %v1238_v6 = vld [vmem:[%s3313_s7 + $0x1be8] sm:$0xff] }
 0x226   : > { %2422 = vmatpush.msrb.mxu0 %v1002_v19  ;;  %2441 = vmatpush.msrb.mxu1 %v1036_v20  ;;  %v1204_v5 = vld [vmem:[%s3313_s7 + $0x1ad8] sm:$0xff]  ;;  %v1138_v7 = vld [vmem:[%s3313_s7 + $0x18c8] sm:$0xff] }
 0x227   : > { %2462 = vmatpush.msrb.mxu2 %v1066_v21  ;;  %2481 = vmatpush.msrb.mxu3 %v1100_v22  ;;  %v1172_v8 = vld [vmem:[%s3313_s7 + $0x19d8] sm:$0xff]  ;;  %v1202_v9 = vld [vmem:[%s3313_s7 + $0x1ac8] sm:$0xff] }
 0x228   : > { %2423 = vmatpush.msrb.mxu0 %v1000_v23  ;;  %2442 = vmatpush.msrb.mxu1 %v1034_v24  ;;  %v1236_v10 = vld [vmem:[%s3313_s7 + $0x1bd8] sm:$0xff]  ;;  %v1170_v12 = vld [vmem:[%s3313_s7 + $0x19c8] sm:$0xff] }
 0x229   : > { %2463 = vmatpush.msrb.mxu2 %v1064_v25  ;;  %2482 = vmatpush.msrb.mxu3 %v1098_v26  ;;  %v1136_v11 = vld [vmem:[%s3313_s7 + $0x18b8] sm:$0xff]  ;;  %v1234_v14 = vld [vmem:[%s3313_s7 + $0x1bc8] sm:$0xff] }
 0x22a   : > { %2424 = vmatpush.msrb.mxu0 %v998_v27  ;;  %2443 = vmatpush.msrb.mxu1 %v1032_v28  ;;  %v1200_v13 = vld [vmem:[%s3313_s7 + $0x1ab8] sm:$0xff]  ;;  %v1134_v15 = vld [vmem:[%s3313_s7 + $0x18a8] sm:$0xff] }
 0x22b   : > { %2464 = vmatpush.msrb.mxu2 %v1062_v29  ;;  %2483 = vmatpush.msrb.mxu3 %v1096_v30  ;;  %v1168_v16 = vld [vmem:[%s3313_s7 + $0x19b8] sm:$0xff]  ;;  %v1198_v17 = vld [vmem:[%s3313_s7 + $0x1aa8] sm:$0xff] }
 0x22c   : > { %2425 = vmatpush.msrb.mxu0 %v996_v31  ;;  %2444 = vmatpush.msrb.mxu1 %v1030_v32  ;;  %v1232_v18 = vld [vmem:[%s3313_s7 + $0x1bb8] sm:$0xff]  ;;  %v1166_v20 = vld [vmem:[%s3313_s7 + $0x19a8] sm:$0xff] }
 0x22d   : > { %2465 = vmatpush.msrb.mxu2 %v1060_v33  ;;  %2484 = vmatpush.msrb.mxu3 %v1094_v34  ;;  %v1132_v19 = vld [vmem:[%s3313_s7 + $0x1898] sm:$0xff]  ;;  %v1230_v22 = vld [vmem:[%s3313_s7 + $0x1ba8] sm:$0xff] }
 0x22e   : > { %2426 = vmatpush.msrb.mxu0 %v994_v35  ;;  %2445 = vmatpush.msrb.mxu1 %v1028_v36  ;;  %v1196_v21 = vld [vmem:[%s3313_s7 + $0x1a98] sm:$0xff]  ;;  %v1130_v23 = vld [vmem:[%s3313_s7 + $0x1888] sm:$0xff] }
 0x22f   : > { %2466 = vmatpush.msrb.mxu2 %v1058_v37  ;;  %2485 = vmatpush.msrb.mxu3 %v1092_v38  ;;  %v1164_v24 = vld [vmem:[%s3313_s7 + $0x1998] sm:$0xff]  ;;  %v1194_v25 = vld [vmem:[%s3313_s7 + $0x1a88] sm:$0xff] }
 0x230   : > { %2427 = vmatpush.msrb.mxu0 %v992_v39  ;;  %2446 = vmatpush.msrb.mxu1 %v1026_v40  ;;  %v1228_v26 = vld [vmem:[%s3313_s7 + $0x1b98] sm:$0xff]  ;;  %v1162_v28 = vld [vmem:[%s3313_s7 + $0x1988] sm:$0xff] }
 0x231   : > { %2467 = vmatpush.msrb.mxu2 %v1056_v41  ;;  %2486 = vmatpush.msrb.mxu3 %v1090_v42  ;;  %v1128_v27 = vld [vmem:[%s3313_s7 + $0x1878] sm:$0xff]  ;;  %v1226_v30 = vld [vmem:[%s3313_s7 + $0x1b88] sm:$0xff] }
 0x232   : > { %2428 = vmatpush.msrb.mxu0 %v990_v43  ;;  %2447 = vmatpush.msrb.mxu1 %v1024_v44  ;;  %v1192_v29 = vld [vmem:[%s3313_s7 + $0x1a78] sm:$0xff]  ;;  %v1126_v31 = vld [vmem:[%s3313_s7 + $0x1868] sm:$0xff] }
 0x233   : > { %2468 = vmatpush.msrb.mxu2 %v1054_v45  ;;  %2487 = vmatpush.msrb.mxu3 %v1088_v46  ;;  %v1160_v32 = vld [vmem:[%s3313_s7 + $0x1978] sm:$0xff]  ;;  %v1190_v33 = vld [vmem:[%s3313_s7 + $0x1a68] sm:$0xff] }
 0x234   : > { %2429 = vmatpush.msrb.mxu0 %v988_v47  ;;  %2448 = vmatpush.msrb.mxu1 %v1022_v48  ;;  %v1224_v34 = vld [vmem:[%s3313_s7 + $0x1b78] sm:$0xff]  ;;  %v1158_v36 = vld [vmem:[%s3313_s7 + $0x1968] sm:$0xff] }
 0x235   : > { %2469 = vmatpush.msrb.mxu2 %v1052_v49  ;;  %2488 = vmatpush.msrb.mxu3 %v1086_v50  ;;  %v1124_v35 = vld [vmem:[%s3313_s7 + $0x1858] sm:$0xff]  ;;  %v1222_v38 = vld [vmem:[%s3313_s7 + $0x1b68] sm:$0xff] }
 0x236   : > { %2430 = vmatpush.msrb.mxu0 %v986_v51  ;;  %2449 = vmatpush.msrb.mxu1 %v1020_v52  ;;  %v1188_v37 = vld [vmem:[%s3313_s7 + $0x1a58] sm:$0xff]  ;;  %v1122_v39 = vld [vmem:[%s3313_s7 + $0x1848] sm:$0xff] }
 0x237   : > { %2470 = vmatpush.msrb.mxu2 %v1050_v53  ;;  %2489 = vmatpush.msrb.mxu3 %v1084_v54  ;;  %v1156_v40 = vld [vmem:[%s3313_s7 + $0x1958] sm:$0xff]  ;;  %v1186_v41 = vld [vmem:[%s3313_s7 + $0x1a48] sm:$0xff] }
 0x238   : > { %2431 = vmatmul.f32.vlgmr.msrb.gmra.mxu0 %v2921_v59  ;;  %2471 = vmatmul.f32.vlgmr.msrb.gmra.mxu2 %v2922_v60  ;;  %v1220_v42 = vld [vmem:[%s3313_s7 + $0x1b58] sm:$0xff]  ;;  %v1154_v44 = vld [vmem:[%s3313_s7 + $0x1948] sm:$0xff] }
 0x239   : > { %2495 = vmatpush.msra.mxu0 %v1144_v55  ;;  %2535 = vmatpush.msra.mxu2 %v1208_v56  ;;  %v1120_v43 = vld [vmem:[%s3313_s7 + $0x1838] sm:$0xff]  ;;  %v1218_v46 = vld [vmem:[%s3313_s7 + $0x1b48] sm:$0xff] }
 0x23a   : > { %2450 = vmatpush.msrb.mxu1 %v1018_v57  ;;  %2490 = vmatpush.msrb.mxu3 %v1082_v58  ;;  %v1184_v45 = vld [vmem:[%s3313_s7 + $0x1a38] sm:$0xff]  ;;  %v1118_v47 = vld [vmem:[%s3313_s7 + $0x1828] sm:$0xff] }
 0x23b   : > { %2451 = vmatmul.f32.vlgmr.msrb.gmra.mxu1 %v2923_v1  ;;  %2491 = vmatmul.f32.vlgmr.msrb.gmra.mxu3 %v2924_v2  ;;  %v1152_v48 = vld [vmem:[%s3313_s7 + $0x1938] sm:$0xff]  ;;  %v1182_v49 = vld [vmem:[%s3313_s7 + $0x1a28] sm:$0xff] }
 0x23c   : > { %2496 = vmatpush.msra.mxu0 %v1142_v61  ;;  %2515 = vmatpush.msra.mxu1 %v1176_v62  ;;  %v1216_v50 = vld [vmem:[%s3313_s7 + $0x1b38] sm:$0xff]  ;;  %v1150_v52 = vld [vmem:[%s3313_s7 + $0x1928] sm:$0xff] }
 0x23d   : > { %2536 = vmatpush.msra.mxu2 %v1206_v63  ;;  %2555 = vmatpush.msra.mxu3 %v1240_v0  ;;  %v1116_v51 = vld [vmem:[%s3313_s7 + $0x1818] sm:$0xff]  ;;  %v1214_v54 = vld [vmem:[%s3313_s7 + $0x1b28] sm:$0xff]  ;;  %v2925_v63 = vld [vmem:[#allocation2 + $0xc0] sm:$0xff] }
 0x23e   : > { %2497 = vmatpush.msra.mxu0 %v1140_v3  ;;  %2516 = vmatpush.msra.mxu1 %v1174_v4  ;;  %v1180_v53 = vld [vmem:[%s3313_s7 + $0x1a18] sm:$0xff]  ;;  %v1114_v55 = vld [vmem:[%s3313_s7 + $0x1808] sm:$0xff]  ;;  %v2926_v0 = vld [vmem:[#allocation2 + $0xd0] sm:$0xff] }
 0x23f   : > { %2537 = vmatpush.msra.mxu2 %v1204_v5  ;;  %2556 = vmatpush.msra.mxu3 %v1238_v6  ;;  %v1148_v56 = vld [vmem:[%s3313_s7 + $0x1918] sm:$0xff]  ;;  %v1178_v57 = vld [vmem:[%s3313_s7 + $0x1a08] sm:$0xff] }
 0x240   : > { %2498 = vmatpush.msra.mxu0 %v1138_v7  ;;  %2517 = vmatpush.msra.mxu1 %v1172_v8  ;;  %v1212_v58 = vld [vmem:[%s3313_s7 + $0x1b18] sm:$0xff]  ;;  %v1146_v61 = vld [vmem:[%s3313_s7 + $0x1908] sm:$0xff] }
 0x241   : > { %2538 = vmatpush.msra.mxu2 %v1202_v9  ;;  %2557 = vmatpush.msra.mxu3 %v1236_v10  ;;  %v1272_v59 = vld [vmem:[%s3313_s7 + $0x1cf8] sm:$0xff]  ;;  %v1210_v62 = vld [vmem:[%s3313_s7 + $0x1b08] sm:$0xff] }
 0x242   : > { %2499 = vmatpush.msra.mxu0 %v1136_v11  ;;  %2518 = vmatpush.msra.mxu1 %v1170_v12  ;;  %v1336_v60 = vld [vmem:[%s3313_s7 + $0x1ef8] sm:$0xff]  ;;  %v1270_v1 = vld [vmem:[%s3313_s7 + $0x1ce8] sm:$0xff] }
 0x243   : > { %2539 = vmatpush.msra.mxu2 %v1200_v13  ;;  %2558 = vmatpush.msra.mxu3 %v1234_v14  ;;  %v1304_v2 = vld [vmem:[%s3313_s7 + $0x1df8] sm:$0xff]  ;;  %v1334_v3 = vld [vmem:[%s3313_s7 + $0x1ee8] sm:$0xff] }
 0x244   : > { %2500 = vmatpush.msra.mxu0 %v1134_v15  ;;  %2519 = vmatpush.msra.mxu1 %v1168_v16  ;;  %v1368_v4 = vld [vmem:[%s3313_s7 + $0x1ff8] sm:$0xff]  ;;  %v2927_v5 = vld [vmem:[#allocation2 + $0xc8] sm:$0xff] }
 0x245   : > { %2540 = vmatpush.msra.mxu2 %v1198_v17  ;;  %2559 = vmatpush.msra.mxu3 %v1232_v18  ;;  %v2928_v6 = vld [vmem:[#allocation2 + $0xd8] sm:$0xff]  ;;  %v1302_v8 = vld [vmem:[%s3313_s7 + $0x1de8] sm:$0xff] }
 0x246   : > { %2501 = vmatpush.msra.mxu0 %v1132_v19  ;;  %2520 = vmatpush.msra.mxu1 %v1166_v20  ;;  %v1268_v7 = vld [vmem:[%s3313_s7 + $0x1cd8] sm:$0xff]  ;;  %v1366_v10 = vld [vmem:[%s3313_s7 + $0x1fe8] sm:$0xff] }
 0x247   : > { %2541 = vmatpush.msra.mxu2 %v1196_v21  ;;  %2560 = vmatpush.msra.mxu3 %v1230_v22  ;;  %v1332_v9 = vld [vmem:[%s3313_s7 + $0x1ed8] sm:$0xff]  ;;  %v1266_v11 = vld [vmem:[%s3313_s7 + $0x1cc8] sm:$0xff] }
 0x248   : > { %2502 = vmatpush.msra.mxu0 %v1130_v23  ;;  %2521 = vmatpush.msra.mxu1 %v1164_v24  ;;  %v1300_v12 = vld [vmem:[%s3313_s7 + $0x1dd8] sm:$0xff]  ;;  %v1330_v13 = vld [vmem:[%s3313_s7 + $0x1ec8] sm:$0xff] }
 0x249   : > { %2542 = vmatpush.msra.mxu2 %v1194_v25  ;;  %2561 = vmatpush.msra.mxu3 %v1228_v26  ;;  %v1364_v14 = vld [vmem:[%s3313_s7 + $0x1fd8] sm:$0xff]  ;;  %v1298_v16 = vld [vmem:[%s3313_s7 + $0x1dc8] sm:$0xff] }
 0x24a   : > { %2503 = vmatpush.msra.mxu0 %v1128_v27  ;;  %2522 = vmatpush.msra.mxu1 %v1162_v28  ;;  %v1264_v15 = vld [vmem:[%s3313_s7 + $0x1cb8] sm:$0xff]  ;;  %v1362_v18 = vld [vmem:[%s3313_s7 + $0x1fc8] sm:$0xff] }
 0x24b   : > { %2543 = vmatpush.msra.mxu2 %v1192_v29  ;;  %2562 = vmatpush.msra.mxu3 %v1226_v30  ;;  %v1328_v17 = vld [vmem:[%s3313_s7 + $0x1eb8] sm:$0xff]  ;;  %v1262_v19 = vld [vmem:[%s3313_s7 + $0x1ca8] sm:$0xff] }
 0x24c   : > { %2504 = vmatpush.msra.mxu0 %v1126_v31  ;;  %2523 = vmatpush.msra.mxu1 %v1160_v32  ;;  %v1296_v20 = vld [vmem:[%s3313_s7 + $0x1db8] sm:$0xff]  ;;  %v1326_v21 = vld [vmem:[%s3313_s7 + $0x1ea8] sm:$0xff] }
 0x24d   : > { %2544 = vmatpush.msra.mxu2 %v1190_v33  ;;  %2563 = vmatpush.msra.mxu3 %v1224_v34  ;;  %v1360_v22 = vld [vmem:[%s3313_s7 + $0x1fb8] sm:$0xff]  ;;  %v1294_v24 = vld [vmem:[%s3313_s7 + $0x1da8] sm:$0xff] }
 0x24e   : > { %2505 = vmatpush.msra.mxu0 %v1124_v35  ;;  %2524 = vmatpush.msra.mxu1 %v1158_v36  ;;  %v1260_v23 = vld [vmem:[%s3313_s7 + $0x1c98] sm:$0xff]  ;;  %v1358_v26 = vld [vmem:[%s3313_s7 + $0x1fa8] sm:$0xff] }
 0x24f   : > { %2545 = vmatpush.msra.mxu2 %v1188_v37  ;;  %2564 = vmatpush.msra.mxu3 %v1222_v38  ;;  %v1324_v25 = vld [vmem:[%s3313_s7 + $0x1e98] sm:$0xff]  ;;  %v1258_v27 = vld [vmem:[%s3313_s7 + $0x1c88] sm:$0xff] }
 0x250   : > { %2506 = vmatpush.msra.mxu0 %v1122_v39  ;;  %2525 = vmatpush.msra.mxu1 %v1156_v40  ;;  %v1292_v28 = vld [vmem:[%s3313_s7 + $0x1d98] sm:$0xff]  ;;  %v1322_v29 = vld [vmem:[%s3313_s7 + $0x1e88] sm:$0xff] }
 0x251   : > { %2546 = vmatpush.msra.mxu2 %v1186_v41  ;;  %2565 = vmatpush.msra.mxu3 %v1220_v42  ;;  %v1356_v30 = vld [vmem:[%s3313_s7 + $0x1f98] sm:$0xff]  ;;  %v1290_v32 = vld [vmem:[%s3313_s7 + $0x1d88] sm:$0xff] }
 0x252   : > { %2507 = vmatpush.msra.mxu0 %v1120_v43  ;;  %2526 = vmatpush.msra.mxu1 %v1154_v44  ;;  %v1256_v31 = vld [vmem:[%s3313_s7 + $0x1c78] sm:$0xff]  ;;  %v1354_v34 = vld [vmem:[%s3313_s7 + $0x1f88] sm:$0xff] }
 0x253   : > { %2547 = vmatpush.msra.mxu2 %v1184_v45  ;;  %2566 = vmatpush.msra.mxu3 %v1218_v46  ;;  %v1320_v33 = vld [vmem:[%s3313_s7 + $0x1e78] sm:$0xff]  ;;  %v1254_v35 = vld [vmem:[%s3313_s7 + $0x1c68] sm:$0xff] }
 0x254   : > { %2508 = vmatpush.msra.mxu0 %v1118_v47  ;;  %2527 = vmatpush.msra.mxu1 %v1152_v48  ;;  %v1288_v36 = vld [vmem:[%s3313_s7 + $0x1d78] sm:$0xff]  ;;  %v1318_v37 = vld [vmem:[%s3313_s7 + $0x1e68] sm:$0xff] }
 0x255   : > { %2548 = vmatpush.msra.mxu2 %v1182_v49  ;;  %2567 = vmatpush.msra.mxu3 %v1216_v50  ;;  %v1352_v38 = vld [vmem:[%s3313_s7 + $0x1f78] sm:$0xff]  ;;  %v1286_v40 = vld [vmem:[%s3313_s7 + $0x1d68] sm:$0xff] }
 0x256   : > { %2509 = vmatpush.msra.mxu0 %v1116_v51  ;;  %2528 = vmatpush.msra.mxu1 %v1150_v52  ;;  %v1252_v39 = vld [vmem:[%s3313_s7 + $0x1c58] sm:$0xff]  ;;  %v1350_v42 = vld [vmem:[%s3313_s7 + $0x1f68] sm:$0xff] }
 0x257   : > { %2549 = vmatpush.msra.mxu2 %v1180_v53  ;;  %2568 = vmatpush.msra.mxu3 %v1214_v54  ;;  %v1316_v41 = vld [vmem:[%s3313_s7 + $0x1e58] sm:$0xff]  ;;  %v1250_v43 = vld [vmem:[%s3313_s7 + $0x1c48] sm:$0xff] }
 0x258   : > { %2510 = vmatpush.msra.mxu0 %v1114_v55  ;;  %2529 = vmatpush.msra.mxu1 %v1148_v56  ;;  %v1284_v44 = vld [vmem:[%s3313_s7 + $0x1d58] sm:$0xff]  ;;  %v1314_v45 = vld [vmem:[%s3313_s7 + $0x1e48] sm:$0xff] }
 0x259   : > { %2550 = vmatpush.msra.mxu2 %v1178_v57  ;;  %2569 = vmatpush.msra.mxu3 %v1212_v58  ;;  %v1348_v46 = vld [vmem:[%s3313_s7 + $0x1f58] sm:$0xff]  ;;  %v1282_v48 = vld [vmem:[%s3313_s7 + $0x1d48] sm:$0xff] }
 0x25a   : > { %2511 = vmatmul.f32.vlgmr.msra.gmra.mxu0 %v2925_v63  ;;  %2551 = vmatmul.f32.vlgmr.msra.gmra.mxu2 %v2926_v0  ;;  %v1248_v47 = vld [vmem:[%s3313_s7 + $0x1c38] sm:$0xff]  ;;  %v1346_v50 = vld [vmem:[%s3313_s7 + $0x1f48] sm:$0xff] }
 0x25b   : > { %2575 = vmatpush.msrb.mxu0 %v1272_v59  ;;  %2615 = vmatpush.msrb.mxu2 %v1336_v60  ;;  %v1312_v49 = vld [vmem:[%s3313_s7 + $0x1e38] sm:$0xff]  ;;  %v1246_v51 = vld [vmem:[%s3313_s7 + $0x1c28] sm:$0xff] }
 0x25c   : > { %2530 = vmatpush.msra.mxu1 %v1146_v61  ;;  %2570 = vmatpush.msra.mxu3 %v1210_v62  ;;  %v1280_v52 = vld [vmem:[%s3313_s7 + $0x1d38] sm:$0xff]  ;;  %v1310_v53 = vld [vmem:[%s3313_s7 + $0x1e28] sm:$0xff] }
 0x25d   : > { %2531 = vmatmul.f32.vlgmr.msra.gmra.mxu1 %v2927_v5  ;;  %2571 = vmatmul.f32.vlgmr.msra.gmra.mxu3 %v2928_v6  ;;  %v1344_v54 = vld [vmem:[%s3313_s7 + $0x1f38] sm:$0xff]  ;;  %v1278_v56 = vld [vmem:[%s3313_s7 + $0x1d28] sm:$0xff]  ;;  %v2933_v5 = vld [vmem:[%s3321_s23] sm:$0x3] }
 0x25e   : > { %2576 = vmatpush.msrb.mxu0 %v1270_v1  ;;  %2595 = vmatpush.msrb.mxu1 %v1304_v2  ;;  %v1244_v55 = vld [vmem:[%s3313_s7 + $0x1c18] sm:$0xff]  ;;  %v1342_v58 = vld [vmem:[%s3313_s7 + $0x1f28] sm:$0xff]  ;;  %v2929_v1 = vld [vmem:[#allocation2 + $0xe0] sm:$0xff]  ;;  %v1372_v6 = vperm.slane %v2933_v5, 1 }
 0x25f   : > { %2616 = vmatpush.msrb.mxu2 %v1334_v3  ;;  %2635 = vmatpush.msrb.mxu3 %v1368_v4  ;;  %v1308_v57 = vld [vmem:[%s3313_s7 + $0x1e18] sm:$0xff]  ;;  %v1242_v59 = vld [vmem:[%s3313_s7 + $0x1c08] sm:$0xff]  ;;  %v2930_v2 = vld [vmem:[#allocation2 + $0xf0] sm:$0xff] }
 0x260   : > { %2577 = vmatpush.msrb.mxu0 %v1268_v7  ;;  %2596 = vmatpush.msrb.mxu1 %v1302_v8  ;;  %v1276_v60 = vld [vmem:[%s3313_s7 + $0x1d18] sm:$0xff]  ;;  %v1306_v61 = vld [vmem:[%s3313_s7 + $0x1e08] sm:$0xff]  ;;  %v2032_v7 = vpop.f32.mrf.mxu0 }
 0x261   : > { %2617 = vmatpush.msrb.mxu2 %v1332_v9  ;;  %2636 = vmatpush.msrb.mxu3 %v1366_v10  ;;  %v1340_v62 = vld [vmem:[%s3313_s7 + $0x1f18] sm:$0xff]  ;;  %v1274_v63 = vld [vmem:[%s3313_s7 + $0x1d08] sm:$0xff]  ;;  %v2033_v8 = vadd.f32 %v2032_v7, %v1372_v6  ;;  %v2052_v9 = vpop.f32.mrf.mxu1 }
 0x262   : > { %2578 = vmatpush.msrb.mxu0 %v1266_v11  ;;  %2597 = vmatpush.msrb.mxu1 %v1300_v12  ;;  %v1338_v0 = vld [vmem:[%s3313_s7 + $0x1f08] sm:$0xff]  ;;  %v2932_v4 = vld [vmem:[#allocation2 + $0xf8] sm:$0xff]  ;;  %v2072_v11 = vpop.f32.mrf.mxu2 }
 0x263   : > { %2618 = vmatpush.msrb.mxu2 %v1330_v13  ;;  %2637 = vmatpush.msrb.mxu3 %v1364_v14  ;;  %v2931_v3 = vld [vmem:[#allocation2 + $0xe8] sm:$0xff]  ;;  %v2053_v10 = vadd.f32 %v2052_v9, %v2033_v8  ;;  %v2092_v13 = vpop.f32.mrf.mxu3 }
 0x264   : > { %2579 = vmatpush.msrb.mxu0 %v1264_v15  ;;  %2598 = vmatpush.msrb.mxu1 %v1298_v16  ;;  %v2658_v7 = vld [vmem:[%s3326_s26 + $0x8] sm:$0xff] }
 0x265   : > { %2619 = vmatpush.msrb.mxu2 %v1328_v17  ;;  %2638 = vmatpush.msrb.mxu3 %v1362_v18  ;;  %v2073_v12 = vadd.f32 %v2072_v11, %v2053_v10 }
 0x266   : > { %2580 = vmatpush.msrb.mxu0 %v1262_v19  ;;  %2599 = vmatpush.msrb.mxu1 %v1296_v20 }
 0x267   : > { %2620 = vmatpush.msrb.mxu2 %v1326_v21  ;;  %2639 = vmatpush.msrb.mxu3 %v1360_v22  ;;  %v2093_v14 = vadd.f32 %v2092_v13, %v2073_v12 }
 0x268   : > { %2581 = vmatpush.msrb.mxu0 %v1260_v23  ;;  %2600 = vmatpush.msrb.mxu1 %v1294_v24  ;;  %v2112_v15 = vpop.f32.mrf.mxu0 }
 0x269   : > { %2621 = vmatpush.msrb.mxu2 %v1324_v25  ;;  %2640 = vmatpush.msrb.mxu3 %v1358_v26  ;;  %v2113_v16 = vadd.f32 %v2112_v15, %v2093_v14  ;;  %v2132_v17 = vpop.f32.mrf.mxu1 }
 0x26a   : > { %2582 = vmatpush.msrb.mxu0 %v1258_v27  ;;  %2601 = vmatpush.msrb.mxu1 %v1292_v28  ;;  %v2152_v19 = vpop.f32.mrf.mxu2 }
 0x26b   : > { %2622 = vmatpush.msrb.mxu2 %v1322_v29  ;;  %2641 = vmatpush.msrb.mxu3 %v1356_v30  ;;  %v2133_v18 = vadd.f32 %v2132_v17, %v2113_v16  ;;  %v2172_v21 = vpop.f32.mrf.mxu3 }
 0x26c   : > { %2583 = vmatpush.msrb.mxu0 %v1256_v31  ;;  %2602 = vmatpush.msrb.mxu1 %v1290_v32 }
 0x26d   : > { %2623 = vmatpush.msrb.mxu2 %v1320_v33  ;;  %2642 = vmatpush.msrb.mxu3 %v1354_v34  ;;  %v2153_v20 = vadd.f32 %v2152_v19, %v2133_v18 }
 0x26e   : > { %2584 = vmatpush.msrb.mxu0 %v1254_v35  ;;  %2603 = vmatpush.msrb.mxu1 %v1288_v36 }
 0x26f   : > { %2624 = vmatpush.msrb.mxu2 %v1318_v37  ;;  %2643 = vmatpush.msrb.mxu3 %v1352_v38  ;;  %v2173_v23 = vadd.f32 %v2172_v21, %v2153_v20 }
 0x270   : > { %2585 = vmatpush.msrb.mxu0 %v1252_v39  ;;  %2604 = vmatpush.msrb.mxu1 %v1286_v40  ;;  %v2192_v22 = vpop.f32.mrf.mxu0 }
 0x271   : > { %2625 = vmatpush.msrb.mxu2 %v1316_v41  ;;  %2644 = vmatpush.msrb.mxu3 %v1350_v42  ;;  %v2193_v24 = vadd.f32 %v2192_v22, %v2173_v23  ;;  %v2212_v25 = vpop.f32.mrf.mxu1 }
 0x272   : > { %2586 = vmatpush.msrb.mxu0 %v1250_v43  ;;  %2605 = vmatpush.msrb.mxu1 %v1284_v44  ;;  %v2232_v26 = vpop.f32.mrf.mxu2 }
 0x273   : > { %2626 = vmatpush.msrb.mxu2 %v1314_v45  ;;  %2645 = vmatpush.msrb.mxu3 %v1348_v46  ;;  %v2213_v27 = vadd.f32 %v2212_v25, %v2193_v24  ;;  %v2252_v29 = vpop.f32.mrf.mxu3 }
 0x274   : > { %2587 = vmatpush.msrb.mxu0 %v1248_v47  ;;  %2606 = vmatpush.msrb.mxu1 %v1282_v48 }
 0x275   : > { %2627 = vmatpush.msrb.mxu2 %v1312_v49  ;;  %2646 = vmatpush.msrb.mxu3 %v1346_v50  ;;  %v2233_v28 = vadd.f32 %v2232_v26, %v2213_v27 }
 0x276   : > { %2588 = vmatpush.msrb.mxu0 %v1246_v51  ;;  %2607 = vmatpush.msrb.mxu1 %v1280_v52 }
 0x277   : > { %2628 = vmatpush.msrb.mxu2 %v1310_v53  ;;  %2647 = vmatpush.msrb.mxu3 %v1344_v54  ;;  %v2253_v31 = vadd.f32 %v2252_v29, %v2233_v28 }
 0x278   : > { %2589 = vmatpush.msrb.mxu0 %v1244_v55  ;;  %2608 = vmatpush.msrb.mxu1 %v1278_v56  ;;  %v2272_v30 = vpop.f32.mrf.mxu0 }
 0x279   : > { %2629 = vmatpush.msrb.mxu2 %v1308_v57  ;;  %2648 = vmatpush.msrb.mxu3 %v1342_v58  ;;  %v2273_v32 = vadd.f32 %v2272_v30, %v2253_v31  ;;  %v2292_v33 = vpop.f32.mrf.mxu1 }
 0x27a   : > { %2590 = vmatpush.msrb.mxu0 %v1242_v59  ;;  %2609 = vmatpush.msrb.mxu1 %v1276_v60  ;;  %v2312_v34 = vpop.f32.mrf.mxu2 }
 0x27b   : > { %2630 = vmatpush.msrb.mxu2 %v1306_v61  ;;  %2649 = vmatpush.msrb.mxu3 %v1340_v62  ;;  %v2293_v35 = vadd.f32 %v2292_v33, %v2273_v32  ;;  %v2332_v37 = vpop.f32.mrf.mxu3 }
 0x27c   : > { %2591 = vmatmul.f32.vlgmr.msrb.gmra.mxu0 %v2929_v1  ;;  %2631 = vmatmul.f32.vlgmr.msrb.gmra.mxu2 %v2930_v2 }
 0x27d   : > { %2610 = vmatpush.msrb.mxu1 %v1274_v63  ;;  %2650 = vmatpush.msrb.mxu3 %v1338_v0  ;;  %v2313_v36 = vadd.f32 %v2312_v34, %v2293_v35 }
 0x27e   : > { %2611 = vmatmul.f32.vlgmr.msrb.gmra.mxu1 %v2931_v3  ;;  %2651 = vmatmul.f32.vlgmr.msrb.gmra.mxu3 %v2932_v4 }
 0x27f   : > { %v2333_v39 = vadd.f32 %v2332_v37, %v2313_v36 }
 0x293   : > { %v2352_v38 = vpop.f32.mrf.mxu0 }
 0x294   : > { %v2353_v40 = vadd.f32 %v2352_v38, %v2333_v39 }
 0x296   : > { %v2372_v41 = vpop.f32.mrf.mxu1 }
 0x297   : > { %v2373_v43 = vadd.f32 %v2372_v41, %v2353_v40 }
 0x299   : > { %v2392_v42 = vpop.f32.mrf.mxu2 }
 0x29a   : > { %v2393_v44 = vadd.f32 %v2392_v42, %v2373_v43 }
 0x29c   : > { %v2412_v45 = vpop.f32.mrf.mxu3 }
 0x29d   : > { %v2413_v47 = vadd.f32 %v2412_v45, %v2393_v44 }
 0x2b5   : > { %v2432_v46 = vpop.f32.mrf.mxu0 }
 0x2b6   : > { %v2433_v48 = vadd.f32 %v2432_v46, %v2413_v47 }
 0x2b8   : > { %v2452_v49 = vpop.f32.mrf.mxu1 }
 0x2b9   : > { %v2453_v51 = vadd.f32 %v2452_v49, %v2433_v48 }
 0x2bb   : > { %v2472_v50 = vpop.f32.mrf.mxu2 }
 0x2bc   : > { %v2473_v52 = vadd.f32 %v2472_v50, %v2453_v51 }
 0x2be   : > { %v2492_v53 = vpop.f32.mrf.mxu3 }
 0x2bf   : > { %v2493_v55 = vadd.f32 %v2492_v53, %v2473_v52 }
 0x2d7   : > { %v2512_v54 = vpop.f32.mrf.mxu0 }
 0x2d8   : > { %v2513_v56 = vadd.f32 %v2512_v54, %v2493_v55 }
 0x2da   : > { %v2532_v57 = vpop.f32.mrf.mxu1 }
 0x2db   : > { %v2533_v59 = vadd.f32 %v2532_v57, %v2513_v56 }
 0x2dd   : > { %v2552_v58 = vpop.f32.mrf.mxu2 }
 0x2de   : > { %v2553_v60 = vadd.f32 %v2552_v58, %v2533_v59 }
 0x2e0   : > { %v2572_v61 = vpop.f32.mrf.mxu3 }
 0x2e1   : > { %v2573_v62 = vadd.f32 %v2572_v61, %v2553_v60 }
 0x2f9   : > { %v2592_v63 = vpop.f32.mrf.mxu0 }
 0x2fa   : > { %v2593_v0 = vadd.f32 %v2592_v63, %v2573_v62 }
 0x2fb   : > { %v2612_v1 = vpop.f32.mrf.mxu1 }
 0x2fc   : > { %v2613_v2 = vadd.f32 %v2612_v1, %v2593_v0 }
 0x2ff   : > { %v2632_v3 = vpop.f32.mrf.mxu2 }
 0x300   : > { %v2633_v4 = vadd.f32 %v2632_v3, %v2613_v2 }
 0x301   : > { %v2652_v5 = vpop.f32.mrf.mxu3 }
 0x302   : > { %v2653_v6 = vadd.f32 %v2652_v5, %v2633_v4 }
 0x304   : > { %v2656_v8 = vmax.f32 %v2653_v6, 0.0 }
 0x306   : > { %v2660_v9 = vmul.f32 %v2658_v7, %v2656_v8 }
 0x308   : > { %2662 = vst [vmem:[%s4116_s29 + $0x8] sm:$0xff] %v2660_v9 }
 0x309   : > { %3081 = shalt.err (!%p3078_p5)
}
 0x30a   : > { %2841 = dma.vmem_to_hbm [thread:$0]  (%p3247_p11), %s2678_s8, 256, %s2680_s6, %s2664_s9  }
 0x30b PF: > { %s2691_s10 = sand.u32 1, %s3116_s15   ;;  %p4417_p7 = scmp.ge.s32.totalorder %s3128_s18, 2 }
 0x30c   : > { %s2692_s11 = scalar_lea.sflag [#allocation4], %s2691_s10 }
 0x30d   : > { %p2858_p9 = pnand %p4417_p7, %p3251_p12 }
 0x30f   : > { %p2859_p13 = pneg %p2858_p9 }
 0x311   : > { %3111 = dma.done.wait (%p2859_p13), %s2692_s11, 256  }
 0x312   : > { %3113 = vsyncadd (%p2859_p13), %s2692_s11, 4294967040  ;;  %s4418_s14 = sld [smem:[#allocation15_spill]]  ;;  %p21_p0 = scmp.ge.s32.totalorder %s3180_s19, 4  }
 0x313   : > { %s4419_s15 = smov %s3120_s16  ;;  %s4420_s16 = smov %s3124_s17 }
 0x314   : > { %s4422_s18 = smov %s3180_s19  ;;  %23 = sbr.rel (!%p21_p0) target bundleno = 11 (0xb), region = 110 }
 0x318   : > { %s4421_s17 = smov %s4418_s14 }
 0x319   :  { %2698 = vsyncpa [#allocation3], 1 }
 0x31a   :  { %2700 = vsyncpa [#allocation3 + $0x1], 1 }
 0x31b   :  { %2701 = vsyncpa [#allocation6], 1 }
 0x31c   :  { %2703 = vsyncpa [#allocation6 + $0x1], 1 }
 0x31d   :  { %2704 = vsyncpa [#allocation9], 1 }
 0x31e   :  { %2706 = vsyncpa [#allocation9 + $0x1], 1 }
 0x31f   :  { %2707 = vsyncpa [#allocation4], 1 }
 0x320   :  { %2709 = vsyncpa [#allocation4 + $0x1], 1 }

</bundles_post_ra>
